<compile_context>
chip_gen: v7x
topology: tpu7x:2x2x1
jax: 0.10.0
libtpu: 0.0.40
codegen_flags: <defaults>
</compile_context>

<pallas_src>
import functools

import jax
import jax.numpy as jnp
from jax.experimental import pallas as pl
from jax.experimental.pallas import tpu as pltpu


# ----------------------------------------------------------------------------
# Device heuristics
# ----------------------------------------------------------------------------
def _tpu_kind():
    try:
        return jax.devices()[0].device_kind.lower()
    except Exception:
        return ""


def _is_two_core(kind):
    return ("v7" in kind) or ("tpu7" in kind) or ("7x" in kind)


# ----------------------------------------------------------------------------
# Kernel 1: bidirectional encoder LSTM.  grid=(2,) over directions ("parallel").
# The whole (S, B, E) sequence is resident; the time loop runs in-kernel and is
# fully unrolled (small body).
# ----------------------------------------------------------------------------
def enc_bidir_kernel(x_ref, lens_ref, wih_ref, whh_ref, b_ref,
                     out_ref, hlast_ref, clast_ref,
                     xg_sc, h_sc, c_sc):
    d = pl.program_id(0)                  # 0 = forward, 1 = backward
    S, B, E = x_ref.shape
    H = hlast_ref.shape[1]

    # Hoist the input projection out of the serial recurrence: one MXU op for
    # all S steps (K = E), plus the bias.
    xg_sc[...] = (jnp.dot(x_ref[...].reshape(S * B, E), wih_ref[...],
                          preferred_element_type=jnp.float32)
                  + b_ref[...]).reshape(S, B, 4 * H)

    h_sc[...] = jnp.zeros_like(h_sc)
    c_sc[...] = jnp.zeros_like(c_sc)

    def step(t, carry):
        # forward walks t = 0..S-1, backward walks t = S-1..0
        idx = jnp.where(d == 0, t, S - 1 - t)
        h = h_sc[...]
        c = c_sc[...]
        # validity mask derived in-kernel from the (B,1) lengths vector
        m = (idx < lens_ref[...]).astype(jnp.float32)        # (B, 1)

        gates = xg_sc[idx] + jnp.dot(h, whh_ref[...],
                                     preferred_element_type=jnp.float32)
        i_g = jax.nn.sigmoid(gates[:, 0:H])
        f_g = jax.nn.sigmoid(gates[:, H:2 * H])
        g_g = jnp.tanh(gates[:, 2 * H:3 * H])
        o_g = jax.nn.sigmoid(gates[:, 3 * H:4 * H])
        c_new = f_g * c + i_g * g_g
        h_new = o_g * jnp.tanh(c_new)

        # packed-sequence semantics: freeze state at padded steps, zero their output
        h_upd = m * h_new + (1.0 - m) * h
        c_upd = m * c_new + (1.0 - m) * c
        h_sc[...] = h_upd
        c_sc[...] = c_upd
        out_ref[idx] = m * h_upd
        return carry

    jax.lax.fori_loop(0, S, step, 0, unroll=True)

    # state at the last *valid* step of each sequence (written once)
    hlast_ref[...] = h_sc[...]
    clast_ref[...] = c_sc[...]


def run_encoder(X, lens_i, Wih, Whh, b_enc, *, vmem_limit):
    S, B, E = X.shape
    H = Whh.shape[1]
    flops = 4 * S * B * 4 * H * (E + H)                 # input + recurrent matmuls, 2 dirs
    trans = 2 * S * B * 6 * H
    bytes_acc = 4 * (S * B * E + B + 2 * ((E + H + 1) * 4 * H)
                     + 2 * (S * B * H + 2 * B * H))
    return pl.pallas_call(
        enc_bidir_kernel,
        out_shape=(jax.ShapeDtypeStruct((2, S, B, H), jnp.float32),
                   jax.ShapeDtypeStruct((2, B, H), jnp.float32),
                   jax.ShapeDtypeStruct((2, B, H), jnp.float32)),
        grid_spec=pltpu.PrefetchScalarGridSpec(
            num_scalar_prefetch=0,
            grid=(2,),
            in_specs=[
                pl.BlockSpec((S, B, E), lambda d: (0, 0, 0)),
                pl.BlockSpec((B, 1), lambda d: (0, 0)),
                pl.BlockSpec((None, E, 4 * H), lambda d: (d, 0, 0)),
                pl.BlockSpec((None, H, 4 * H), lambda d: (d, 0, 0)),
                pl.BlockSpec((None, 1, 4 * H), lambda d: (d, 0, 0)),
            ],
            out_specs=[
                pl.BlockSpec((None, S, B, H), lambda d: (d, 0, 0, 0)),
                pl.BlockSpec((None, B, H), lambda d: (d, 0, 0)),
                pl.BlockSpec((None, B, H), lambda d: (d, 0, 0)),
            ],
            scratch_shapes=[pltpu.VMEM((S, B, 4 * H), jnp.float32),
                            pltpu.VMEM((B, H), jnp.float32),
                            pltpu.VMEM((B, H), jnp.float32)],
        ),
        compiler_params=pltpu.CompilerParams(
            dimension_semantics=("parallel",),
            vmem_limit_bytes=vmem_limit),
        cost_estimate=pl.CostEstimate(flops=int(flops),
                                      transcendentals=int(trans),
                                      bytes_accessed=int(bytes_acc)),
    )(X, lens_i, Wih, Whh, b_enc)


# ----------------------------------------------------------------------------
# Kernel 2: decoder — init-state projections + attention projection + the full
# target-time loop (LSTMCell + Luong attention + combined output) in ONE kernel.
# grid=(num_shards,) over batch halves ("parallel"): both TCs on v7x.
# ----------------------------------------------------------------------------
def dec_kernel(y_ref, eh_ref, mask_ref, lh_ref, lc_ref,
               wy_ref, wio_ref, whh_ref, b_ref,
               whp_ref, wcp_ref, wap_ref, wca_ref, wch_ref,
               out_ref,
               yg_sc, h_sc, c_sc, o_sc, ehp_sc):
    Tm1, B, E = y_ref.shape
    S = eh_ref.shape[1]
    H = h_sc.shape[1]
    H2 = 2 * H

    # ---- prologue (runs once per shard) ----
    h_sc[...] = jnp.dot(lh_ref[...], whp_ref[...], preferred_element_type=jnp.float32)
    c_sc[...] = jnp.dot(lc_ref[...], wcp_ref[...], preferred_element_type=jnp.float32)
    o_sc[...] = jnp.zeros_like(o_sc)

    # attention projection of the encoder hiddens, stored in an explicit scratch
    ehp_sc[...] = jnp.dot(eh_ref[...].reshape(B * S, H2), wap_ref[...],
                          preferred_element_type=jnp.float32).reshape(B, S, H)

    # input-side gate pre-activations for every target step (one MXU op, K=E)
    yg_sc[...] = (jnp.dot(y_ref[...].reshape(Tm1 * B, E), wy_ref[...],
                          preferred_element_type=jnp.float32)
                  + b_ref[...]).reshape(Tm1, B, 4 * H)

    def step(t, carry):
        h = h_sc[...]
        c = c_sc[...]
        o_prev = o_sc[...]

        # LSTMCell on Ybar_t = [Y_t, o_prev]: two MXU dots, no concat
        gates = (yg_sc[t]
                 + jnp.dot(o_prev, wio_ref[...], preferred_element_type=jnp.float32)
                 + jnp.dot(h, whh_ref[...], preferred_element_type=jnp.float32))
        i_g = jax.nn.sigmoid(gates[:, 0:H])
        f_g = jax.nn.sigmoid(gates[:, H:2 * H])
        g_g = jnp.tanh(gates[:, 2 * H:3 * H])
        o_g = jax.nn.sigmoid(gates[:, 3 * H:4 * H])
        c_new = f_g * c + i_g * g_g
        h_new = o_g * jnp.tanh(c_new)

        # Luong attention — VPU broadcast-mul + XLU reduce (sublane-S layout,
        # no degenerate batched matvecs, no per-step relayout)
        e_t = jnp.sum(ehp_sc[...] * h_new[:, None, :], axis=2, keepdims=True)  # (B,S,1)
        e_t = jnp.where(mask_ref[...] > 0.0, -1e9, e_t)   # finite mask: no NaN on empty rows
        e_max = jnp.max(e_t, axis=1, keepdims=True)                            # (B,1,1)
        p_exp = jnp.exp(e_t - e_max)
        denom = jnp.sum(p_exp, axis=1, keepdims=True)                          # (B,1,1)
        alpha = p_exp * pl.reciprocal(denom, approx=True)                      # EUP divide
        a_t = jnp.sum(alpha * eh_ref[...], axis=1)                             # (B, 2H)

        # combined output projection on [a_t, h_new]: two dots, no concat.
        # dropout == identity (eval).
        o_t = jnp.tanh(jnp.dot(a_t, wca_ref[...], preferred_element_type=jnp.float32)
                       + jnp.dot(h_new, wch_ref[...], preferred_element_type=jnp.float32))

        out_ref[t] = o_t
        h_sc[...] = h_new
        c_sc[...] = c_new
        o_sc[...] = o_t
        return carry

    # serially-dependent body: do NOT fully unroll
    jax.lax.fori_loop(0, Tm1, step, 0, unroll=False)


def run_decoder(Y, enc_hiddens, enc_masks, last_hidden, last_cell,
                Wy, Wio, Whh, b, Whp, Wcp, Wap, Wca, Wch,
                *, num_shards, vmem_limit):
    Tm1, B, E = Y.shape
    _, S, H2 = enc_hiddens.shape
    H = H2 // 2
    Bs = B // num_shards

    def full(shape):
        nd = len(shape)
        return pl.BlockSpec(shape, lambda *_: (0,) * nd)

    flops = (2 * B * 2 * H * H * 2 + 2 * B * S * 2 * H * H + 2 * Tm1 * B * E * 4 * H
             + Tm1 * (2 * B * 2 * H * 4 * H + 2 * B * S * H + 2 * B * S * 2 * H
                      + 2 * B * 3 * H * H))
    trans = Tm1 * B * (6 * H + 2 * S)
    bytes_acc = 4 * (Tm1 * B * E + B * S * 2 * H + B * S + 2 * B * 2 * H
                     + (E + 2 * H) * 4 * H + 4 * H + 3 * 2 * H * H + H * H
                     + Tm1 * B * H)

    return pl.pallas_call(
        dec_kernel,
        out_shape=jax.ShapeDtypeStruct((Tm1, B, H), jnp.float32),
        grid_spec=pltpu.PrefetchScalarGridSpec(
            num_scalar_prefetch=0,
            grid=(num_shards,),
            in_specs=[
                pl.BlockSpec((Tm1, Bs, E), lambda s: (0, s, 0)),
                pl.BlockSpec((Bs, S, H2), lambda s: (s, 0, 0)),
                pl.BlockSpec((Bs, S, 1), lambda s: (s, 0, 0)),
                pl.BlockSpec((Bs, H2), lambda s: (s, 0)),
                pl.BlockSpec((Bs, H2), lambda s: (s, 0)),
                full((E, 4 * H)), full((H, 4 * H)), full((H, 4 * H)), full((1, 4 * H)),
                full((H2, H)), full((H2, H)), full((H2, H)),
                full((H2, H)), full((H, H)),
            ],
            out_specs=pl.BlockSpec((Tm1, Bs, H), lambda s: (0, s, 0)),
            scratch_shapes=[pltpu.VMEM((Tm1, Bs, 4 * H), jnp.float32),
                            pltpu.VMEM((Bs, H), jnp.float32),
                            pltpu.VMEM((Bs, H), jnp.float32),
                            pltpu.VMEM((Bs, H), jnp.float32),
                            pltpu.VMEM((Bs, S, H), jnp.float32)],
        ),
        compiler_params=pltpu.CompilerParams(
            dimension_semantics=("parallel",),
            vmem_limit_bytes=vmem_limit),
        cost_estimate=pl.CostEstimate(flops=int(flops),
                                      transcendentals=int(trans),
                                      bytes_accessed=int(bytes_acc)),
    )(Y, enc_hiddens, enc_masks, last_hidden, last_cell,
      Wy, Wio, Whh, b, Whp, Wcp, Wap, Wca, Wch)


# ----------------------------------------------------------------------------
# Kernel 3: vocab projection + log_softmax + gold-token log-prob.
# Rows live in the LANE dim (lane-dense (1, TR) output blocks); grid =
# (row tiles "parallel", vocab tiles "arbitrary") with online max/LSE + gold
# accumulation so the full vocab weight never has to be VMEM-resident.
# ----------------------------------------------------------------------------
def score_kernel(wv_ref, xt_ref, tgt_ref, out_ref, m_sc, l_sc, g_sc,
                 *, v_real, vt):
    v = pl.program_id(1)

    @pl.when(v == 0)
    def _():
        m_sc[...] = jnp.full_like(m_sc, -jnp.inf)
        l_sc[...] = jnp.zeros_like(l_sc)
        g_sc[...] = jnp.zeros_like(g_sc)

    logits = jnp.dot(wv_ref[...], xt_ref[...],
                     preferred_element_type=jnp.float32)            # (vt, TR)
    row = jax.lax.broadcasted_iota(jnp.int32, logits.shape, 0) + v * vt
    logits = jnp.where(row < v_real, logits, -jnp.inf)              # mask padded vocab rows

    m_prev = m_sc[...]
    m_new = jnp.maximum(m_prev, jnp.max(logits, axis=0, keepdims=True))
    l_sc[...] = (l_sc[...] * jnp.exp(m_prev - m_new)
                 + jnp.sum(jnp.exp(logits - m_new), axis=0, keepdims=True))
    g_sc[...] = g_sc[...] + jnp.sum(jnp.where(row == tgt_ref[...], logits, 0.0),
                                    axis=0, keepdims=True)
    m_sc[...] = m_new

    @pl.when(v == pl.num_programs(1) - 1)
    def _():
        out_ref[...] = g_sc[...] - (jnp.log(l_sc[...]) + m_sc[...])


def run_scoring(WvT, xT, tgt_ids, v_real, *, tr, vt):
    V_pad, H = WvT.shape
    N_pad = xT.shape[1]
    R = N_pad // tr
    NV = V_pad // vt
    kern = functools.partial(score_kernel, v_real=v_real, vt=vt)

    flops = 2 * V_pad * H * N_pad
    trans = V_pad * N_pad + 2 * N_pad
    bytes_acc = 4 * (V_pad * H + H * N_pad + 2 * N_pad)

    return pl.pallas_call(
        kern,
        out_shape=jax.ShapeDtypeStruct((1, N_pad), jnp.float32),
        grid_spec=pltpu.PrefetchScalarGridSpec(
            num_scalar_prefetch=0,
            grid=(R, NV),
            in_specs=[
                pl.BlockSpec((vt, H), lambda i, v: (v, 0)),
                pl.BlockSpec((H, tr), lambda i, v: (0, i)),
                pl.BlockSpec((1, tr), lambda i, v: (0, i)),
            ],
            out_specs=pl.BlockSpec((1, tr), lambda i, v: (0, i)),
            scratch_shapes=[pltpu.VMEM((1, tr), jnp.float32),
                            pltpu.VMEM((1, tr), jnp.float32),
                            pltpu.VMEM((1, tr), jnp.float32)],
        ),
        compiler_params=pltpu.CompilerParams(
            dimension_semantics=("parallel", "arbitrary")),
        cost_estimate=pl.CostEstimate(flops=int(flops),
                                      transcendentals=int(trans),
                                      bytes_accessed=int(bytes_acc)),
    )(WvT, xT, tgt_ids)


# ----------------------------------------------------------------------------
# Parameters (deterministic, synthetic).  Linear weights stored (in, out) so
# kernels compute x @ W; the vocab projection keeps the PyTorch (V, H) layout.
# ----------------------------------------------------------------------------
def init_params(key, E, H, Vs, Vt):
    ks = jax.random.split(key, 16)
    rnd = lambda k, shape: jax.random.normal(k, shape, jnp.float32) * 0.1
    p = {}
    p['src_emb'] = rnd(ks[0], (Vs, E)).at[0].set(0.0)   # padding_idx = 0
    p['tgt_emb'] = rnd(ks[1], (Vt, E)).at[0].set(0.0)   # padding_idx = 0
    # encoder bi-LSTM (bias_ih + bias_hh folded into one bias per direction)
    p['enc_Wih_f'] = rnd(ks[2], (E, 4 * H))
    p['enc_Whh_f'] = rnd(ks[3], (H, 4 * H))
    p['enc_b_f'] = rnd(ks[4], (1, 4 * H))
    p['enc_Wih_b'] = rnd(ks[5], (E, 4 * H))
    p['enc_Whh_b'] = rnd(ks[6], (H, 4 * H))
    p['enc_b_b'] = rnd(ks[7], (1, 4 * H))
    # decoder LSTMCell on [Y_t, o_prev]
    p['dec_Wih'] = rnd(ks[8], (E + H, 4 * H))
    p['dec_Whh'] = rnd(ks[9], (H, 4 * H))
    p['dec_b'] = rnd(ks[10], (1, 4 * H))
    # projections
    p['W_hproj'] = rnd(ks[11], (2 * H, H))
    p['W_cproj'] = rnd(ks[12], (2 * H, H))
    p['W_attproj'] = rnd(ks[13], (2 * H, H))
    p['W_comb'] = rnd(ks[14], (3 * H, H))
    p['W_vocab'] = rnd(ks[15], (Vt, H))
    return p


# ----------------------------------------------------------------------------
# NMT.forward equivalent: per-example gold log-likelihood, shape (B,).
# ----------------------------------------------------------------------------
def nmt_forward(p, source_padded, source_lengths, target_padded):
    kind = _tpu_kind()
    two_core = _is_two_core(kind)
    dec_shards = 2 if two_core else 1                       # batch halves on v7x
    vmem_limit = (48 << 20) if two_core else (96 << 20)     # 64 vs 128 MiB physical
    TR = 128 if ("v5" in kind) else 256                     # scoring row tile (MXU width)

    S, B = source_padded.shape
    T = target_padded.shape[0]
    E = p['src_emb'].shape[1]
    H = p['dec_Whh'].shape[0]

    # pad batch so each decoder shard is a multiple of 8 (full f32 sublanes)
    align = 8 * dec_shards
    B_pad = max(align, ((B + align - 1) // align) * align)
    pad_b = B_pad - B
    src = jnp.pad(source_padded, ((0, 0), (0, pad_b)))
    lens = jnp.pad(source_lengths, (0, pad_b))
    tgt = jnp.pad(target_padded, ((0, 0), (0, pad_b)))

    # ---- encode (both directions in one pallas_call) ----
    X = p['src_emb'][src]                                        # (S, B_pad, E)
    lens_i = lens.astype(jnp.int32)[:, None]                     # (B_pad, 1)
    Wih = jnp.stack([p['enc_Wih_f'], p['enc_Wih_b']], axis=0)
    Whh = jnp.stack([p['enc_Whh_f'], p['enc_Whh_b']], axis=0)
    b_enc = jnp.stack([p['enc_b_f'], p['enc_b_b']], axis=0)
    out_seq, hlast, clast = run_encoder(X, lens_i, Wih, Whh, b_enc, vmem_limit=vmem_limit)

    enc_hiddens = jnp.transpose(jnp.concatenate([out_seq[0], out_seq[1]], axis=-1),
                                (1, 0, 2))                       # (B_pad, S, 2H)
    last_hidden = jnp.concatenate([hlast[0], hlast[1]], axis=1)  # (B_pad, 2H)
    last_cell = jnp.concatenate([clast[0], clast[1]], axis=1)    # (B_pad, 2H)
    # 1.0 on padded source positions; (B_pad, S, 1) so it broadcasts over lanes
    enc_masks = (jnp.arange(S)[None, :] >= lens[:, None]).astype(jnp.float32)[:, :, None]

    # ---- decode (single kernel: projections + full time loop) ----
    tgt_in = tgt[:-1]                                            # (T-1, B_pad)
    Y = p['tgt_emb'][tgt_in]                                     # (T-1, B_pad, E)
    Wy = p['dec_Wih'][:E]                                        # (E, 4H)  for Y_t
    Wio = p['dec_Wih'][E:]                                       # (H, 4H)  for o_prev
    Wca = p['W_comb'][:2 * H]                                    # (2H, H)  for a_t
    Wch = p['W_comb'][2 * H:]                                    # (H, H)   for h_new
    combined = run_decoder(Y, enc_hiddens, enc_masks, last_hidden, last_cell,
                           Wy, Wio, p['dec_Whh'], p['dec_b'],
                           p['W_hproj'], p['W_cproj'], p['W_attproj'], Wca, Wch,
                           num_shards=dec_shards, vmem_limit=vmem_limit)

    # ---- scoring ----
    Tm1 = T - 1
    gold = tgt[1:]                                               # (T-1, B_pad)
    N = Tm1 * B_pad
    N_pad = ((N + TR - 1) // TR) * TR
    V = p['W_vocab'].shape[0]
    VT_MAX = 1024                                                # vocab tile rows
    V_pad = ((V + 127) // 128) * 128
    if V_pad > VT_MAX:
        VT = VT_MAX
        V_pad = ((V + VT - 1) // VT) * VT
    else:
        VT = V_pad

    xT = jnp.pad(combined.reshape(N, H).T, ((0, 0), (0, N_pad - N)))       # (H, N_pad)
    WvT = jnp.pad(p['W_vocab'], ((0, V_pad - V), (0, 0)))                  # (V_pad, H)
    tgt_ids = jnp.pad(gold.reshape(1, N).astype(jnp.int32), ((0, 0), (0, N_pad - N)))

    gold_lp = run_scoring(WvT, xT, tgt_ids, V, tr=TR, vt=VT)     # (1, N_pad)
    gold_lp = gold_lp[0, :N].reshape(Tm1, B_pad)
    tgt_mask = (gold != 0).astype(jnp.float32)                   # <pad> id == 0
    scores = jnp.sum(gold_lp * tgt_mask, axis=0)                 # (B_pad,)
    return scores[:B]


if __name__ == "__main__":
    E, H, Vs, Vt = 32, 32, 64, 64
    B, S, T = 2, 8, 8

    key = jax.random.PRNGKey(0)
    params = init_params(key, E, H, Vs, Vt)

    # source sentences sorted longest -> shortest; lengths [8, 5], pad id 0
    source_padded = jnp.array([
        [5, 7], [9, 11], [13, 15], [17, 19], [21, 23], [25, 0], [27, 0], [29, 0]
    ], dtype=jnp.int32)                                          # (S, B)
    source_lengths = jnp.array([8, 5], dtype=jnp.int32)

    # target sentences wrapped by <s>=1 ... </s>=2, pad id 0
    target_padded = jnp.array([
        [1, 1], [5, 6], [9, 8], [12, 10], [7, 2], [4, 0], [3, 0], [2, 0]
    ], dtype=jnp.int32)                                          # (T, B)

    scores = jax.jit(nmt_forward)(params, source_padded, source_lengths, target_padded)
    scores = jax.block_until_ready(scores)
    assert scores.shape == (B,)
    assert bool(jnp.all(jnp.isfinite(scores)))
    print("KERNEL_OK")
</pallas_src>

<mosaic_0001>
module attributes {stable_mosaic.version = 11 : i64} {
  func.func @enc_bidir_kernel(%arg0: i32, %arg1: memref<8x8x32xf32, #tpu.memory_space<vmem>>, %arg2: memref<8x1xi32, #tpu.memory_space<vmem>>, %arg3: memref<1x32x128xf32, #tpu.memory_space<vmem>>, %arg4: memref<1x32x128xf32, #tpu.memory_space<vmem>>, %arg5: memref<1x1x128xf32, #tpu.memory_space<vmem>>, %arg6: memref<1x8x8x32xf32, #tpu.memory_space<vmem>>, %arg7: memref<1x8x32xf32, #tpu.memory_space<vmem>>, %arg8: memref<1x8x32xf32, #tpu.memory_space<vmem>>, %arg9: memref<8x8x128xf32, #tpu.memory_space<vmem>>, %arg10: memref<8x32xf32, #tpu.memory_space<vmem>>, %arg11: memref<8x32xf32, #tpu.memory_space<vmem>>) attributes {dimension_semantics = [#tpu.dimension_semantics<parallel>], iteration_bounds = array<i64: 2>, scalar_prefetch = 0 : i64, scratch_operands = 3 : i64, tpu.core_type = #tpu.core_type<tc>, window_params = [{pipeline_mode = #tpu.pipeline_mode<synchronous>, transform_indices = @transform_0, window_bounds = array<i64: 8, 8, 32>}, {pipeline_mode = #tpu.pipeline_mode<synchronous>, transform_indices = @transform_1, window_bounds = array<i64: 8, 1>}, {transform_indices = @transform_2, window_bounds = array<i64: 1, 32, 128>}, {transform_indices = @transform_3, window_bounds = array<i64: 1, 32, 128>}, {transform_indices = @transform_4, window_bounds = array<i64: 1, 1, 128>}, {transform_indices = @transform_5, window_bounds = array<i64: 1, 8, 8, 32>}, {transform_indices = @transform_6, window_bounds = array<i64: 1, 8, 32>}, {transform_indices = @transform_7, window_bounds = array<i64: 1, 8, 32>}]} {
    %c0 = arith.constant 0 : index
    %c0_0 = arith.constant 0 : index
    %c0_1 = arith.constant 0 : index
    %0 = vector.load %arg1[%c0, %c0_0, %c0_1] : memref<8x8x32xf32, #tpu.memory_space<vmem>>, vector<8x8x32xf32>
    %1 = vector.shape_cast %0 : vector<8x8x32xf32> to vector<64x32xf32>
    %c0_2 = arith.constant 0 : index
    %c0_3 = arith.constant 0 : index
    %c0_4 = arith.constant 0 : index
    %2 = vector.load %arg3[%c0_2, %c0_3, %c0_4] : memref<1x32x128xf32, #tpu.memory_space<vmem>>, vector<1x32x128xf32>
    %3 = vector.shape_cast %2 : vector<1x32x128xf32> to vector<32x128xf32>
    %cst = arith.constant dense<0.000000e+00> : vector<64x128xf32>
    %4 = tpu.matmul %1, %3, %cst {dimension_numbers = #tpu.dot_dimension_numbers<[1], [0], [0], [1], [0, 0, 1, 1], [], []>} : vector<64x32xf32>, vector<32x128xf32>, vector<64x128xf32> -> vector<64x128xf32>
    %c0_5 = arith.constant 0 : index
    %c0_6 = arith.constant 0 : index
    %c0_7 = arith.constant 0 : index
    %5 = vector.load %arg5[%c0_5, %c0_6, %c0_7] : memref<1x1x128xf32, #tpu.memory_space<vmem>>, vector<1x1x128xf32>
    %6 = vector.shape_cast %5 : vector<1x1x128xf32> to vector<1x128xf32>
    %7 = vector.broadcast %6 : vector<1x128xf32> to vector<64x128xf32>
    %8 = arith.addf %4, %7 : vector<64x128xf32>
    %9 = vector.shape_cast %8 : vector<64x128xf32> to vector<8x8x128xf32>
    %c0_8 = arith.constant 0 : index
    %c0_9 = arith.constant 0 : index
    %c0_10 = arith.constant 0 : index
    %10 = vector.load %arg9[%c0_8, %c0_9, %c0_10] : memref<8x8x128xf32, #tpu.memory_space<vmem>>, vector<8x8x128xf32>
    tpu.vector_store %arg9[%c0_8, %c0_9, %c0_10], %9 {strides = array<i32>} : memref<8x8x128xf32, #tpu.memory_space<vmem>>, vector<8x8x128xf32>,
    %cst_11 = arith.constant 0.000000e+00 : f32
    %11 = vector.broadcast %cst_11 : f32 to vector<8x32xf32>
    %c0_12 = arith.constant 0 : index
    %c0_13 = arith.constant 0 : index
    %12 = vector.load %arg10[%c0_12, %c0_13] : memref<8x32xf32, #tpu.memory_space<vmem>>, vector<8x32xf32>
    tpu.vector_store %arg10[%c0_12, %c0_13], %11 {strides = array<i32>} : memref<8x32xf32, #tpu.memory_space<vmem>>, vector<8x32xf32>,
    %cst_14 = arith.constant 0.000000e+00 : f32
    %13 = vector.broadcast %cst_14 : f32 to vector<8x32xf32>
    %c0_15 = arith.constant 0 : index
    %c0_16 = arith.constant 0 : index
    %14 = vector.load %arg11[%c0_15, %c0_16] : memref<8x32xf32, #tpu.memory_space<vmem>>, vector<8x32xf32>
    tpu.vector_store %arg11[%c0_15, %c0_16], %13 {strides = array<i32>} : memref<8x32xf32, #tpu.memory_space<vmem>>, vector<8x32xf32>,
    %c0_i32 = arith.constant 0 : i32
    %c0_i32_17 = arith.constant 0 : i32
    %15 = arith.cmpi eq, %arg0, %c0_i32_17 : i32
    %c7_i32 = arith.constant 7 : i32
    %16 = arith.subi %c7_i32, %c0_i32 : i32
    %17 = arith.select %15, %c0_i32, %16 : i32
    %c0_18 = arith.constant 0 : index
    %c0_19 = arith.constant 0 : index
    %18 = vector.load %arg10[%c0_18, %c0_19] : memref<8x32xf32, #tpu.memory_space<vmem>>, vector<8x32xf32>
    %c0_20 = arith.constant 0 : index
    %c0_21 = arith.constant 0 : index
    %19 = vector.load %arg11[%c0_20, %c0_21] : memref<8x32xf32, #tpu.memory_space<vmem>>, vector<8x32xf32>
    %c0_22 = arith.constant 0 : index
    %c0_23 = arith.constant 0 : index
    %20 = vector.load %arg2[%c0_22, %c0_23] : memref<8x1xi32, #tpu.memory_space<vmem>>, vector<8x1xi32>
    %21 = vector.broadcast %17 : i32 to vector<8x1xi32>
    %22 = arith.cmpi slt, %21, %20 : vector<8x1xi32>
    %23 = arith.extui %22 : vector<8x1xi1> to vector<8x1xi32>
    %24 = arith.sitofp %23 : vector<8x1xi32> to vector<8x1xf32>
    %25 = arith.index_cast %17 : i32 to index
    %c0_24 = arith.constant 0 : index
    %c0_25 = arith.constant 0 : index
    %26 = vector.load %arg9[%25, %c0_24, %c0_25] : memref<8x8x128xf32, #tpu.memory_space<vmem>>, vector<1x8x128xf32>
    %27 = vector.shape_cast %26 : vector<1x8x128xf32> to vector<8x128xf32>
    %c0_26 = arith.constant 0 : index
    %c0_27 = arith.constant 0 : index
    %c0_28 = arith.constant 0 : index
    %28 = vector.load %arg4[%c0_26, %c0_27, %c0_28] : memref<1x32x128xf32, #tpu.memory_space<vmem>>, vector<1x32x128xf32>
    %29 = vector.shape_cast %28 : vector<1x32x128xf32> to vector<32x128xf32>
    %cst_29 = arith.constant dense<0.000000e+00> : vector<8x128xf32>
    %30 = tpu.matmul %18, %29, %cst_29 {dimension_numbers = #tpu.dot_dimension_numbers<[1], [0], [0], [1], [0, 0, 1, 1], [], []>} : vector<8x32xf32>, vector<32x128xf32>, vector<8x128xf32> -> vector<8x128xf32>
    %31 = arith.addf %27, %30 : vector<8x128xf32>
    %32 = vector.extract_strided_slice %31 {offsets = [0, 0], sizes = [8, 32], strides = [1, 1]} : vector<8x128xf32> to vector<8x32xf32>
    %33 = arith.negf %32 : vector<8x32xf32>
    %34 = math.exp %33 : vector<8x32xf32>
    %cst_30 = arith.constant 1.000000e+00 : f32
    %35 = vector.broadcast %cst_30 : f32 to vector<8x32xf32>
    %36 = arith.addf %35, %34 : vector<8x32xf32>
    %37 = arith.divf %35, %36 : vector<8x32xf32>
    %38 = vector.extract_strided_slice %31 {offsets = [0, 32], sizes = [8, 32], strides = [1, 1]} : vector<8x128xf32> to vector<8x32xf32>
    %39 = arith.negf %38 : vector<8x32xf32>
    %40 = math.exp %39 : vector<8x32xf32>
    %cst_31 = arith.constant 1.000000e+00 : f32
    %41 = vector.broadcast %cst_31 : f32 to vector<8x32xf32>
    %42 = arith.addf %41, %40 : vector<8x32xf32>
    %43 = arith.divf %41, %42 : vector<8x32xf32>
    %44 = vector.extract_strided_slice %31 {offsets = [0, 64], sizes = [8, 32], strides = [1, 1]} : vector<8x128xf32> to vector<8x32xf32>
    %45 = math.tanh %44 : vector<8x32xf32>
    %46 = vector.extract_strided_slice %31 {offsets = [0, 96], sizes = [8, 32], strides = [1, 1]} : vector<8x128xf32> to vector<8x32xf32>
    %47 = arith.negf %46 : vector<8x32xf32>
    %48 = math.exp %47 : vector<8x32xf32>
    %cst_32 = arith.constant 1.000000e+00 : f32
    %49 = vector.broadcast %cst_32 : f32 to vector<8x32xf32>
    %50 = arith.addf %49, %48 : vector<8x32xf32>
    %51 = arith.divf %49, %50 : vector<8x32xf32>
    %52 = arith.mulf %43, %19 : vector<8x32xf32>
    %53 = arith.mulf %37, %45 : vector<8x32xf32>
    %54 = arith.addf %52, %53 : vector<8x32xf32>
    %55 = math.tanh %54 : vector<8x32xf32>
    %56 = arith.mulf %51, %55 : vector<8x32xf32>
    %57 = vector.broadcast %24 : vector<8x1xf32> to vector<8x32xf32>
    %58 = arith.mulf %57, %56 : vector<8x32xf32>
    %cst_33 = arith.constant 1.000000e+00 : f32
    %59 = vector.broadcast %cst_33 : f32 to vector<8x1xf32>
    %60 = arith.subf %59, %24 : vector<8x1xf32>
    %61 = vector.broadcast %60 : vector<8x1xf32> to vector<8x32xf32>
    %62 = arith.mulf %61, %18 : vector<8x32xf32>
    %63 = arith.addf %58, %62 : vector<8x32xf32>
    %64 = vector.broadcast %24 : vector<8x1xf32> to vector<8x32xf32>
    %65 = arith.mulf %64, %54 : vector<8x32xf32>
    %cst_34 = arith.constant 1.000000e+00 : f32
    %66 = vector.broadcast %cst_34 : f32 to vector<8x1xf32>
    %67 = arith.subf %66, %24 : vector<8x1xf32>
    %68 = vector.broadcast %67 : vector<8x1xf32> to vector<8x32xf32>
    %69 = arith.mulf %68, %19 : vector<8x32xf32>
    %70 = arith.addf %65, %69 : vector<8x32xf32>
    %c0_35 = arith.constant 0 : index
    %c0_36 = arith.constant 0 : index
    %71 = vector.load %arg10[%c0_35, %c0_36] : memref<8x32xf32, #tpu.memory_space<vmem>>, vector<8x32xf32>
    tpu.vector_store %arg10[%c0_35, %c0_36], %63 {strides = array<i32>} : memref<8x32xf32, #tpu.memory_space<vmem>>, vector<8x32xf32>,
    %c0_37 = arith.constant 0 : index
    %c0_38 = arith.constant 0 : index
    %72 = vector.load %arg11[%c0_37, %c0_38] : memref<8x32xf32, #tpu.memory_space<vmem>>, vector<8x32xf32>
    tpu.vector_store %arg11[%c0_37, %c0_38], %70 {strides = array<i32>} : memref<8x32xf32, #tpu.memory_space<vmem>>, vector<8x32xf32>,
    %73 = vector.broadcast %24 : vector<8x1xf32> to vector<8x32xf32>
    %74 = arith.mulf %73, %63 : vector<8x32xf32>
    %c0_39 = arith.constant 0 : index
    %75 = arith.index_cast %17 : i32 to index
    %c0_40 = arith.constant 0 : index
    %c0_41 = arith.constant 0 : index
    %76 = vector.load %arg6[%c0_39, %75, %c0_40, %c0_41] : memref<1x8x8x32xf32, #tpu.memory_space<vmem>>, vector<1x1x8x32xf32>
    %77 = vector.shape_cast %76 : vector<1x1x8x32xf32> to vector<8x32xf32>
    %78 = vector.shape_cast %74 : vector<8x32xf32> to vector<1x1x8x32xf32>
    tpu.vector_store %arg6[%c0_39, %75, %c0_40, %c0_41], %78 {strides = array<i32>} : memref<1x8x8x32xf32, #tpu.memory_space<vmem>>, vector<1x1x8x32xf32>,
    %c1_i32 = arith.constant 1 : i32
    %c0_i32_42 = arith.constant 0 : i32
    %79 = arith.cmpi eq, %arg0, %c0_i32_42 : i32
    %c7_i32_43 = arith.constant 7 : i32
    %80 = arith.subi %c7_i32_43, %c1_i32 : i32
    %81 = arith.select %79, %c1_i32, %80 : i32
    %c0_44 = arith.constant 0 : index
    %c0_45 = arith.constant 0 : index
    %82 = vector.load %arg10[%c0_44, %c0_45] : memref<8x32xf32, #tpu.memory_space<vmem>>, vector<8x32xf32>
    %c0_46 = arith.constant 0 : index
    %c0_47 = arith.constant 0 : index
    %83 = vector.load %arg11[%c0_46, %c0_47] : memref<8x32xf32, #tpu.memory_space<vmem>>, vector<8x32xf32>
    %c0_48 = arith.constant 0 : index
    %c0_49 = arith.constant 0 : index
    %84 = vector.load %arg2[%c0_48, %c0_49] : memref<8x1xi32, #tpu.memory_space<vmem>>, vector<8x1xi32>
    %85 = vector.broadcast %81 : i32 to vector<8x1xi32>
    %86 = arith.cmpi slt, %85, %84 : vector<8x1xi32>
    %87 = arith.extui %86 : vector<8x1xi1> to vector<8x1xi32>
    %88 = arith.sitofp %87 : vector<8x1xi32> to vector<8x1xf32>
    %89 = arith.index_cast %81 : i32 to index
    %c0_50 = arith.constant 0 : index
    %c0_51 = arith.constant 0 : index
    %90 = vector.load %arg9[%89, %c0_50, %c0_51] : memref<8x8x128xf32, #tpu.memory_space<vmem>>, vector<1x8x128xf32>
    %91 = vector.shape_cast %90 : vector<1x8x128xf32> to vector<8x128xf32>
    %c0_52 = arith.constant 0 : index
    %c0_53 = arith.constant 0 : index
    %c0_54 = arith.constant 0 : index
    %92 = vector.load %arg4[%c0_52, %c0_53, %c0_54] : memref<1x32x128xf32, #tpu.memory_space<vmem>>, vector<1x32x128xf32>
    %93 = vector.shape_cast %92 : vector<1x32x128xf32> to vector<32x128xf32>
    %cst_55 = arith.constant dense<0.000000e+00> : vector<8x128xf32>
    %94 = tpu.matmul %82, %93, %cst_55 {dimension_numbers = #tpu.dot_dimension_numbers<[1], [0], [0], [1], [0, 0, 1, 1], [], []>} : vector<8x32xf32>, vector<32x128xf32>, vector<8x128xf32> -> vector<8x128xf32>
    %95 = arith.addf %91, %94 : vector<8x128xf32>
    %96 = vector.extract_strided_slice %95 {offsets = [0, 0], sizes = [8, 32], strides = [1, 1]} : vector<8x128xf32> to vector<8x32xf32>
    %97 = arith.negf %96 : vector<8x32xf32>
    %98 = math.exp %97 : vector<8x32xf32>
    %cst_56 = arith.constant 1.000000e+00 : f32
    %99 = vector.broadcast %cst_56 : f32 to vector<8x32xf32>
    %100 = arith.addf %99, %98 : vector<8x32xf32>
    %101 = arith.divf %99, %100 : vector<8x32xf32>
    %102 = vector.extract_strided_slice %95 {offsets = [0, 32], sizes = [8, 32], strides = [1, 1]} : vector<8x128xf32> to vector<8x32xf32>
    %103 = arith.negf %102 : vector<8x32xf32>
    %104 = math.exp %103 : vector<8x32xf32>
    %cst_57 = arith.constant 1.000000e+00 : f32
    %105 = vector.broadcast %cst_57 : f32 to vector<8x32xf32>
    %106 = arith.addf %105, %104 : vector<8x32xf32>
    %107 = arith.divf %105, %106 : vector<8x32xf32>
    %108 = vector.extract_strided_slice %95 {offsets = [0, 64], sizes = [8, 32], strides = [1, 1]} : vector<8x128xf32> to vector<8x32xf32>
    %109 = math.tanh %108 : vector<8x32xf32>
    %110 = vector.extract_strided_slice %95 {offsets = [0, 96], sizes = [8, 32], strides = [1, 1]} : vector<8x128xf32> to vector<8x32xf32>
    %111 = arith.negf %110 : vector<8x32xf32>
    %112 = math.exp %111 : vector<8x32xf32>
    %cst_58 = arith.constant 1.000000e+00 : f32
    %113 = vector.broadcast %cst_58 : f32 to vector<8x32xf32>
    %114 = arith.addf %113, %112 : vector<8x32xf32>
    %115 = arith.divf %113, %114 : vector<8x32xf32>
    %116 = arith.mulf %107, %83 : vector<8x32xf32>
    %117 = arith.mulf %101, %109 : vector<8x32xf32>
    %118 = arith.addf %116, %117 : vector<8x32xf32>
    %119 = math.tanh %118 : vector<8x32xf32>
    %120 = arith.mulf %115, %119 : vector<8x32xf32>
    %121 = vector.broadcast %88 : vector<8x1xf32> to vector<8x32xf32>
    %122 = arith.mulf %121, %120 : vector<8x32xf32>
    %cst_59 = arith.constant 1.000000e+00 : f32
    %123 = vector.broadcast %cst_59 : f32 to vector<8x1xf32>
    %124 = arith.subf %123, %88 : vector<8x1xf32>
    %125 = vector.broadcast %124 : vector<8x1xf32> to vector<8x32xf32>
    %126 = arith.mulf %125, %82 : vector<8x32xf32>
    %127 = arith.addf %122, %126 : vector<8x32xf32>
    %128 = vector.broadcast %88 : vector<8x1xf32> to vector<8x32xf32>
    %129 = arith.mulf %128, %118 : vector<8x32xf32>
    %cst_60 = arith.constant 1.000000e+00 : f32
    %130 = vector.broadcast %cst_60 : f32 to vector<8x1xf32>
    %131 = arith.subf %130, %88 : vector<8x1xf32>
    %132 = vector.broadcast %131 : vector<8x1xf32> to vector<8x32xf32>
    %133 = arith.mulf %132, %83 : vector<8x32xf32>
    %134 = arith.addf %129, %133 : vector<8x32xf32>
    %c0_61 = arith.constant 0 : index
    %c0_62 = arith.constant 0 : index
    %135 = vector.load %arg10[%c0_61, %c0_62] : memref<8x32xf32, #tpu.memory_space<vmem>>, vector<8x32xf32>
    tpu.vector_store %arg10[%c0_61, %c0_62], %127 {strides = array<i32>} : memref<8x32xf32, #tpu.memory_space<vmem>>, vector<8x32xf32>,
    %c0_63 = arith.constant 0 : index
    %c0_64 = arith.constant 0 : index
    %136 = vector.load %arg11[%c0_63, %c0_64] : memref<8x32xf32, #tpu.memory_space<vmem>>, vector<8x32xf32>
    tpu.vector_store %arg11[%c0_63, %c0_64], %134 {strides = array<i32>} : memref<8x32xf32, #tpu.memory_space<vmem>>, vector<8x32xf32>,
    %137 = vector.broadcast %88 : vector<8x1xf32> to vector<8x32xf32>
    %138 = arith.mulf %137, %127 : vector<8x32xf32>
    %c0_65 = arith.constant 0 : index
    %139 = arith.index_cast %81 : i32 to index
    %c0_66 = arith.constant 0 : index
    %c0_67 = arith.constant 0 : index
    %140 = vector.load %arg6[%c0_65, %139, %c0_66, %c0_67] : memref<1x8x8x32xf32, #tpu.memory_space<vmem>>, vector<1x1x8x32xf32>
    %141 = vector.shape_cast %140 : vector<1x1x8x32xf32> to vector<8x32xf32>
    %142 = vector.shape_cast %138 : vector<8x32xf32> to vector<1x1x8x32xf32>
    tpu.vector_store %arg6[%c0_65, %139, %c0_66, %c0_67], %142 {strides = array<i32>} : memref<1x8x8x32xf32, #tpu.memory_space<vmem>>, vector<1x1x8x32xf32>,
    %c2_i32 = arith.constant 2 : i32
    %c0_i32_68 = arith.constant 0 : i32
    %143 = arith.cmpi eq, %arg0, %c0_i32_68 : i32
    %c7_i32_69 = arith.constant 7 : i32
    %144 = arith.subi %c7_i32_69, %c2_i32 : i32
    %145 = arith.select %143, %c2_i32, %144 : i32
    %c0_70 = arith.constant 0 : index
    %c0_71 = arith.constant 0 : index
    %146 = vector.load %arg10[%c0_70, %c0_71] : memref<8x32xf32, #tpu.memory_space<vmem>>, vector<8x32xf32>
    %c0_72 = arith.constant 0 : index
    %c0_73 = arith.constant 0 : index
    %147 = vector.load %arg11[%c0_72, %c0_73] : memref<8x32xf32, #tpu.memory_space<vmem>>, vector<8x32xf32>
    %c0_74 = arith.constant 0 : index
    %c0_75 = arith.constant 0 : index
    %148 = vector.load %arg2[%c0_74, %c0_75] : memref<8x1xi32, #tpu.memory_space<vmem>>, vector<8x1xi32>
    %149 = vector.broadcast %145 : i32 to vector<8x1xi32>
    %150 = arith.cmpi slt, %149, %148 : vector<8x1xi32>
    %151 = arith.extui %150 : vector<8x1xi1> to vector<8x1xi32>
    %152 = arith.sitofp %151 : vector<8x1xi32> to vector<8x1xf32>
    %153 = arith.index_cast %145 : i32 to index
    %c0_76 = arith.constant 0 : index
    %c0_77 = arith.constant 0 : index
    %154 = vector.load %arg9[%153, %c0_76, %c0_77] : memref<8x8x128xf32, #tpu.memory_space<vmem>>, vector<1x8x128xf32>
    %155 = vector.shape_cast %154 : vector<1x8x128xf32> to vector<8x128xf32>
    %c0_78 = arith.constant 0 : index
    %c0_79 = arith.constant 0 : index
    %c0_80 = arith.constant 0 : index
    %156 = vector.load %arg4[%c0_78, %c0_79, %c0_80] : memref<1x32x128xf32, #tpu.memory_space<vmem>>, vector<1x32x128xf32>
    %157 = vector.shape_cast %156 : vector<1x32x128xf32> to vector<32x128xf32>
    %cst_81 = arith.constant dense<0.000000e+00> : vector<8x128xf32>
    %158 = tpu.matmul %146, %157, %cst_81 {dimension_numbers = #tpu.dot_dimension_numbers<[1], [0], [0], [1], [0, 0, 1, 1], [], []>} : vector<8x32xf32>, vector<32x128xf32>, vector<8x128xf32> -> vector<8x128xf32>
    %159 = arith.addf %155, %158 : vector<8x128xf32>
    %160 = vector.extract_strided_slice %159 {offsets = [0, 0], sizes = [8, 32], strides = [1, 1]} : vector<8x128xf32> to vector<8x32xf32>
    %161 = arith.negf %160 : vector<8x32xf32>
    %162 = math.exp %161 : vector<8x32xf32>
    %cst_82 = arith.constant 1.000000e+00 : f32
    %163 = vector.broadcast %cst_82 : f32 to vector<8x32xf32>
    %164 = arith.addf %163, %162 : vector<8x32xf32>
    %165 = arith.divf %163, %164 : vector<8x32xf32>
    %166 = vector.extract_strided_slice %159 {offsets = [0, 32], sizes = [8, 32], strides = [1, 1]} : vector<8x128xf32> to vector<8x32xf32>
    %167 = arith.negf %166 : vector<8x32xf32>
    %168 = math.exp %167 : vector<8x32xf32>
    %cst_83 = arith.constant 1.000000e+00 : f32
    %169 = vector.broadcast %cst_83 : f32 to vector<8x32xf32>
    %170 = arith.addf %169, %168 : vector<8x32xf32>
    %171 = arith.divf %169, %170 : vector<8x32xf32>
    %172 = vector.extract_strided_slice %159 {offsets = [0, 64], sizes = [8, 32], strides = [1, 1]} : vector<8x128xf32> to vector<8x32xf32>
    %173 = math.tanh %172 : vector<8x32xf32>
    %174 = vector.extract_strided_slice %159 {offsets = [0, 96], sizes = [8, 32], strides = [1, 1]} : vector<8x128xf32> to vector<8x32xf32>
    %175 = arith.negf %174 : vector<8x32xf32>
    %176 = math.exp %175 : vector<8x32xf32>
    %cst_84 = arith.constant 1.000000e+00 : f32
    %177 = vector.broadcast %cst_84 : f32 to vector<8x32xf32>
    %178 = arith.addf %177, %176 : vector<8x32xf32>
    %179 = arith.divf %177, %178 : vector<8x32xf32>
    %180 = arith.mulf %171, %147 : vector<8x32xf32>
    %181 = arith.mulf %165, %173 : vector<8x32xf32>
    %182 = arith.addf %180, %181 : vector<8x32xf32>
    %183 = math.tanh %182 : vector<8x32xf32>
    %184 = arith.mulf %179, %183 : vector<8x32xf32>
    %185 = vector.broadcast %152 : vector<8x1xf32> to vector<8x32xf32>
    %186 = arith.mulf %185, %184 : vector<8x32xf32>
    %cst_85 = arith.constant 1.000000e+00 : f32
    %187 = vector.broadcast %cst_85 : f32 to vector<8x1xf32>
    %188 = arith.subf %187, %152 : vector<8x1xf32>
    %189 = vector.broadcast %188 : vector<8x1xf32> to vector<8x32xf32>
    %190 = arith.mulf %189, %146 : vector<8x32xf32>
    %191 = arith.addf %186, %190 : vector<8x32xf32>
    %192 = vector.broadcast %152 : vector<8x1xf32> to vector<8x32xf32>
    %193 = arith.mulf %192, %182 : vector<8x32xf32>
    %cst_86 = arith.constant 1.000000e+00 : f32
    %194 = vector.broadcast %cst_86 : f32 to vector<8x1xf32>
    %195 = arith.subf %194, %152 : vector<8x1xf32>
    %196 = vector.broadcast %195 : vector<8x1xf32> to vector<8x32xf32>
    %197 = arith.mulf %196, %147 : vector<8x32xf32>
    %198 = arith.addf %193, %197 : vector<8x32xf32>
    %c0_87 = arith.constant 0 : index
    %c0_88 = arith.constant 0 : index
    %199 = vector.load %arg10[%c0_87, %c0_88] : memref<8x32xf32, #tpu.memory_space<vmem>>, vector<8x32xf32>
    tpu.vector_store %arg10[%c0_87, %c0_88], %191 {strides = array<i32>} : memref<8x32xf32, #tpu.memory_space<vmem>>, vector<8x32xf32>,
    %c0_89 = arith.constant 0 : index
    %c0_90 = arith.constant 0 : index
    %200 = vector.load %arg11[%c0_89, %c0_90] : memref<8x32xf32, #tpu.memory_space<vmem>>, vector<8x32xf32>
    tpu.vector_store %arg11[%c0_89, %c0_90], %198 {strides = array<i32>} : memref<8x32xf32, #tpu.memory_space<vmem>>, vector<8x32xf32>,
    %201 = vector.broadcast %152 : vector<8x1xf32> to vector<8x32xf32>
    %202 = arith.mulf %201, %191 : vector<8x32xf32>
    %c0_91 = arith.constant 0 : index
    %203 = arith.index_cast %145 : i32 to index
    %c0_92 = arith.constant 0 : index
    %c0_93 = arith.constant 0 : index
    %204 = vector.load %arg6[%c0_91, %203, %c0_92, %c0_93] : memref<1x8x8x32xf32, #tpu.memory_space<vmem>>, vector<1x1x8x32xf32>
    %205 = vector.shape_cast %204 : vector<1x1x8x32xf32> to vector<8x32xf32>
    %206 = vector.shape_cast %202 : vector<8x32xf32> to vector<1x1x8x32xf32>
    tpu.vector_store %arg6[%c0_91, %203, %c0_92, %c0_93], %206 {strides = array<i32>} : memref<1x8x8x32xf32, #tpu.memory_space<vmem>>, vector<1x1x8x32xf32>,
    %c3_i32 = arith.constant 3 : i32
    %c0_i32_94 = arith.constant 0 : i32
    %207 = arith.cmpi eq, %arg0, %c0_i32_94 : i32
    %c7_i32_95 = arith.constant 7 : i32
    %208 = arith.subi %c7_i32_95, %c3_i32 : i32
    %209 = arith.select %207, %c3_i32, %208 : i32
    %c0_96 = arith.constant 0 : index
    %c0_97 = arith.constant 0 : index
    %210 = vector.load %arg10[%c0_96, %c0_97] : memref<8x32xf32, #tpu.memory_space<vmem>>, vector<8x32xf32>
    %c0_98 = arith.constant 0 : index
    %c0_99 = arith.constant 0 : index
    %211 = vector.load %arg11[%c0_98, %c0_99] : memref<8x32xf32, #tpu.memory_space<vmem>>, vector<8x32xf32>
    %c0_100 = arith.constant 0 : index
    %c0_101 = arith.constant 0 : index
    %212 = vector.load %arg2[%c0_100, %c0_101] : memref<8x1xi32, #tpu.memory_space<vmem>>, vector<8x1xi32>
    %213 = vector.broadcast %209 : i32 to vector<8x1xi32>
    %214 = arith.cmpi slt, %213, %212 : vector<8x1xi32>
    %215 = arith.extui %214 : vector<8x1xi1> to vector<8x1xi32>
    %216 = arith.sitofp %215 : vector<8x1xi32> to vector<8x1xf32>
    %217 = arith.index_cast %209 : i32 to index
    %c0_102 = arith.constant 0 : index
    %c0_103 = arith.constant 0 : index
    %218 = vector.load %arg9[%217, %c0_102, %c0_103] : memref<8x8x128xf32, #tpu.memory_space<vmem>>, vector<1x8x128xf32>
    %219 = vector.shape_cast %218 : vector<1x8x128xf32> to vector<8x128xf32>
    %c0_104 = arith.constant 0 : index
    %c0_105 = arith.constant 0 : index
    %c0_106 = arith.constant 0 : index
    %220 = vector.load %arg4[%c0_104, %c0_105, %c0_106] : memref<1x32x128xf32, #tpu.memory_space<vmem>>, vector<1x32x128xf32>
    %221 = vector.shape_cast %220 : vector<1x32x128xf32> to vector<32x128xf32>
    %cst_107 = arith.constant dense<0.000000e+00> : vector<8x128xf32>
    %222 = tpu.matmul %210, %221, %cst_107 {dimension_numbers = #tpu.dot_dimension_numbers<[1], [0], [0], [1], [0, 0, 1, 1], [], []>} : vector<8x32xf32>, vector<32x128xf32>, vector<8x128xf32> -> vector<8x128xf32>
    %223 = arith.addf %219, %222 : vector<8x128xf32>
    %224 = vector.extract_strided_slice %223 {offsets = [0, 0], sizes = [8, 32], strides = [1, 1]} : vector<8x128xf32> to vector<8x32xf32>
    %225 = arith.negf %224 : vector<8x32xf32>
    %226 = math.exp %225 : vector<8x32xf32>
    %cst_108 = arith.constant 1.000000e+00 : f32
    %227 = vector.broadcast %cst_108 : f32 to vector<8x32xf32>
    %228 = arith.addf %227, %226 : vector<8x32xf32>
    %229 = arith.divf %227, %228 : vector<8x32xf32>
    %230 = vector.extract_strided_slice %223 {offsets = [0, 32], sizes = [8, 32], strides = [1, 1]} : vector<8x128xf32> to vector<8x32xf32>
    %231 = arith.negf %230 : vector<8x32xf32>
    %232 = math.exp %231 : vector<8x32xf32>
    %cst_109 = arith.constant 1.000000e+00 : f32
    %233 = vector.broadcast %cst_109 : f32 to vector<8x32xf32>
    %234 = arith.addf %233, %232 : vector<8x32xf32>
    %235 = arith.divf %233, %234 : vector<8x32xf32>
    %236 = vector.extract_strided_slice %223 {offsets = [0, 64], sizes = [8, 32], strides = [1, 1]} : vector<8x128xf32> to vector<8x32xf32>
    %237 = math.tanh %236 : vector<8x32xf32>
    %238 = vector.extract_strided_slice %223 {offsets = [0, 96], sizes = [8, 32], strides = [1, 1]} : vector<8x128xf32> to vector<8x32xf32>
    %239 = arith.negf %238 : vector<8x32xf32>
    %240 = math.exp %239 : vector<8x32xf32>
    %cst_110 = arith.constant 1.000000e+00 : f32
    %241 = vector.broadcast %cst_110 : f32 to vector<8x32xf32>
    %242 = arith.addf %241, %240 : vector<8x32xf32>
    %243 = arith.divf %241, %242 : vector<8x32xf32>
    %244 = arith.mulf %235, %211 : vector<8x32xf32>
    %245 = arith.mulf %229, %237 : vector<8x32xf32>
    %246 = arith.addf %244, %245 : vector<8x32xf32>
    %247 = math.tanh %246 : vector<8x32xf32>
    %248 = arith.mulf %243, %247 : vector<8x32xf32>
    %249 = vector.broadcast %216 : vector<8x1xf32> to vector<8x32xf32>
    %250 = arith.mulf %249, %248 : vector<8x32xf32>
    %cst_111 = arith.constant 1.000000e+00 : f32
    %251 = vector.broadcast %cst_111 : f32 to vector<8x1xf32>
    %252 = arith.subf %251, %216 : vector<8x1xf32>
    %253 = vector.broadcast %252 : vector<8x1xf32> to vector<8x32xf32>
    %254 = arith.mulf %253, %210 : vector<8x32xf32>
    %255 = arith.addf %250, %254 : vector<8x32xf32>
    %256 = vector.broadcast %216 : vector<8x1xf32> to vector<8x32xf32>
    %257 = arith.mulf %256, %246 : vector<8x32xf32>
    %cst_112 = arith.constant 1.000000e+00 : f32
    %258 = vector.broadcast %cst_112 : f32 to vector<8x1xf32>
    %259 = arith.subf %258, %216 : vector<8x1xf32>
    %260 = vector.broadcast %259 : vector<8x1xf32> to vector<8x32xf32>
    %261 = arith.mulf %260, %211 : vector<8x32xf32>
    %262 = arith.addf %257, %261 : vector<8x32xf32>
    %c0_113 = arith.constant 0 : index
    %c0_114 = arith.constant 0 : index
    %263 = vector.load %arg10[%c0_113, %c0_114] : memref<8x32xf32, #tpu.memory_space<vmem>>, vector<8x32xf32>
    tpu.vector_store %arg10[%c0_113, %c0_114], %255 {strides = array<i32>} : memref<8x32xf32, #tpu.memory_space<vmem>>, vector<8x32xf32>,
    %c0_115 = arith.constant 0 : index
    %c0_116 = arith.constant 0 : index
    %264 = vector.load %arg11[%c0_115, %c0_116] : memref<8x32xf32, #tpu.memory_space<vmem>>, vector<8x32xf32>
    tpu.vector_store %arg11[%c0_115, %c0_116], %262 {strides = array<i32>} : memref<8x32xf32, #tpu.memory_space<vmem>>, vector<8x32xf32>,
    %265 = vector.broadcast %216 : vector<8x1xf32> to vector<8x32xf32>
    %266 = arith.mulf %265, %255 : vector<8x32xf32>
    %c0_117 = arith.constant 0 : index
    %267 = arith.index_cast %209 : i32 to index
    %c0_118 = arith.constant 0 : index
    %c0_119 = arith.constant 0 : index
    %268 = vector.load %arg6[%c0_117, %267, %c0_118, %c0_119] : memref<1x8x8x32xf32, #tpu.memory_space<vmem>>, vector<1x1x8x32xf32>
    %269 = vector.shape_cast %268 : vector<1x1x8x32xf32> to vector<8x32xf32>
    %270 = vector.shape_cast %266 : vector<8x32xf32> to vector<1x1x8x32xf32>
    tpu.vector_store %arg6[%c0_117, %267, %c0_118, %c0_119], %270 {strides = array<i32>} : memref<1x8x8x32xf32, #tpu.memory_space<vmem>>, vector<1x1x8x32xf32>,
    %c4_i32 = arith.constant 4 : i32
    %c0_i32_120 = arith.constant 0 : i32
    %271 = arith.cmpi eq, %arg0, %c0_i32_120 : i32
    %c7_i32_121 = arith.constant 7 : i32
    %272 = arith.subi %c7_i32_121, %c4_i32 : i32
    %273 = arith.select %271, %c4_i32, %272 : i32
    %c0_122 = arith.constant 0 : index
    %c0_123 = arith.constant 0 : index
    %274 = vector.load %arg10[%c0_122, %c0_123] : memref<8x32xf32, #tpu.memory_space<vmem>>, vector<8x32xf32>
    %c0_124 = arith.constant 0 : index
    %c0_125 = arith.constant 0 : index
    %275 = vector.load %arg11[%c0_124, %c0_125] : memref<8x32xf32, #tpu.memory_space<vmem>>, vector<8x32xf32>
    %c0_126 = arith.constant 0 : index
    %c0_127 = arith.constant 0 : index
    %276 = vector.load %arg2[%c0_126, %c0_127] : memref<8x1xi32, #tpu.memory_space<vmem>>, vector<8x1xi32>
    %277 = vector.broadcast %273 : i32 to vector<8x1xi32>
    %278 = arith.cmpi slt, %277, %276 : vector<8x1xi32>
    %279 = arith.extui %278 : vector<8x1xi1> to vector<8x1xi32>
    %280 = arith.sitofp %279 : vector<8x1xi32> to vector<8x1xf32>
    %281 = arith.index_cast %273 : i32 to index
    %c0_128 = arith.constant 0 : index
    %c0_129 = arith.constant 0 : index
    %282 = vector.load %arg9[%281, %c0_128, %c0_129] : memref<8x8x128xf32, #tpu.memory_space<vmem>>, vector<1x8x128xf32>
    %283 = vector.shape_cast %282 : vector<1x8x128xf32> to vector<8x128xf32>
    %c0_130 = arith.constant 0 : index
    %c0_131 = arith.constant 0 : index
    %c0_132 = arith.constant 0 : index
    %284 = vector.load %arg4[%c0_130, %c0_131, %c0_132] : memref<1x32x128xf32, #tpu.memory_space<vmem>>, vector<1x32x128xf32>
    %285 = vector.shape_cast %284 : vector<1x32x128xf32> to vector<32x128xf32>
    %cst_133 = arith.constant dense<0.000000e+00> : vector<8x128xf32>
    %286 = tpu.matmul %274, %285, %cst_133 {dimension_numbers = #tpu.dot_dimension_numbers<[1], [0], [0], [1], [0, 0, 1, 1], [], []>} : vector<8x32xf32>, vector<32x128xf32>, vector<8x128xf32> -> vector<8x128xf32>
    %287 = arith.addf %283, %286 : vector<8x128xf32>
    %288 = vector.extract_strided_slice %287 {offsets = [0, 0], sizes = [8, 32], strides = [1, 1]} : vector<8x128xf32> to vector<8x32xf32>
    %289 = arith.negf %288 : vector<8x32xf32>
    %290 = math.exp %289 : vector<8x32xf32>
    %cst_134 = arith.constant 1.000000e+00 : f32
    %291 = vector.broadcast %cst_134 : f32 to vector<8x32xf32>
    %292 = arith.addf %291, %290 : vector<8x32xf32>
    %293 = arith.divf %291, %292 : vector<8x32xf32>
    %294 = vector.extract_strided_slice %287 {offsets = [0, 32], sizes = [8, 32], strides = [1, 1]} : vector<8x128xf32> to vector<8x32xf32>
    %295 = arith.negf %294 : vector<8x32xf32>
    %296 = math.exp %295 : vector<8x32xf32>
    %cst_135 = arith.constant 1.000000e+00 : f32
    %297 = vector.broadcast %cst_135 : f32 to vector<8x32xf32>
    %298 = arith.addf %297, %296 : vector<8x32xf32>
    %299 = arith.divf %297, %298 : vector<8x32xf32>
    %300 = vector.extract_strided_slice %287 {offsets = [0, 64], sizes = [8, 32], strides = [1, 1]} : vector<8x128xf32> to vector<8x32xf32>
    %301 = math.tanh %300 : vector<8x32xf32>
    %302 = vector.extract_strided_slice %287 {offsets = [0, 96], sizes = [8, 32], strides = [1, 1]} : vector<8x128xf32> to vector<8x32xf32>
    %303 = arith.negf %302 : vector<8x32xf32>
    %304 = math.exp %303 : vector<8x32xf32>
    %cst_136 = arith.constant 1.000000e+00 : f32
    %305 = vector.broadcast %cst_136 : f32 to vector<8x32xf32>
    %306 = arith.addf %305, %304 : vector<8x32xf32>
    %307 = arith.divf %305, %306 : vector<8x32xf32>
    %308 = arith.mulf %299, %275 : vector<8x32xf32>
    %309 = arith.mulf %293, %301 : vector<8x32xf32>
    %310 = arith.addf %308, %309 : vector<8x32xf32>
    %311 = math.tanh %310 : vector<8x32xf32>
    %312 = arith.mulf %307, %311 : vector<8x32xf32>
    %313 = vector.broadcast %280 : vector<8x1xf32> to vector<8x32xf32>
    %314 = arith.mulf %313, %312 : vector<8x32xf32>
    %cst_137 = arith.constant 1.000000e+00 : f32
    %315 = vector.broadcast %cst_137 : f32 to vector<8x1xf32>
    %316 = arith.subf %315, %280 : vector<8x1xf32>
    %317 = vector.broadcast %316 : vector<8x1xf32> to vector<8x32xf32>
    %318 = arith.mulf %317, %274 : vector<8x32xf32>
    %319 = arith.addf %314, %318 : vector<8x32xf32>
    %320 = vector.broadcast %280 : vector<8x1xf32> to vector<8x32xf32>
    %321 = arith.mulf %320, %310 : vector<8x32xf32>
    %cst_138 = arith.constant 1.000000e+00 : f32
    %322 = vector.broadcast %cst_138 : f32 to vector<8x1xf32>
    %323 = arith.subf %322, %280 : vector<8x1xf32>
    %324 = vector.broadcast %323 : vector<8x1xf32> to vector<8x32xf32>
    %325 = arith.mulf %324, %275 : vector<8x32xf32>
    %326 = arith.addf %321, %325 : vector<8x32xf32>
    %c0_139 = arith.constant 0 : index
    %c0_140 = arith.constant 0 : index
    %327 = vector.load %arg10[%c0_139, %c0_140] : memref<8x32xf32, #tpu.memory_space<vmem>>, vector<8x32xf32>
    tpu.vector_store %arg10[%c0_139, %c0_140], %319 {strides = array<i32>} : memref<8x32xf32, #tpu.memory_space<vmem>>, vector<8x32xf32>,
    %c0_141 = arith.constant 0 : index
    %c0_142 = arith.constant 0 : index
    %328 = vector.load %arg11[%c0_141, %c0_142] : memref<8x32xf32, #tpu.memory_space<vmem>>, vector<8x32xf32>
    tpu.vector_store %arg11[%c0_141, %c0_142], %326 {strides = array<i32>} : memref<8x32xf32, #tpu.memory_space<vmem>>, vector<8x32xf32>,
    %329 = vector.broadcast %280 : vector<8x1xf32> to vector<8x32xf32>
    %330 = arith.mulf %329, %319 : vector<8x32xf32>
    %c0_143 = arith.constant 0 : index
    %331 = arith.index_cast %273 : i32 to index
    %c0_144 = arith.constant 0 : index
    %c0_145 = arith.constant 0 : index
    %332 = vector.load %arg6[%c0_143, %331, %c0_144, %c0_145] : memref<1x8x8x32xf32, #tpu.memory_space<vmem>>, vector<1x1x8x32xf32>
    %333 = vector.shape_cast %332 : vector<1x1x8x32xf32> to vector<8x32xf32>
    %334 = vector.shape_cast %330 : vector<8x32xf32> to vector<1x1x8x32xf32>
    tpu.vector_store %arg6[%c0_143, %331, %c0_144, %c0_145], %334 {strides = array<i32>} : memref<1x8x8x32xf32, #tpu.memory_space<vmem>>, vector<1x1x8x32xf32>,
    %c5_i32 = arith.constant 5 : i32
    %c0_i32_146 = arith.constant 0 : i32
    %335 = arith.cmpi eq, %arg0, %c0_i32_146 : i32
    %c7_i32_147 = arith.constant 7 : i32
    %336 = arith.subi %c7_i32_147, %c5_i32 : i32
    %337 = arith.select %335, %c5_i32, %336 : i32
    %c0_148 = arith.constant 0 : index
    %c0_149 = arith.constant 0 : index
    %338 = vector.load %arg10[%c0_148, %c0_149] : memref<8x32xf32, #tpu.memory_space<vmem>>, vector<8x32xf32>
    %c0_150 = arith.constant 0 : index
    %c0_151 = arith.constant 0 : index
    %339 = vector.load %arg11[%c0_150, %c0_151] : memref<8x32xf32, #tpu.memory_space<vmem>>, vector<8x32xf32>
    %c0_152 = arith.constant 0 : index
    %c0_153 = arith.constant 0 : index
    %340 = vector.load %arg2[%c0_152, %c0_153] : memref<8x1xi32, #tpu.memory_space<vmem>>, vector<8x1xi32>
    %341 = vector.broadcast %337 : i32 to vector<8x1xi32>
    %342 = arith.cmpi slt, %341, %340 : vector<8x1xi32>
    %343 = arith.extui %342 : vector<8x1xi1> to vector<8x1xi32>
    %344 = arith.sitofp %343 : vector<8x1xi32> to vector<8x1xf32>
    %345 = arith.index_cast %337 : i32 to index
    %c0_154 = arith.constant 0 : index
    %c0_155 = arith.constant 0 : index
    %346 = vector.load %arg9[%345, %c0_154, %c0_155] : memref<8x8x128xf32, #tpu.memory_space<vmem>>, vector<1x8x128xf32>
    %347 = vector.shape_cast %346 : vector<1x8x128xf32> to vector<8x128xf32>
    %c0_156 = arith.constant 0 : index
    %c0_157 = arith.constant 0 : index
    %c0_158 = arith.constant 0 : index
    %348 = vector.load %arg4[%c0_156, %c0_157, %c0_158] : memref<1x32x128xf32, #tpu.memory_space<vmem>>, vector<1x32x128xf32>
    %349 = vector.shape_cast %348 : vector<1x32x128xf32> to vector<32x128xf32>
    %cst_159 = arith.constant dense<0.000000e+00> : vector<8x128xf32>
    %350 = tpu.matmul %338, %349, %cst_159 {dimension_numbers = #tpu.dot_dimension_numbers<[1], [0], [0], [1], [0, 0, 1, 1], [], []>} : vector<8x32xf32>, vector<32x128xf32>, vector<8x128xf32> -> vector<8x128xf32>
    %351 = arith.addf %347, %350 : vector<8x128xf32>
    %352 = vector.extract_strided_slice %351 {offsets = [0, 0], sizes = [8, 32], strides = [1, 1]} : vector<8x128xf32> to vector<8x32xf32>
    %353 = arith.negf %352 : vector<8x32xf32>
    %354 = math.exp %353 : vector<8x32xf32>
    %cst_160 = arith.constant 1.000000e+00 : f32
    %355 = vector.broadcast %cst_160 : f32 to vector<8x32xf32>
    %356 = arith.addf %355, %354 : vector<8x32xf32>
    %357 = arith.divf %355, %356 : vector<8x32xf32>
    %358 = vector.extract_strided_slice %351 {offsets = [0, 32], sizes = [8, 32], strides = [1, 1]} : vector<8x128xf32> to vector<8x32xf32>
    %359 = arith.negf %358 : vector<8x32xf32>
    %360 = math.exp %359 : vector<8x32xf32>
    %cst_161 = arith.constant 1.000000e+00 : f32
    %361 = vector.broadcast %cst_161 : f32 to vector<8x32xf32>
    %362 = arith.addf %361, %360 : vector<8x32xf32>
    %363 = arith.divf %361, %362 : vector<8x32xf32>
    %364 = vector.extract_strided_slice %351 {offsets = [0, 64], sizes = [8, 32], strides = [1, 1]} : vector<8x128xf32> to vector<8x32xf32>
    %365 = math.tanh %364 : vector<8x32xf32>
    %366 = vector.extract_strided_slice %351 {offsets = [0, 96], sizes = [8, 32], strides = [1, 1]} : vector<8x128xf32> to vector<8x32xf32>
    %367 = arith.negf %366 : vector<8x32xf32>
    %368 = math.exp %367 : vector<8x32xf32>
    %cst_162 = arith.constant 1.000000e+00 : f32
    %369 = vector.broadcast %cst_162 : f32 to vector<8x32xf32>
    %370 = arith.addf %369, %368 : vector<8x32xf32>
    %371 = arith.divf %369, %370 : vector<8x32xf32>
    %372 = arith.mulf %363, %339 : vector<8x32xf32>
    %373 = arith.mulf %357, %365 : vector<8x32xf32>
    %374 = arith.addf %372, %373 : vector<8x32xf32>
    %375 = math.tanh %374 : vector<8x32xf32>
    %376 = arith.mulf %371, %375 : vector<8x32xf32>
    %377 = vector.broadcast %344 : vector<8x1xf32> to vector<8x32xf32>
    %378 = arith.mulf %377, %376 : vector<8x32xf32>
    %cst_163 = arith.constant 1.000000e+00 : f32
    %379 = vector.broadcast %cst_163 : f32 to vector<8x1xf32>
    %380 = arith.subf %379, %344 : vector<8x1xf32>
    %381 = vector.broadcast %380 : vector<8x1xf32> to vector<8x32xf32>
    %382 = arith.mulf %381, %338 : vector<8x32xf32>
    %383 = arith.addf %378, %382 : vector<8x32xf32>
    %384 = vector.broadcast %344 : vector<8x1xf32> to vector<8x32xf32>
    %385 = arith.mulf %384, %374 : vector<8x32xf32>
    %cst_164 = arith.constant 1.000000e+00 : f32
    %386 = vector.broadcast %cst_164 : f32 to vector<8x1xf32>
    %387 = arith.subf %386, %344 : vector<8x1xf32>
    %388 = vector.broadcast %387 : vector<8x1xf32> to vector<8x32xf32>
    %389 = arith.mulf %388, %339 : vector<8x32xf32>
    %390 = arith.addf %385, %389 : vector<8x32xf32>
    %c0_165 = arith.constant 0 : index
    %c0_166 = arith.constant 0 : index
    %391 = vector.load %arg10[%c0_165, %c0_166] : memref<8x32xf32, #tpu.memory_space<vmem>>, vector<8x32xf32>
    tpu.vector_store %arg10[%c0_165, %c0_166], %383 {strides = array<i32>} : memref<8x32xf32, #tpu.memory_space<vmem>>, vector<8x32xf32>,
    %c0_167 = arith.constant 0 : index
    %c0_168 = arith.constant 0 : index
    %392 = vector.load %arg11[%c0_167, %c0_168] : memref<8x32xf32, #tpu.memory_space<vmem>>, vector<8x32xf32>
    tpu.vector_store %arg11[%c0_167, %c0_168], %390 {strides = array<i32>} : memref<8x32xf32, #tpu.memory_space<vmem>>, vector<8x32xf32>,
    %393 = vector.broadcast %344 : vector<8x1xf32> to vector<8x32xf32>
    %394 = arith.mulf %393, %383 : vector<8x32xf32>
    %c0_169 = arith.constant 0 : index
    %395 = arith.index_cast %337 : i32 to index
    %c0_170 = arith.constant 0 : index
    %c0_171 = arith.constant 0 : index
    %396 = vector.load %arg6[%c0_169, %395, %c0_170, %c0_171] : memref<1x8x8x32xf32, #tpu.memory_space<vmem>>, vector<1x1x8x32xf32>
    %397 = vector.shape_cast %396 : vector<1x1x8x32xf32> to vector<8x32xf32>
    %398 = vector.shape_cast %394 : vector<8x32xf32> to vector<1x1x8x32xf32>
    tpu.vector_store %arg6[%c0_169, %395, %c0_170, %c0_171], %398 {strides = array<i32>} : memref<1x8x8x32xf32, #tpu.memory_space<vmem>>, vector<1x1x8x32xf32>,
    %c6_i32 = arith.constant 6 : i32
    %c0_i32_172 = arith.constant 0 : i32
    %399 = arith.cmpi eq, %arg0, %c0_i32_172 : i32
    %c7_i32_173 = arith.constant 7 : i32
    %400 = arith.subi %c7_i32_173, %c6_i32 : i32
    %401 = arith.select %399, %c6_i32, %400 : i32
    %c0_174 = arith.constant 0 : index
    %c0_175 = arith.constant 0 : index
    %402 = vector.load %arg10[%c0_174, %c0_175] : memref<8x32xf32, #tpu.memory_space<vmem>>, vector<8x32xf32>
    %c0_176 = arith.constant 0 : index
    %c0_177 = arith.constant 0 : index
    %403 = vector.load %arg11[%c0_176, %c0_177] : memref<8x32xf32, #tpu.memory_space<vmem>>, vector<8x32xf32>
    %c0_178 = arith.constant 0 : index
    %c0_179 = arith.constant 0 : index
    %404 = vector.load %arg2[%c0_178, %c0_179] : memref<8x1xi32, #tpu.memory_space<vmem>>, vector<8x1xi32>
    %405 = vector.broadcast %401 : i32 to vector<8x1xi32>
    %406 = arith.cmpi slt, %405, %404 : vector<8x1xi32>
    %407 = arith.extui %406 : vector<8x1xi1> to vector<8x1xi32>
    %408 = arith.sitofp %407 : vector<8x1xi32> to vector<8x1xf32>
    %409 = arith.index_cast %401 : i32 to index
    %c0_180 = arith.constant 0 : index
    %c0_181 = arith.constant 0 : index
    %410 = vector.load %arg9[%409, %c0_180, %c0_181] : memref<8x8x128xf32, #tpu.memory_space<vmem>>, vector<1x8x128xf32>
    %411 = vector.shape_cast %410 : vector<1x8x128xf32> to vector<8x128xf32>
    %c0_182 = arith.constant 0 : index
    %c0_183 = arith.constant 0 : index
    %c0_184 = arith.constant 0 : index
    %412 = vector.load %arg4[%c0_182, %c0_183, %c0_184] : memref<1x32x128xf32, #tpu.memory_space<vmem>>, vector<1x32x128xf32>
    %413 = vector.shape_cast %412 : vector<1x32x128xf32> to vector<32x128xf32>
    %cst_185 = arith.constant dense<0.000000e+00> : vector<8x128xf32>
    %414 = tpu.matmul %402, %413, %cst_185 {dimension_numbers = #tpu.dot_dimension_numbers<[1], [0], [0], [1], [0, 0, 1, 1], [], []>} : vector<8x32xf32>, vector<32x128xf32>, vector<8x128xf32> -> vector<8x128xf32>
    %415 = arith.addf %411, %414 : vector<8x128xf32>
    %416 = vector.extract_strided_slice %415 {offsets = [0, 0], sizes = [8, 32], strides = [1, 1]} : vector<8x128xf32> to vector<8x32xf32>
    %417 = arith.negf %416 : vector<8x32xf32>
    %418 = math.exp %417 : vector<8x32xf32>
    %cst_186 = arith.constant 1.000000e+00 : f32
    %419 = vector.broadcast %cst_186 : f32 to vector<8x32xf32>
    %420 = arith.addf %419, %418 : vector<8x32xf32>
    %421 = arith.divf %419, %420 : vector<8x32xf32>
    %422 = vector.extract_strided_slice %415 {offsets = [0, 32], sizes = [8, 32], strides = [1, 1]} : vector<8x128xf32> to vector<8x32xf32>
    %423 = arith.negf %422 : vector<8x32xf32>
    %424 = math.exp %423 : vector<8x32xf32>
    %cst_187 = arith.constant 1.000000e+00 : f32
    %425 = vector.broadcast %cst_187 : f32 to vector<8x32xf32>
    %426 = arith.addf %425, %424 : vector<8x32xf32>
    %427 = arith.divf %425, %426 : vector<8x32xf32>
    %428 = vector.extract_strided_slice %415 {offsets = [0, 64], sizes = [8, 32], strides = [1, 1]} : vector<8x128xf32> to vector<8x32xf32>
    %429 = math.tanh %428 : vector<8x32xf32>
    %430 = vector.extract_strided_slice %415 {offsets = [0, 96], sizes = [8, 32], strides = [1, 1]} : vector<8x128xf32> to vector<8x32xf32>
    %431 = arith.negf %430 : vector<8x32xf32>
    %432 = math.exp %431 : vector<8x32xf32>
    %cst_188 = arith.constant 1.000000e+00 : f32
    %433 = vector.broadcast %cst_188 : f32 to vector<8x32xf32>
    %434 = arith.addf %433, %432 : vector<8x32xf32>
    %435 = arith.divf %433, %434 : vector<8x32xf32>
    %436 = arith.mulf %427, %403 : vector<8x32xf32>
    %437 = arith.mulf %421, %429 : vector<8x32xf32>
    %438 = arith.addf %436, %437 : vector<8x32xf32>
    %439 = math.tanh %438 : vector<8x32xf32>
    %440 = arith.mulf %435, %439 : vector<8x32xf32>
    %441 = vector.broadcast %408 : vector<8x1xf32> to vector<8x32xf32>
    %442 = arith.mulf %441, %440 : vector<8x32xf32>
    %cst_189 = arith.constant 1.000000e+00 : f32
    %443 = vector.broadcast %cst_189 : f32 to vector<8x1xf32>
    %444 = arith.subf %443, %408 : vector<8x1xf32>
    %445 = vector.broadcast %444 : vector<8x1xf32> to vector<8x32xf32>
    %446 = arith.mulf %445, %402 : vector<8x32xf32>
    %447 = arith.addf %442, %446 : vector<8x32xf32>
    %448 = vector.broadcast %408 : vector<8x1xf32> to vector<8x32xf32>
    %449 = arith.mulf %448, %438 : vector<8x32xf32>
    %cst_190 = arith.constant 1.000000e+00 : f32
    %450 = vector.broadcast %cst_190 : f32 to vector<8x1xf32>
    %451 = arith.subf %450, %408 : vector<8x1xf32>
    %452 = vector.broadcast %451 : vector<8x1xf32> to vector<8x32xf32>
    %453 = arith.mulf %452, %403 : vector<8x32xf32>
    %454 = arith.addf %449, %453 : vector<8x32xf32>
    %c0_191 = arith.constant 0 : index
    %c0_192 = arith.constant 0 : index
    %455 = vector.load %arg10[%c0_191, %c0_192] : memref<8x32xf32, #tpu.memory_space<vmem>>, vector<8x32xf32>
    tpu.vector_store %arg10[%c0_191, %c0_192], %447 {strides = array<i32>} : memref<8x32xf32, #tpu.memory_space<vmem>>, vector<8x32xf32>,
    %c0_193 = arith.constant 0 : index
    %c0_194 = arith.constant 0 : index
    %456 = vector.load %arg11[%c0_193, %c0_194] : memref<8x32xf32, #tpu.memory_space<vmem>>, vector<8x32xf32>
    tpu.vector_store %arg11[%c0_193, %c0_194], %454 {strides = array<i32>} : memref<8x32xf32, #tpu.memory_space<vmem>>, vector<8x32xf32>,
    %457 = vector.broadcast %408 : vector<8x1xf32> to vector<8x32xf32>
    %458 = arith.mulf %457, %447 : vector<8x32xf32>
    %c0_195 = arith.constant 0 : index
    %459 = arith.index_cast %401 : i32 to index
    %c0_196 = arith.constant 0 : index
    %c0_197 = arith.constant 0 : index
    %460 = vector.load %arg6[%c0_195, %459, %c0_196, %c0_197] : memref<1x8x8x32xf32, #tpu.memory_space<vmem>>, vector<1x1x8x32xf32>
    %461 = vector.shape_cast %460 : vector<1x1x8x32xf32> to vector<8x32xf32>
    %462 = vector.shape_cast %458 : vector<8x32xf32> to vector<1x1x8x32xf32>
    tpu.vector_store %arg6[%c0_195, %459, %c0_196, %c0_197], %462 {strides = array<i32>} : memref<1x8x8x32xf32, #tpu.memory_space<vmem>>, vector<1x1x8x32xf32>,
    %c7_i32_198 = arith.constant 7 : i32
    %c0_i32_199 = arith.constant 0 : i32
    %463 = arith.cmpi eq, %arg0, %c0_i32_199 : i32
    %c7_i32_200 = arith.constant 7 : i32
    %464 = arith.subi %c7_i32_200, %c7_i32_198 : i32
    %465 = arith.select %463, %c7_i32_198, %464 : i32
    %c0_201 = arith.constant 0 : index
    %c0_202 = arith.constant 0 : index
    %466 = vector.load %arg10[%c0_201, %c0_202] : memref<8x32xf32, #tpu.memory_space<vmem>>, vector<8x32xf32>
    %c0_203 = arith.constant 0 : index
    %c0_204 = arith.constant 0 : index
    %467 = vector.load %arg11[%c0_203, %c0_204] : memref<8x32xf32, #tpu.memory_space<vmem>>, vector<8x32xf32>
    %c0_205 = arith.constant 0 : index
    %c0_206 = arith.constant 0 : index
    %468 = vector.load %arg2[%c0_205, %c0_206] : memref<8x1xi32, #tpu.memory_space<vmem>>, vector<8x1xi32>
    %469 = vector.broadcast %465 : i32 to vector<8x1xi32>
    %470 = arith.cmpi slt, %469, %468 : vector<8x1xi32>
    %471 = arith.extui %470 : vector<8x1xi1> to vector<8x1xi32>
    %472 = arith.sitofp %471 : vector<8x1xi32> to vector<8x1xf32>
    %473 = arith.index_cast %465 : i32 to index
    %c0_207 = arith.constant 0 : index
    %c0_208 = arith.constant 0 : index
    %474 = vector.load %arg9[%473, %c0_207, %c0_208] : memref<8x8x128xf32, #tpu.memory_space<vmem>>, vector<1x8x128xf32>
    %475 = vector.shape_cast %474 : vector<1x8x128xf32> to vector<8x128xf32>
    %c0_209 = arith.constant 0 : index
    %c0_210 = arith.constant 0 : index
    %c0_211 = arith.constant 0 : index
    %476 = vector.load %arg4[%c0_209, %c0_210, %c0_211] : memref<1x32x128xf32, #tpu.memory_space<vmem>>, vector<1x32x128xf32>
    %477 = vector.shape_cast %476 : vector<1x32x128xf32> to vector<32x128xf32>
    %cst_212 = arith.constant dense<0.000000e+00> : vector<8x128xf32>
    %478 = tpu.matmul %466, %477, %cst_212 {dimension_numbers = #tpu.dot_dimension_numbers<[1], [0], [0], [1], [0, 0, 1, 1], [], []>} : vector<8x32xf32>, vector<32x128xf32>, vector<8x128xf32> -> vector<8x128xf32>
    %479 = arith.addf %475, %478 : vector<8x128xf32>
    %480 = vector.extract_strided_slice %479 {offsets = [0, 0], sizes = [8, 32], strides = [1, 1]} : vector<8x128xf32> to vector<8x32xf32>
    %481 = arith.negf %480 : vector<8x32xf32>
    %482 = math.exp %481 : vector<8x32xf32>
    %cst_213 = arith.constant 1.000000e+00 : f32
    %483 = vector.broadcast %cst_213 : f32 to vector<8x32xf32>
    %484 = arith.addf %483, %482 : vector<8x32xf32>
    %485 = arith.divf %483, %484 : vector<8x32xf32>
    %486 = vector.extract_strided_slice %479 {offsets = [0, 32], sizes = [8, 32], strides = [1, 1]} : vector<8x128xf32> to vector<8x32xf32>
    %487 = arith.negf %486 : vector<8x32xf32>
    %488 = math.exp %487 : vector<8x32xf32>
    %cst_214 = arith.constant 1.000000e+00 : f32
    %489 = vector.broadcast %cst_214 : f32 to vector<8x32xf32>
    %490 = arith.addf %489, %488 : vector<8x32xf32>
    %491 = arith.divf %489, %490 : vector<8x32xf32>
    %492 = vector.extract_strided_slice %479 {offsets = [0, 64], sizes = [8, 32], strides = [1, 1]} : vector<8x128xf32> to vector<8x32xf32>
    %493 = math.tanh %492 : vector<8x32xf32>
    %494 = vector.extract_strided_slice %479 {offsets = [0, 96], sizes = [8, 32], strides = [1, 1]} : vector<8x128xf32> to vector<8x32xf32>
    %495 = arith.negf %494 : vector<8x32xf32>
    %496 = math.exp %495 : vector<8x32xf32>
    %cst_215 = arith.constant 1.000000e+00 : f32
    %497 = vector.broadcast %cst_215 : f32 to vector<8x32xf32>
    %498 = arith.addf %497, %496 : vector<8x32xf32>
    %499 = arith.divf %497, %498 : vector<8x32xf32>
    %500 = arith.mulf %491, %467 : vector<8x32xf32>
    %501 = arith.mulf %485, %493 : vector<8x32xf32>
    %502 = arith.addf %500, %501 : vector<8x32xf32>
    %503 = math.tanh %502 : vector<8x32xf32>
    %504 = arith.mulf %499, %503 : vector<8x32xf32>
    %505 = vector.broadcast %472 : vector<8x1xf32> to vector<8x32xf32>
    %506 = arith.mulf %505, %504 : vector<8x32xf32>
    %cst_216 = arith.constant 1.000000e+00 : f32
    %507 = vector.broadcast %cst_216 : f32 to vector<8x1xf32>
    %508 = arith.subf %507, %472 : vector<8x1xf32>
    %509 = vector.broadcast %508 : vector<8x1xf32> to vector<8x32xf32>
    %510 = arith.mulf %509, %466 : vector<8x32xf32>
    %511 = arith.addf %506, %510 : vector<8x32xf32>
    %512 = vector.broadcast %472 : vector<8x1xf32> to vector<8x32xf32>
    %513 = arith.mulf %512, %502 : vector<8x32xf32>
    %cst_217 = arith.constant 1.000000e+00 : f32
    %514 = vector.broadcast %cst_217 : f32 to vector<8x1xf32>
    %515 = arith.subf %514, %472 : vector<8x1xf32>
    %516 = vector.broadcast %515 : vector<8x1xf32> to vector<8x32xf32>
    %517 = arith.mulf %516, %467 : vector<8x32xf32>
    %518 = arith.addf %513, %517 : vector<8x32xf32>
    %c0_218 = arith.constant 0 : index
    %c0_219 = arith.constant 0 : index
    %519 = vector.load %arg10[%c0_218, %c0_219] : memref<8x32xf32, #tpu.memory_space<vmem>>, vector<8x32xf32>
    tpu.vector_store %arg10[%c0_218, %c0_219], %511 {strides = array<i32>} : memref<8x32xf32, #tpu.memory_space<vmem>>, vector<8x32xf32>,
    %c0_220 = arith.constant 0 : index
    %c0_221 = arith.constant 0 : index
    %520 = vector.load %arg11[%c0_220, %c0_221] : memref<8x32xf32, #tpu.memory_space<vmem>>, vector<8x32xf32>
    tpu.vector_store %arg11[%c0_220, %c0_221], %518 {strides = array<i32>} : memref<8x32xf32, #tpu.memory_space<vmem>>, vector<8x32xf32>,
    %521 = vector.broadcast %472 : vector<8x1xf32> to vector<8x32xf32>
    %522 = arith.mulf %521, %511 : vector<8x32xf32>
    %c0_222 = arith.constant 0 : index
    %523 = arith.index_cast %465 : i32 to index
    %c0_223 = arith.constant 0 : index
    %c0_224 = arith.constant 0 : index
    %524 = vector.load %arg6[%c0_222, %523, %c0_223, %c0_224] : memref<1x8x8x32xf32, #tpu.memory_space<vmem>>, vector<1x1x8x32xf32>
    %525 = vector.shape_cast %524 : vector<1x1x8x32xf32> to vector<8x32xf32>
    %526 = vector.shape_cast %522 : vector<8x32xf32> to vector<1x1x8x32xf32>
    tpu.vector_store %arg6[%c0_222, %523, %c0_223, %c0_224], %526 {strides = array<i32>} : memref<1x8x8x32xf32, #tpu.memory_space<vmem>>, vector<1x1x8x32xf32>,
    %c8_i32 = arith.constant 8 : i32
    %c0_225 = arith.constant 0 : index
    %c0_226 = arith.constant 0 : index
    %527 = vector.load %arg10[%c0_225, %c0_226] : memref<8x32xf32, #tpu.memory_space<vmem>>, vector<8x32xf32>
    %c0_227 = arith.constant 0 : index
    %c0_228 = arith.constant 0 : index
    %c0_229 = arith.constant 0 : index
    %528 = vector.load %arg7[%c0_227, %c0_228, %c0_229] : memref<1x8x32xf32, #tpu.memory_space<vmem>>, vector<1x8x32xf32>
    %529 = vector.shape_cast %528 : vector<1x8x32xf32> to vector<8x32xf32>
    %530 = vector.shape_cast %527 : vector<8x32xf32> to vector<1x8x32xf32>
    tpu.vector_store %arg7[%c0_227, %c0_228, %c0_229], %530 {strides = array<i32>} : memref<1x8x32xf32, #tpu.memory_space<vmem>>, vector<1x8x32xf32>,
    %c0_230 = arith.constant 0 : index
    %c0_231 = arith.constant 0 : index
    %531 = vector.load %arg11[%c0_230, %c0_231] : memref<8x32xf32, #tpu.memory_space<vmem>>, vector<8x32xf32>
    %c0_232 = arith.constant 0 : index
    %c0_233 = arith.constant 0 : index
    %c0_234 = arith.constant 0 : index
    %532 = vector.load %arg8[%c0_232, %c0_233, %c0_234] : memref<1x8x32xf32, #tpu.memory_space<vmem>>, vector<1x8x32xf32>
    %533 = vector.shape_cast %532 : vector<1x8x32xf32> to vector<8x32xf32>
    %534 = vector.shape_cast %531 : vector<8x32xf32> to vector<1x8x32xf32>
    tpu.vector_store %arg8[%c0_232, %c0_233, %c0_234], %534 {strides = array<i32>} : memref<1x8x32xf32, #tpu.memory_space<vmem>>, vector<1x8x32xf32>,
    return
  }
  func.func @transform_0(%arg0: i32) -> (i32, i32, i32) {
    %c0_i32 = arith.constant 0 : i32
    %c0_i32_0 = arith.constant 0 : i32
    %c0_i32_1 = arith.constant 0 : i32
    %c0_i32_2 = arith.constant 0 : i32
    return %c0_i32, %c0_i32_0, %c0_i32_1 : i32, i32, i32
  }
  func.func @transform_1(%arg0: i32) -> (i32, i32) {
    %c0_i32 = arith.constant 0 : i32
    %c0_i32_0 = arith.constant 0 : i32
    %c0_i32_1 = arith.constant 0 : i32
    return %c0_i32, %c0_i32_0 : i32, i32
  }
  func.func @transform_2(%arg0: i32) -> (i32, i32, i32) {
    %c0_i32 = arith.constant 0 : i32
    %c0_i32_0 = arith.constant 0 : i32
    %c0_i32_1 = arith.constant 0 : i32
    return %arg0, %c0_i32, %c0_i32_0 : i32, i32, i32
  }
  func.func @transform_3(%arg0: i32) -> (i32, i32, i32) {
    %c0_i32 = arith.constant 0 : i32
    %c0_i32_0 = arith.constant 0 : i32
    %c0_i32_1 = arith.constant 0 : i32
    return %arg0, %c0_i32, %c0_i32_0 : i32, i32, i32
  }
  func.func @transform_4(%arg0: i32) -> (i32, i32, i32) {
    %c0_i32 = arith.constant 0 : i32
    %c0_i32_0 = arith.constant 0 : i32
    %c0_i32_1 = arith.constant 0 : i32
    return %arg0, %c0_i32, %c0_i32_0 : i32, i32, i32
  }
  func.func @transform_5(%arg0: i32) -> (i32, i32, i32, i32) {
    %c0_i32 = arith.constant 0 : i32
    %c0_i32_0 = arith.constant 0 : i32
    %c0_i32_1 = arith.constant 0 : i32
    %c0_i32_2 = arith.constant 0 : i32
    return %arg0, %c0_i32, %c0_i32_0, %c0_i32_1 : i32, i32, i32, i32
  }
  func.func @transform_6(%arg0: i32) -> (i32, i32, i32) {
    %c0_i32 = arith.constant 0 : i32
    %c0_i32_0 = arith.constant 0 : i32
    %c0_i32_1 = arith.constant 0 : i32
    return %arg0, %c0_i32, %c0_i32_0 : i32, i32, i32
  }
  func.func @transform_7(%arg0: i32) -> (i32, i32, i32) {
    %c0_i32 = arith.constant 0 : i32
    %c0_i32_0 = arith.constant 0 : i32
    %c0_i32_1 = arith.constant 0 : i32
    return %arg0, %c0_i32, %c0_i32_0 : i32, i32, i32
  }
}

module attributes {stable_mosaic.version = 11 : i64} {
  func.func @dec_kernel(%arg0: i32, %arg1: memref<7x8x32xf32, #tpu.memory_space<vmem>>, %arg2: memref<8x8x64xf32, #tpu.memory_space<vmem>>, %arg3: memref<8x8x1xf32, #tpu.memory_space<vmem>>, %arg4: memref<8x64xf32, #tpu.memory_space<vmem>>, %arg5: memref<8x64xf32, #tpu.memory_space<vmem>>, %arg6: memref<32x128xf32, #tpu.memory_space<vmem>>, %arg7: memref<32x128xf32, #tpu.memory_space<vmem>>, %arg8: memref<32x128xf32, #tpu.memory_space<vmem>>, %arg9: memref<1x128xf32, #tpu.memory_space<vmem>>, %arg10: memref<64x32xf32, #tpu.memory_space<vmem>>, %arg11: memref<64x32xf32, #tpu.memory_space<vmem>>, %arg12: memref<64x32xf32, #tpu.memory_space<vmem>>, %arg13: memref<64x32xf32, #tpu.memory_space<vmem>>, %arg14: memref<32x32xf32, #tpu.memory_space<vmem>>, %arg15: memref<7x8x32xf32, #tpu.memory_space<vmem>>, %arg16: memref<7x8x128xf32, #tpu.memory_space<vmem>>, %arg17: memref<8x32xf32, #tpu.memory_space<vmem>>, %arg18: memref<8x32xf32, #tpu.memory_space<vmem>>, %arg19: memref<8x32xf32, #tpu.memory_space<vmem>>, %arg20: memref<8x8x32xf32, #tpu.memory_space<vmem>>) attributes {dimension_semantics = [#tpu.dimension_semantics<parallel>], iteration_bounds = array<i64: 1>, scalar_prefetch = 0 : i64, scratch_operands = 5 : i64, tpu.core_type = #tpu.core_type<tc>, window_params = [{transform_indices = @transform_0, window_bounds = array<i64: 7, 8, 32>}, {transform_indices = @transform_1, window_bounds = array<i64: 8, 8, 64>}, {transform_indices = @transform_2, window_bounds = array<i64: 8, 8, 1>}, {transform_indices = @transform_3, window_bounds = array<i64: 8, 64>}, {transform_indices = @transform_4, window_bounds = array<i64: 8, 64>}, {pipeline_mode = #tpu.pipeline_mode<synchronous>, transform_indices = @transform_5, window_bounds = array<i64: 32, 128>}, {pipeline_mode = #tpu.pipeline_mode<synchronous>, transform_indices = @transform_6, window_bounds = array<i64: 32, 128>}, {pipeline_mode = #tpu.pipeline_mode<synchronous>, transform_indices = @transform_7, window_bounds = array<i64: 32, 128>}, {pipeline_mode = #tpu.pipeline_mode<synchronous>, transform_indices = @transform_8, window_bounds = array<i64: 1, 128>}, {pipeline_mode = #tpu.pipeline_mode<synchronous>, transform_indices = @transform_9, window_bounds = array<i64: 64, 32>}, {pipeline_mode = #tpu.pipeline_mode<synchronous>, transform_indices = @transform_10, window_bounds = array<i64: 64, 32>}, {pipeline_mode = #tpu.pipeline_mode<synchronous>, transform_indices = @transform_11, window_bounds = array<i64: 64, 32>}, {pipeline_mode = #tpu.pipeline_mode<synchronous>, transform_indices = @transform_12, window_bounds = array<i64: 64, 32>}, {pipeline_mode = #tpu.pipeline_mode<synchronous>, transform_indices = @transform_13, window_bounds = array<i64: 32, 32>}, {transform_indices = @transform_14, window_bounds = array<i64: 7, 8, 32>}]} {
    %c0 = arith.constant 0 : index
    %c0_0 = arith.constant 0 : index
    %0 = vector.load %arg4[%c0, %c0_0] : memref<8x64xf32, #tpu.memory_space<vmem>>, vector<8x64xf32>
    %c0_1 = arith.constant 0 : index
    %c0_2 = arith.constant 0 : index
    %1 = vector.load %arg10[%c0_1, %c0_2] : memref<64x32xf32, #tpu.memory_space<vmem>>, vector<64x32xf32>
    %cst = arith.constant dense<0.000000e+00> : vector<8x32xf32>
    %2 = tpu.matmul %0, %1, %cst {dimension_numbers = #tpu.dot_dimension_numbers<[1], [0], [0], [1], [0, 0, 1, 1], [], []>} : vector<8x64xf32>, vector<64x32xf32>, vector<8x32xf32> -> vector<8x32xf32>
    %c0_3 = arith.constant 0 : index
    %c0_4 = arith.constant 0 : index
    %3 = vector.load %arg17[%c0_3, %c0_4] : memref<8x32xf32, #tpu.memory_space<vmem>>, vector<8x32xf32>
    tpu.vector_store %arg17[%c0_3, %c0_4], %2 {strides = array<i32>} : memref<8x32xf32, #tpu.memory_space<vmem>>, vector<8x32xf32>,
    %c0_5 = arith.constant 0 : index
    %c0_6 = arith.constant 0 : index
    %4 = vector.load %arg5[%c0_5, %c0_6] : memref<8x64xf32, #tpu.memory_space<vmem>>, vector<8x64xf32>
    %c0_7 = arith.constant 0 : index
    %c0_8 = arith.constant 0 : index
    %5 = vector.load %arg11[%c0_7, %c0_8] : memref<64x32xf32, #tpu.memory_space<vmem>>, vector<64x32xf32>
    %cst_9 = arith.constant dense<0.000000e+00> : vector<8x32xf32>
    %6 = tpu.matmul %4, %5, %cst_9 {dimension_numbers = #tpu.dot_dimension_numbers<[1], [0], [0], [1], [0, 0, 1, 1], [], []>} : vector<8x64xf32>, vector<64x32xf32>, vector<8x32xf32> -> vector<8x32xf32>
    %c0_10 = arith.constant 0 : index
    %c0_11 = arith.constant 0 : index
    %7 = vector.load %arg18[%c0_10, %c0_11] : memref<8x32xf32, #tpu.memory_space<vmem>>, vector<8x32xf32>
    tpu.vector_store %arg18[%c0_10, %c0_11], %6 {strides = array<i32>} : memref<8x32xf32, #tpu.memory_space<vmem>>, vector<8x32xf32>,
    %cst_12 = arith.constant 0.000000e+00 : f32
    %8 = vector.broadcast %cst_12 : f32 to vector<8x32xf32>
    %c0_13 = arith.constant 0 : index
    %c0_14 = arith.constant 0 : index
    %9 = vector.load %arg19[%c0_13, %c0_14] : memref<8x32xf32, #tpu.memory_space<vmem>>, vector<8x32xf32>
    tpu.vector_store %arg19[%c0_13, %c0_14], %8 {strides = array<i32>} : memref<8x32xf32, #tpu.memory_space<vmem>>, vector<8x32xf32>,
    %c0_15 = arith.constant 0 : index
    %c0_16 = arith.constant 0 : index
    %c0_17 = arith.constant 0 : index
    %10 = vector.load %arg2[%c0_15, %c0_16, %c0_17] : memref<8x8x64xf32, #tpu.memory_space<vmem>>, vector<8x8x64xf32>
    %11 = vector.shape_cast %10 : vector<8x8x64xf32> to vector<64x64xf32>
    %c0_18 = arith.constant 0 : index
    %c0_19 = arith.constant 0 : index
    %12 = vector.load %arg12[%c0_18, %c0_19] : memref<64x32xf32, #tpu.memory_space<vmem>>, vector<64x32xf32>
    %cst_20 = arith.constant dense<0.000000e+00> : vector<64x32xf32>
    %13 = tpu.matmul %11, %12, %cst_20 {dimension_numbers = #tpu.dot_dimension_numbers<[1], [0], [0], [1], [0, 0, 1, 1], [], []>} : vector<64x64xf32>, vector<64x32xf32>, vector<64x32xf32> -> vector<64x32xf32>
    %14 = vector.shape_cast %13 : vector<64x32xf32> to vector<8x8x32xf32>
    %c0_21 = arith.constant 0 : index
    %c0_22 = arith.constant 0 : index
    %c0_23 = arith.constant 0 : index
    %15 = vector.load %arg20[%c0_21, %c0_22, %c0_23] : memref<8x8x32xf32, #tpu.memory_space<vmem>>, vector<8x8x32xf32>
    tpu.vector_store %arg20[%c0_21, %c0_22, %c0_23], %14 {strides = array<i32>} : memref<8x8x32xf32, #tpu.memory_space<vmem>>, vector<8x8x32xf32>,
    %c0_24 = arith.constant 0 : index
    %c0_25 = arith.constant 0 : index
    %c0_26 = arith.constant 0 : index
    %16 = vector.load %arg1[%c0_24, %c0_25, %c0_26] : memref<7x8x32xf32, #tpu.memory_space<vmem>>, vector<7x8x32xf32>
    %17 = vector.shape_cast %16 : vector<7x8x32xf32> to vector<56x32xf32>
    %c0_27 = arith.constant 0 : index
    %c0_28 = arith.constant 0 : index
    %18 = vector.load %arg6[%c0_27, %c0_28] : memref<32x128xf32, #tpu.memory_space<vmem>>, vector<32x128xf32>
    %cst_29 = arith.constant dense<0.000000e+00> : vector<56x128xf32>
    %19 = tpu.matmul %17, %18, %cst_29 {dimension_numbers = #tpu.dot_dimension_numbers<[1], [0], [0], [1], [0, 0, 1, 1], [], []>} : vector<56x32xf32>, vector<32x128xf32>, vector<56x128xf32> -> vector<56x128xf32>
    %c0_30 = arith.constant 0 : index
    %c0_31 = arith.constant 0 : index
    %20 = vector.load %arg9[%c0_30, %c0_31] : memref<1x128xf32, #tpu.memory_space<vmem>>, vector<1x128xf32>
    %21 = vector.broadcast %20 : vector<1x128xf32> to vector<56x128xf32>
    %22 = arith.addf %19, %21 : vector<56x128xf32>
    %23 = vector.shape_cast %22 : vector<56x128xf32> to vector<7x8x128xf32>
    %c0_32 = arith.constant 0 : index
    %c0_33 = arith.constant 0 : index
    %c0_34 = arith.constant 0 : index
    %24 = vector.load %arg16[%c0_32, %c0_33, %c0_34] : memref<7x8x128xf32, #tpu.memory_space<vmem>>, vector<7x8x128xf32>
    tpu.vector_store %arg16[%c0_32, %c0_33, %c0_34], %23 {strides = array<i32>} : memref<7x8x128xf32, #tpu.memory_space<vmem>>, vector<7x8x128xf32>,
    %c0_i32 = arith.constant 0 : i32
    %c7_i32 = arith.constant 7 : i32
    %25 = arith.addi %c0_i32, %c7_i32 : i32
    %c1_i32 = arith.constant 1 : i32
    scf.for %arg21 = %c0_i32 to %25 step %c1_i32  : i32 {
      %c0_36 = arith.constant 0 : index
      %c0_37 = arith.constant 0 : index
      %26 = vector.load %arg17[%c0_36, %c0_37] : memref<8x32xf32, #tpu.memory_space<vmem>>, vector<8x32xf32>
      %c0_38 = arith.constant 0 : index
      %c0_39 = arith.constant 0 : index
      %27 = vector.load %arg18[%c0_38, %c0_39] : memref<8x32xf32, #tpu.memory_space<vmem>>, vector<8x32xf32>
      %c0_40 = arith.constant 0 : index
      %c0_41 = arith.constant 0 : index
      %28 = vector.load %arg19[%c0_40, %c0_41] : memref<8x32xf32, #tpu.memory_space<vmem>>, vector<8x32xf32>
      %29 = arith.index_cast %arg21 : i32 to index
      %c0_42 = arith.constant 0 : index
      %c0_43 = arith.constant 0 : index
      %30 = vector.load %arg16[%29, %c0_42, %c0_43] : memref<7x8x128xf32, #tpu.memory_space<vmem>>, vector<1x8x128xf32>
      %31 = vector.shape_cast %30 : vector<1x8x128xf32> to vector<8x128xf32>
      %c0_44 = arith.constant 0 : index
      %c0_45 = arith.constant 0 : index
      %32 = vector.load %arg7[%c0_44, %c0_45] : memref<32x128xf32, #tpu.memory_space<vmem>>, vector<32x128xf32>
      %cst_46 = arith.constant dense<0.000000e+00> : vector<8x128xf32>
      %33 = tpu.matmul %28, %32, %cst_46 {dimension_numbers = #tpu.dot_dimension_numbers<[1], [0], [0], [1], [0, 0, 1, 1], [], []>} : vector<8x32xf32>, vector<32x128xf32>, vector<8x128xf32> -> vector<8x128xf32>
      %34 = arith.addf %31, %33 : vector<8x128xf32>
      %c0_47 = arith.constant 0 : index
      %c0_48 = arith.constant 0 : index
      %35 = vector.load %arg8[%c0_47, %c0_48] : memref<32x128xf32, #tpu.memory_space<vmem>>, vector<32x128xf32>
      %cst_49 = arith.constant dense<0.000000e+00> : vector<8x128xf32>
      %36 = tpu.matmul %26, %35, %cst_49 {dimension_numbers = #tpu.dot_dimension_numbers<[1], [0], [0], [1], [0, 0, 1, 1], [], []>} : vector<8x32xf32>, vector<32x128xf32>, vector<8x128xf32> -> vector<8x128xf32>
      %37 = arith.addf %34, %36 : vector<8x128xf32>
      %38 = vector.extract_strided_slice %37 {offsets = [0, 0], sizes = [8, 32], strides = [1, 1]} : vector<8x128xf32> to vector<8x32xf32>
      %39 = arith.negf %38 : vector<8x32xf32>
      %40 = math.exp %39 : vector<8x32xf32>
      %cst_50 = arith.constant 1.000000e+00 : f32
      %41 = vector.broadcast %cst_50 : f32 to vector<8x32xf32>
      %42 = arith.addf %41, %40 : vector<8x32xf32>
      %43 = arith.divf %41, %42 : vector<8x32xf32>
      %44 = vector.extract_strided_slice %37 {offsets = [0, 32], sizes = [8, 32], strides = [1, 1]} : vector<8x128xf32> to vector<8x32xf32>
      %45 = arith.negf %44 : vector<8x32xf32>
      %46 = math.exp %45 : vector<8x32xf32>
      %cst_51 = arith.constant 1.000000e+00 : f32
      %47 = vector.broadcast %cst_51 : f32 to vector<8x32xf32>
      %48 = arith.addf %47, %46 : vector<8x32xf32>
      %49 = arith.divf %47, %48 : vector<8x32xf32>
      %50 = vector.extract_strided_slice %37 {offsets = [0, 64], sizes = [8, 32], strides = [1, 1]} : vector<8x128xf32> to vector<8x32xf32>
      %51 = math.tanh %50 : vector<8x32xf32>
      %52 = vector.extract_strided_slice %37 {offsets = [0, 96], sizes = [8, 32], strides = [1, 1]} : vector<8x128xf32> to vector<8x32xf32>
      %53 = arith.negf %52 : vector<8x32xf32>
      %54 = math.exp %53 : vector<8x32xf32>
      %cst_52 = arith.constant 1.000000e+00 : f32
      %55 = vector.broadcast %cst_52 : f32 to vector<8x32xf32>
      %56 = arith.addf %55, %54 : vector<8x32xf32>
      %57 = arith.divf %55, %56 : vector<8x32xf32>
      %58 = arith.mulf %49, %27 : vector<8x32xf32>
      %59 = arith.mulf %43, %51 : vector<8x32xf32>
      %60 = arith.addf %58, %59 : vector<8x32xf32>
      %61 = math.tanh %60 : vector<8x32xf32>
      %62 = arith.mulf %57, %61 : vector<8x32xf32>
      %c0_53 = arith.constant 0 : index
      %c0_54 = arith.constant 0 : index
      %c0_55 = arith.constant 0 : index
      %63 = vector.load %arg20[%c0_53, %c0_54, %c0_55] : memref<8x8x32xf32, #tpu.memory_space<vmem>>, vector<8x8x32xf32>
      %64 = vector.shape_cast %62 : vector<8x32xf32> to vector<8x1x32xf32>
      %65 = vector.broadcast %64 : vector<8x1x32xf32> to vector<8x8x32xf32>
      %66 = arith.mulf %63, %65 : vector<8x8x32xf32>
      %cst_56 = arith.constant dense<0.000000e+00> : vector<8x8xf32>
      %67 = vector.multi_reduction <add>, %66, %cst_56 [2] : vector<8x8x32xf32> to vector<8x8xf32>
      %68 = vector.shape_cast %67 : vector<8x8xf32> to vector<8x8x1xf32>
      %c0_57 = arith.constant 0 : index
      %c0_58 = arith.constant 0 : index
      %c0_59 = arith.constant 0 : index
      %69 = vector.load %arg3[%c0_57, %c0_58, %c0_59] : memref<8x8x1xf32, #tpu.memory_space<vmem>>, vector<8x8x1xf32>
      %cst_60 = arith.constant 0.000000e+00 : f32
      %70 = vector.broadcast %cst_60 : f32 to vector<8x8x1xf32>
      %71 = arith.cmpf ogt, %69, %70 : vector<8x8x1xf32>
      %cst_61 = arith.constant -1.000000e+09 : f32
      %72 = vector.broadcast %cst_61 : f32 to vector<8x8x1xf32>
      %73 = arith.select %71, %72, %68 : vector<8x8x1xi1>, vector<8x8x1xf32>
      %cst_62 = arith.constant dense<0xFF800000> : vector<8x1xf32>
      %74 = vector.multi_reduction <maximumf>, %73, %cst_62 [1] : vector<8x8x1xf32> to vector<8x1xf32>
      %75 = vector.shape_cast %74 : vector<8x1xf32> to vector<8x1x1xf32>
      %76 = vector.broadcast %75 : vector<8x1x1xf32> to vector<8x8x1xf32>
      %77 = arith.subf %73, %76 : vector<8x8x1xf32>
      %78 = math.exp %77 : vector<8x8x1xf32>
      %cst_63 = arith.constant dense<0.000000e+00> : vector<8x1xf32>
      %79 = vector.multi_reduction <add>, %78, %cst_63 [1] : vector<8x8x1xf32> to vector<8x1xf32>
      %80 = vector.shape_cast %79 : vector<8x1xf32> to vector<8x1x1xf32>
      %81 = tpu.reciprocal %80 {approx = true} : vector<8x1x1xf32> -> vector<8x1x1xf32>
      %82 = vector.broadcast %81 : vector<8x1x1xf32> to vector<8x8x1xf32>
      %83 = arith.mulf %78, %82 : vector<8x8x1xf32>
      %c0_64 = arith.constant 0 : index
      %c0_65 = arith.constant 0 : index
      %c0_66 = arith.constant 0 : index
      %84 = vector.load %arg2[%c0_64, %c0_65, %c0_66] : memref<8x8x64xf32, #tpu.memory_space<vmem>>, vector<8x8x64xf32>
      %85 = vector.broadcast %83 : vector<8x8x1xf32> to vector<8x8x64xf32>
      %86 = arith.mulf %85, %84 : vector<8x8x64xf32>
      %cst_67 = arith.constant dense<0.000000e+00> : vector<8x64xf32>
      %87 = vector.multi_reduction <add>, %86, %cst_67 [1] : vector<8x8x64xf32> to vector<8x64xf32>
      %c0_68 = arith.constant 0 : index
      %c0_69 = arith.constant 0 : index
      %88 = vector.load %arg13[%c0_68, %c0_69] : memref<64x32xf32, #tpu.memory_space<vmem>>, vector<64x32xf32>
      %cst_70 = arith.constant dense<0.000000e+00> : vector<8x32xf32>
      %89 = tpu.matmul %87, %88, %cst_70 {dimension_numbers = #tpu.dot_dimension_numbers<[1], [0], [0], [1], [0, 0, 1, 1], [], []>} : vector<8x64xf32>, vector<64x32xf32>, vector<8x32xf32> -> vector<8x32xf32>
      %c0_71 = arith.constant 0 : index
      %c0_72 = arith.constant 0 : index
      %90 = vector.load %arg14[%c0_71, %c0_72] : memref<32x32xf32, #tpu.memory_space<vmem>>, vector<32x32xf32>
      %cst_73 = arith.constant dense<0.000000e+00> : vector<8x32xf32>
      %91 = tpu.matmul %62, %90, %cst_73 {dimension_numbers = #tpu.dot_dimension_numbers<[1], [0], [0], [1], [0, 0, 1, 1], [], []>} : vector<8x32xf32>, vector<32x32xf32>, vector<8x32xf32> -> vector<8x32xf32>
      %92 = arith.addf %89, %91 : vector<8x32xf32>
      %93 = math.tanh %92 : vector<8x32xf32>
      %94 = arith.index_cast %arg21 : i32 to index
      %c0_74 = arith.constant 0 : index
      %c0_75 = arith.constant 0 : index
      %95 = vector.load %arg15[%94, %c0_74, %c0_75] : memref<7x8x32xf32, #tpu.memory_space<vmem>>, vector<1x8x32xf32>
      %96 = vector.shape_cast %95 : vector<1x8x32xf32> to vector<8x32xf32>
      %97 = vector.shape_cast %93 : vector<8x32xf32> to vector<1x8x32xf32>
      tpu.vector_store %arg15[%94, %c0_74, %c0_75], %97 {strides = array<i32>} : memref<7x8x32xf32, #tpu.memory_space<vmem>>, vector<1x8x32xf32>,
      %c0_76 = arith.constant 0 : index
      %c0_77 = arith.constant 0 : index
      %98 = vector.load %arg17[%c0_76, %c0_77] : memref<8x32xf32, #tpu.memory_space<vmem>>, vector<8x32xf32>
      tpu.vector_store %arg17[%c0_76, %c0_77], %62 {strides = array<i32>} : memref<8x32xf32, #tpu.memory_space<vmem>>, vector<8x32xf32>,
      %c0_78 = arith.constant 0 : index
      %c0_79 = arith.constant 0 : index
      %99 = vector.load %arg18[%c0_78, %c0_79] : memref<8x32xf32, #tpu.memory_space<vmem>>, vector<8x32xf32>
      tpu.vector_store %arg18[%c0_78, %c0_79], %60 {strides = array<i32>} : memref<8x32xf32, #tpu.memory_space<vmem>>, vector<8x32xf32>,
      %c0_80 = arith.constant 0 : index
      %c0_81 = arith.constant 0 : index
      %100 = vector.load %arg19[%c0_80, %c0_81] : memref<8x32xf32, #tpu.memory_space<vmem>>, vector<8x32xf32>
      tpu.vector_store %arg19[%c0_80, %c0_81], %93 {strides = array<i32>} : memref<8x32xf32, #tpu.memory_space<vmem>>, vector<8x32xf32>,
    }
    %c7_i32_35 = arith.constant 7 : i32
    return
  }
  func.func @transform_0(%arg0: i32) -> (i32, i32, i32) {
    %c0_i32 = arith.constant 0 : i32
    %c0_i32_0 = arith.constant 0 : i32
    %c0_i32_1 = arith.constant 0 : i32
    return %c0_i32, %arg0, %c0_i32_0 : i32, i32, i32
  }
  func.func @transform_1(%arg0: i32) -> (i32, i32, i32) {
    %c0_i32 = arith.constant 0 : i32
    %c0_i32_0 = arith.constant 0 : i32
    %c0_i32_1 = arith.constant 0 : i32
    return %arg0, %c0_i32, %c0_i32_0 : i32, i32, i32
  }
  func.func @transform_2(%arg0: i32) -> (i32, i32, i32) {
    %c0_i32 = arith.constant 0 : i32
    %c0_i32_0 = arith.constant 0 : i32
    %c0_i32_1 = arith.constant 0 : i32
    return %arg0, %c0_i32, %c0_i32_0 : i32, i32, i32
  }
  func.func @transform_3(%arg0: i32) -> (i32, i32) {
    %c0_i32 = arith.constant 0 : i32
    %c0_i32_0 = arith.constant 0 : i32
    return %arg0, %c0_i32 : i32, i32
  }
  func.func @transform_4(%arg0: i32) -> (i32, i32) {
    %c0_i32 = arith.constant 0 : i32
    %c0_i32_0 = arith.constant 0 : i32
    return %arg0, %c0_i32 : i32, i32
  }
  func.func @transform_5(%arg0: i32) -> (i32, i32) {
    %c0_i32 = arith.constant 0 : i32
    %c0_i32_0 = arith.constant 0 : i32
    %c0_i32_1 = arith.constant 0 : i32
    return %c0_i32, %c0_i32_0 : i32, i32
  }
  func.func @transform_6(%arg0: i32) -> (i32, i32) {
    %c0_i32 = arith.constant 0 : i32
    %c0_i32_0 = arith.constant 0 : i32
    %c0_i32_1 = arith.constant 0 : i32
    return %c0_i32, %c0_i32_0 : i32, i32
  }
  func.func @transform_7(%arg0: i32) -> (i32, i32) {
    %c0_i32 = arith.constant 0 : i32
    %c0_i32_0 = arith.constant 0 : i32
    %c0_i32_1 = arith.constant 0 : i32
    return %c0_i32, %c0_i32_0 : i32, i32
  }
  func.func @transform_8(%arg0: i32) -> (i32, i32) {
    %c0_i32 = arith.constant 0 : i32
    %c0_i32_0 = arith.constant 0 : i32
    %c0_i32_1 = arith.constant 0 : i32
    return %c0_i32, %c0_i32_0 : i32, i32
  }
  func.func @transform_9(%arg0: i32) -> (i32, i32) {
    %c0_i32 = arith.constant 0 : i32
    %c0_i32_0 = arith.constant 0 : i32
    %c0_i32_1 = arith.constant 0 : i32
    return %c0_i32, %c0_i32_0 : i32, i32
  }
  func.func @transform_10(%arg0: i32) -> (i32, i32) {
    %c0_i32 = arith.constant 0 : i32
    %c0_i32_0 = arith.constant 0 : i32
    %c0_i32_1 = arith.constant 0 : i32
    return %c0_i32, %c0_i32_0 : i32, i32
  }
  func.func @transform_11(%arg0: i32) -> (i32, i32) {
    %c0_i32 = arith.constant 0 : i32
    %c0_i32_0 = arith.constant 0 : i32
    %c0_i32_1 = arith.constant 0 : i32
    return %c0_i32, %c0_i32_0 : i32, i32
  }
  func.func @transform_12(%arg0: i32) -> (i32, i32) {
    %c0_i32 = arith.constant 0 : i32
    %c0_i32_0 = arith.constant 0 : i32
    %c0_i32_1 = arith.constant 0 : i32
    return %c0_i32, %c0_i32_0 : i32, i32
  }
  func.func @transform_13(%arg0: i32) -> (i32, i32) {
    %c0_i32 = arith.constant 0 : i32
    %c0_i32_0 = arith.constant 0 : i32
    %c0_i32_1 = arith.constant 0 : i32
    return %c0_i32, %c0_i32_0 : i32, i32
  }
  func.func @transform_14(%arg0: i32) -> (i32, i32, i32) {
    %c0_i32 = arith.constant 0 : i32
    %c0_i32_0 = arith.constant 0 : i32
    %c0_i32_1 = arith.constant 0 : i32
    return %c0_i32, %arg0, %c0_i32_0 : i32, i32, i32
  }
}

module attributes {stable_mosaic.version = 11 : i64} {
  func.func @score_kernel(%arg0: i32, %arg1: i32, %arg2: memref<128x32xf32, #tpu.memory_space<vmem>>, %arg3: memref<32x256xf32, #tpu.memory_space<vmem>>, %arg4: memref<1x256xi32, #tpu.memory_space<vmem>>, %arg5: memref<1x256xf32, #tpu.memory_space<vmem>>, %arg6: memref<1x256xf32, #tpu.memory_space<vmem>>, %arg7: memref<1x256xf32, #tpu.memory_space<vmem>>, %arg8: memref<1x256xf32, #tpu.memory_space<vmem>>) attributes {dimension_semantics = [#tpu.dimension_semantics<parallel>, #tpu.dimension_semantics<arbitrary>], iteration_bounds = array<i64: 1, 1>, scalar_prefetch = 0 : i64, scratch_operands = 3 : i64, tpu.core_type = #tpu.core_type<tc>, window_params = [{transform_indices = @transform_0, window_bounds = array<i64: 128, 32>}, {transform_indices = @transform_1, window_bounds = array<i64: 32, 256>}, {transform_indices = @transform_2, window_bounds = array<i64: 1, 256>}, {transform_indices = @transform_3, window_bounds = array<i64: 1, 256>}]} {
    %c0_i32 = arith.constant 0 : i32
    %0 = arith.cmpi eq, %arg1, %c0_i32 : i32
    %1 = arith.extui %0 : i1 to i32
    %c0_i32_0 = arith.constant 0 : i32
    %2 = arith.cmpi ne, %1, %c0_i32_0 : i32
    scf.if %2 {
      %cst_25 = arith.constant 0xFF800000 : f32
      %43 = vector.broadcast %cst_25 : f32 to vector<1x256xf32>
      %c0_26 = arith.constant 0 : index
      %c0_27 = arith.constant 0 : index
      %44 = vector.load %arg6[%c0_26, %c0_27] : memref<1x256xf32, #tpu.memory_space<vmem>>, vector<1x256xf32>
      tpu.vector_store %arg6[%c0_26, %c0_27], %43 {strides = array<i32>} : memref<1x256xf32, #tpu.memory_space<vmem>>, vector<1x256xf32>,
      %cst_28 = arith.constant 0.000000e+00 : f32
      %45 = vector.broadcast %cst_28 : f32 to vector<1x256xf32>
      %c0_29 = arith.constant 0 : index
      %c0_30 = arith.constant 0 : index
      %46 = vector.load %arg7[%c0_29, %c0_30] : memref<1x256xf32, #tpu.memory_space<vmem>>, vector<1x256xf32>
      tpu.vector_store %arg7[%c0_29, %c0_30], %45 {strides = array<i32>} : memref<1x256xf32, #tpu.memory_space<vmem>>, vector<1x256xf32>,
      %cst_31 = arith.constant 0.000000e+00 : f32
      %47 = vector.broadcast %cst_31 : f32 to vector<1x256xf32>
      %c0_32 = arith.constant 0 : index
      %c0_33 = arith.constant 0 : index
      %48 = vector.load %arg8[%c0_32, %c0_33] : memref<1x256xf32, #tpu.memory_space<vmem>>, vector<1x256xf32>
      tpu.vector_store %arg8[%c0_32, %c0_33], %47 {strides = array<i32>} : memref<1x256xf32, #tpu.memory_space<vmem>>, vector<1x256xf32>,
    } else {
    }
    %c0 = arith.constant 0 : index
    %c0_1 = arith.constant 0 : index
    %3 = vector.load %arg2[%c0, %c0_1] : memref<128x32xf32, #tpu.memory_space<vmem>>, vector<128x32xf32>
    %c0_2 = arith.constant 0 : index
    %c0_3 = arith.constant 0 : index
    %4 = vector.load %arg3[%c0_2, %c0_3] : memref<32x256xf32, #tpu.memory_space<vmem>>, vector<32x256xf32>
    %cst = arith.constant dense<0.000000e+00> : vector<128x256xf32>
    %5 = tpu.matmul %3, %4, %cst {dimension_numbers = #tpu.dot_dimension_numbers<[1], [0], [0], [1], [0, 0, 1, 1], [], []>} : vector<128x32xf32>, vector<32x256xf32>, vector<128x256xf32> -> vector<128x256xf32>
    %6 = tpu.iota {dimensions = array<i32: 0>} : vector<128x256xi32>
    %c128_i32 = arith.constant 128 : i32
    %7 = arith.muli %arg1, %c128_i32 : i32
    %8 = vector.broadcast %7 : i32 to vector<128x256xi32>
    %9 = arith.addi %6, %8 : vector<128x256xi32>
    %c64_i32 = arith.constant 64 : i32
    %10 = vector.broadcast %c64_i32 : i32 to vector<128x256xi32>
    %11 = arith.cmpi slt, %9, %10 : vector<128x256xi32>
    %cst_4 = arith.constant 0xFF800000 : f32
    %12 = vector.broadcast %cst_4 : f32 to vector<128x256xf32>
    %13 = arith.select %11, %5, %12 : vector<128x256xi1>, vector<128x256xf32>
    %c0_5 = arith.constant 0 : index
    %c0_6 = arith.constant 0 : index
    %14 = vector.load %arg6[%c0_5, %c0_6] : memref<1x256xf32, #tpu.memory_space<vmem>>, vector<1x256xf32>
    %cst_7 = arith.constant dense<0xFF800000> : vector<256xf32>
    %15 = vector.multi_reduction <maximumf>, %13, %cst_7 [0] : vector<128x256xf32> to vector<256xf32>
    %16 = vector.shape_cast %15 : vector<256xf32> to vector<1x256xf32>
    %17 = arith.maximumf %14, %16 : vector<1x256xf32>
    %c0_8 = arith.constant 0 : index
    %c0_9 = arith.constant 0 : index
    %18 = vector.load %arg7[%c0_8, %c0_9] : memref<1x256xf32, #tpu.memory_space<vmem>>, vector<1x256xf32>
    %19 = arith.subf %14, %17 : vector<1x256xf32>
    %20 = math.exp %19 : vector<1x256xf32>
    %21 = arith.mulf %18, %20 : vector<1x256xf32>
    %22 = vector.broadcast %17 : vector<1x256xf32> to vector<128x256xf32>
    %23 = arith.subf %13, %22 : vector<128x256xf32>
    %24 = math.exp %23 : vector<128x256xf32>
    %cst_10 = arith.constant dense<0.000000e+00> : vector<256xf32>
    %25 = vector.multi_reduction <add>, %24, %cst_10 [0] : vector<128x256xf32> to vector<256xf32>
    %26 = vector.shape_cast %25 : vector<256xf32> to vector<1x256xf32>
    %27 = arith.addf %21, %26 : vector<1x256xf32>
    %c0_11 = arith.constant 0 : index
    %c0_12 = arith.constant 0 : index
    %28 = vector.load %arg7[%c0_11, %c0_12] : memref<1x256xf32, #tpu.memory_space<vmem>>, vector<1x256xf32>
    tpu.vector_store %arg7[%c0_11, %c0_12], %27 {strides = array<i32>} : memref<1x256xf32, #tpu.memory_space<vmem>>, vector<1x256xf32>,
    %c0_13 = arith.constant 0 : index
    %c0_14 = arith.constant 0 : index
    %29 = vector.load %arg8[%c0_13, %c0_14] : memref<1x256xf32, #tpu.memory_space<vmem>>, vector<1x256xf32>
    %c0_15 = arith.constant 0 : index
    %c0_16 = arith.constant 0 : index
    %30 = vector.load %arg4[%c0_15, %c0_16] : memref<1x256xi32, #tpu.memory_space<vmem>>, vector<1x256xi32>
    %31 = vector.broadcast %30 : vector<1x256xi32> to vector<128x256xi32>
    %32 = arith.cmpi eq, %9, %31 : vector<128x256xi32>
    %cst_17 = arith.constant 0.000000e+00 : f32
    %33 = vector.broadcast %cst_17 : f32 to vector<128x256xf32>
    %34 = arith.select %32, %13, %33 : vector<128x256xi1>, vector<128x256xf32>
    %cst_18 = arith.constant dense<0.000000e+00> : vector<256xf32>
    %35 = vector.multi_reduction <add>, %34, %cst_18 [0] : vector<128x256xf32> to vector<256xf32>
    %36 = vector.shape_cast %35 : vector<256xf32> to vector<1x256xf32>
    %37 = arith.addf %29, %36 : vector<1x256xf32>
    %c0_19 = arith.constant 0 : index
    %c0_20 = arith.constant 0 : index
    %38 = vector.load %arg8[%c0_19, %c0_20] : memref<1x256xf32, #tpu.memory_space<vmem>>, vector<1x256xf32>
    tpu.vector_store %arg8[%c0_19, %c0_20], %37 {strides = array<i32>} : memref<1x256xf32, #tpu.memory_space<vmem>>, vector<1x256xf32>,
    %c0_21 = arith.constant 0 : index
    %c0_22 = arith.constant 0 : index
    %39 = vector.load %arg6[%c0_21, %c0_22] : memref<1x256xf32, #tpu.memory_space<vmem>>, vector<1x256xf32>
    tpu.vector_store %arg6[%c0_21, %c0_22], %17 {strides = array<i32>} : memref<1x256xf32, #tpu.memory_space<vmem>>, vector<1x256xf32>,
    %c0_i32_23 = arith.constant 0 : i32
    %40 = arith.cmpi eq, %arg1, %c0_i32_23 : i32
    %41 = arith.extui %40 : i1 to i32
    %c0_i32_24 = arith.constant 0 : i32
    %42 = arith.cmpi ne, %41, %c0_i32_24 : i32
    scf.if %42 {
      %c0_25 = arith.constant 0 : index
      %c0_26 = arith.constant 0 : index
      %43 = vector.load %arg8[%c0_25, %c0_26] : memref<1x256xf32, #tpu.memory_space<vmem>>, vector<1x256xf32>
      %c0_27 = arith.constant 0 : index
      %c0_28 = arith.constant 0 : index
      %44 = vector.load %arg7[%c0_27, %c0_28] : memref<1x256xf32, #tpu.memory_space<vmem>>, vector<1x256xf32>
      %45 = math.log %44 : vector<1x256xf32>
      %c0_29 = arith.constant 0 : index
      %c0_30 = arith.constant 0 : index
      %46 = vector.load %arg6[%c0_29, %c0_30] : memref<1x256xf32, #tpu.memory_space<vmem>>, vector<1x256xf32>
      %47 = arith.addf %45, %46 : vector<1x256xf32>
      %48 = arith.subf %43, %47 : vector<1x256xf32>
      %c0_31 = arith.constant 0 : index
      %c0_32 = arith.constant 0 : index
      %49 = vector.load %arg5[%c0_31, %c0_32] : memref<1x256xf32, #tpu.memory_space<vmem>>, vector<1x256xf32>
      tpu.vector_store %arg5[%c0_31, %c0_32], %48 {strides = array<i32>} : memref<1x256xf32, #tpu.memory_space<vmem>>, vector<1x256xf32>,
    } else {
    }
    return
  }
  func.func @transform_0(%arg0: i32, %arg1: i32) -> (i32, i32) {
    %c0_i32 = arith.constant 0 : i32
    %c0_i32_0 = arith.constant 0 : i32
    return %arg1, %c0_i32 : i32, i32
  }
  func.func @transform_1(%arg0: i32, %arg1: i32) -> (i32, i32) {
    %c0_i32 = arith.constant 0 : i32
    %c0_i32_0 = arith.constant 0 : i32
    return %c0_i32, %arg0 : i32, i32
  }
  func.func @transform_2(%arg0: i32, %arg1: i32) -> (i32, i32) {
    %c0_i32 = arith.constant 0 : i32
    %c0_i32_0 = arith.constant 0 : i32
    return %c0_i32, %arg0 : i32, i32
  }
  func.func @transform_3(%arg0: i32, %arg1: i32) -> (i32, i32) {
    %c0_i32 = arith.constant 0 : i32
    %c0_i32_0 = arith.constant 0 : i32
    return %c0_i32, %arg0 : i32, i32
  }
}

</mosaic_0001>

<bundles_post_ra>
// kernel: squeeze.13
= control target key start
LH: loop header
LB: loop body
LE: loop exit
PB: predicated region body
PF: predicated region fallthrough
CT: control target
= control target key end

     0   :  { %s58_s8 = smov 120   ;;  %vm7_vm0 = vcmask 64512   ;;  %s59_s11 = smov 96   ;;  %s104_s0 = inlined_call_operand.vmem [shape: f32[56], index: 0, kind: input, shape index: {}]   ;;  %s105_s1 = inlined_call_operand.vmem [shape: f32[7,8], index: 1, kind: output, shape index: {}]  }
   0x1   :  { %v4_v0 = vld [vmem:[%s104_s0] sm:$0x1]  ;;  %s57_s0 = smov 104   ;;  %s60_s12 = smov 112  }
   0x2   :  { %5 = vst [vmem:[#allocation0] sm:$0x1] %v4_v0  ;;  %s61_s13 = smov 80   ;;  %s62_s14 = smov 88  }
   0x9   :  { %v21_v1 = vld [vmem:[#allocation0] sm:$0x1]  }
   0xa   :  { %v9_v2 = vld [vmem:[#allocation0] sm:$0x1]   ;;  %22 = vrot.lane.b32.xlu1 %v21_v1, %s57_s0 }
   0xb   :  { %10 = vrot.lane.b32.xlu0 %v9_v2, %s58_s8  ;;  %v27_v3 = vld [vmem:[#allocation0] sm:$0x1]  }
   0xc   :  { %v15_v4 = vld [vmem:[#allocation0] sm:$0x1]  }
   0xd   :  { %v6_v5 = vld [vmem:[#allocation0] sm:$0x1]  }
   0xe   :  { %8 = vst.msk [vmem:[%s105_s1] sm:$0x1] %vm7_vm0, %v6_v5   ;;  %28 = vrot.lane.b32.xlu1 %v27_v3, %s59_s11  ;;  %v39_v6 = vld [vmem:[#allocation0] sm:$0x1]  }
   0xf   :  { %16 = vrot.lane.b32.xlu0 %v15_v4, %s60_s12  ;;  %v33_v7 = vld [vmem:[#allocation0] sm:$0x1]  }
  0x12   :  { %40 = vrot.lane.b32.xlu1 %v39_v6, %s61_s13 }
  0x13   :  { %34 = vrot.lane.b32.xlu0 %v33_v7, %s62_s14 }
  0x7c   :  { %v23_v8 = vpop.permute.xlu1 %22  }
  0x7d   :  { %v11_v9 = vpop.permute.xlu0 %10   ;;  %47 = vst.msk [vmem:[%s105_s1 + $0x3] sm:$0x1] %vm7_vm0, %v23_v8  }
  0x7e   :  { %45 = vst.msk [vmem:[%s105_s1 + $0x1] sm:$0x1] %vm7_vm0, %v11_v9  }
  0x80   :  { %v29_v10 = vpop.permute.xlu1 %28  }
  0x81   :  { %v17_v11 = vpop.permute.xlu0 %16   ;;  %48 = vst.msk [vmem:[%s105_s1 + $0x4] sm:$0x1] %vm7_vm0, %v29_v10  }
  0x82   :  { %46 = vst.msk [vmem:[%s105_s1 + $0x2] sm:$0x1] %vm7_vm0, %v17_v11  }
  0x84   :  { %v41_v12 = vpop.permute.xlu1 %40  }
  0x85   :  { %v35_v13 = vpop.permute.xlu0 %34   ;;  %50 = vst.msk [vmem:[%s105_s1 + $0x6] sm:$0x1] %vm7_vm0, %v41_v12  }
  0x86   :  { %49 = vst.msk [vmem:[%s105_s1 + $0x5] sm:$0x1] %vm7_vm0, %v35_v13  }

// kernel: nmt_forward.5
= control target key start
LH: loop header
LB: loop body
LE: loop exit
PB: predicated region body
PF: predicated region fallthrough
CT: control target
= control target key end

     0   :  { %v805_v3 = vmov 0.0   ;;  %vm49_vm0 = vcmask 261120   ;;  %v18_v29 = vlaneseq  ;;  %v806_v31 = vmov -inf   ;;  %s1190_s1 = inlined_call_operand.vmem [shape: f32[32,256], index: 1, kind: input, shape index: {}]   ;;  %s1191_s0 = inlined_call_operand.vmem [shape: f32[128,32], index: 0, kind: input, shape index: {}]   ;;  %s1192_s2 = inlined_call_operand.vmem [shape: s32[1,256], index: 2, kind: input, shape index: {}]   ;;  %s1193_s3 = inlined_call_operand.vmem [shape: f32[1,256], index: 3, kind: output, shape index: {}]  }
   0x1   :  { %v42_v0 = vld [vmem:[%s1190_s1 + $0x8] sm:$0xff]  ;;  %v44_v1 = vld [vmem:[%s1190_s1 + $0x18] sm:$0xff]  ;;  %v41_v2 = vld [vmem:[%s1190_s1] sm:$0xff]  ;;  %162 = vmatprep.mubr.f32.mxu0 %v805_v3  ;;  %210 = vmatprep.mubr.f32.mxu1 %v805_v3 }
   0x2   :  { %v750_v4 = vpack.c.bf16 %v44_v1, %v42_v0  ;;  %v43_v5 = vld [vmem:[%s1190_s1 + $0x10] sm:$0xff]  ;;  %v46_v6 = vld [vmem:[%s1190_s1 + $0x28] sm:$0xff]  ;;  %v48_v7 = vld [vmem:[%s1190_s1 + $0x38] sm:$0xff]  ;;  %vm932_vm1 = vcmp.lt.s32.totalorder %v18_v29, 256  ;;  %v944_v32 = vshrl.u32 %v18_v29, 7 }
   0x3   :  { %v752_v8 = vpack.c.bf16 %v43_v5, %v41_v2  ;;  %v754_v9 = vpack.c.bf16 %v48_v7, %v46_v6  ;;  %v45_v10 = vld [vmem:[%s1190_s1 + $0x20] sm:$0xff]  ;;  %v47_v11 = vld [vmem:[%s1190_s1 + $0x30] sm:$0xff]  ;;  %v26_v15 = vld [vmem:[%s1191_s0 + $0x8] sm:$0xff]  ;;  %22 = vst.msk [vmem:[#allocation2] sm:$0x3] %vm932_vm1, %v806_v31 }
   0x4   :  { %751 = vmatprep.subr.bf16.mxu0 %v750_v4  ;;  %758 = vmatprep.subr.bf16.mxu1 %v750_v4  ;;  %v756_v12 = vpack.c.bf16 %v47_v11, %v45_v10  ;;  %v25_v13 = vld [vmem:[%s1191_s0] sm:$0xff]  ;;  %v34_v16 = vld [vmem:[%s1191_s0 + $0x48] sm:$0xff]  ;;  %v27_v17 = vld [vmem:[%s1191_s0 + $0x10] sm:$0xff]  ;;  %23 = vst.msk [vmem:[#allocation3] sm:$0x3] %vm932_vm1, %v805_v3  ;;  %v412_v33 = vsub.s32 0, %v944_v32 }
   0x5   :  { %753 = vmatpush1.bf16.msra.mxu0 %v752_v8  ;;  %760 = vmatpush1.bf16.msra.mxu1 %v752_v8  ;;  %v33_v14 = vld [vmem:[%s1191_s0 + $0x40] sm:$0xff]  ;;  %v35_v18 = vld [vmem:[%s1191_s0 + $0x50] sm:$0xff]  ;;  %v28_v19 = vld [vmem:[%s1191_s0 + $0x18] sm:$0xff]  ;;  %24 = vst.msk [vmem:[#allocation4] sm:$0x3] %vm932_vm1, %v805_v3  ;;  %v416_v35 = vsub.s32 1, %v944_v32 }
   0x6   :  { %755 = vmatprep.subr.bf16.mxu0 %v754_v9  ;;  %759 = vmatprep.subr.bf16.mxu1 %v754_v9  ;;  %v36_v20 = vld [vmem:[%s1191_s0 + $0x58] sm:$0xff]  ;;  %v29_v21 = vld [vmem:[%s1191_s0 + $0x20] sm:$0xff]  ;;  %v30_v23 = vld [vmem:[%s1191_s0 + $0x28] sm:$0xff]  ;;  %v261_v38 = vadd.s32 8, %v944_v32  ;;  %v262_v45 = vadd.s32 16, %v944_v32  ;;  %v263_v53 = vadd.s32 24, %v944_v32 }
   0x7   :  { %v37_v22 = vld [vmem:[%s1191_s0 + $0x60] sm:$0xff]  ;;  %v38_v24 = vld [vmem:[%s1191_s0 + $0x68] sm:$0xff]  ;;  %v31_v25 = vld [vmem:[%s1191_s0 + $0x30] sm:$0xff]  ;;  %v264_v60 = vadd.s32 32, %v944_v32 }
   0x8   :  { %v39_v26 = vld [vmem:[%s1191_s0 + $0x70] sm:$0xff]  ;;  %v32_v27 = vld [vmem:[%s1191_s0 + $0x38] sm:$0xff]  ;;  %v583_v34 = vld [vmem:[%s1192_s2] sm:$0x3] }
   0x9   :  { %757 = vmatpush1.bf16.msra.mxu0 %v756_v12  ;;  %761 = vmatpush1.bf16.msra.mxu1 %v756_v12  ;;  %v40_v28 = vld [vmem:[%s1191_s0 + $0x78] sm:$0xff]  ;;  %v953_v36 = vrot.slane %v583_v34, %v412_v33  ;;  %v957_v37 = vrot.slane %v583_v34, %v416_v35  ;;  %v265_v12 = vadd.s32 40, %v944_v32  ;;  %v268_v34 = vadd.s32 64, %v944_v32 }
   0xb   :  { %vm592_vm2 = vcmp.eq.s32.totalorder %v944_v32, %v953_v36  ;;  %vm593_vm3 = vcmp.eq.s32.totalorder %v944_v32, %v957_v37  ;;  %vm594_vm4 = vcmp.eq.s32.totalorder %v261_v38, %v953_v36  ;;  %vm595_vm5 = vcmp.eq.s32.totalorder %v261_v38, %v957_v37 }
   0xc   :  { %734 = vmatmul.mubr.msk.f32.vlgmr.msra.gmra.mrb[0].mxu0 %vm49_vm0, %v25_v13  ;;  %742 = vmatmul.mubr.msk.f32.vlgmr.msra.gmra.mrb[0].mxu1 %vm49_vm0, %v33_v14  ;;  %vm596_vm6 = vcmp.eq.s32.totalorder %v262_v45, %v953_v36  ;;  %vm597_vm7 = vcmp.eq.s32.totalorder %v262_v45, %v957_v37  ;;  %vm598_vm8 = vcmp.eq.s32.totalorder %v263_v53, %v953_v36  ;;  %v269_v38 = vadd.s32 72, %v944_v32 }
   0xd   :  { %168 = vmatprep.mubr.f32.mxu0 %v805_v3  ;;  %216 = vmatprep.mubr.f32.mxu1 %v805_v3  ;;  %vm599_vm9 = vcmp.eq.s32.totalorder %v263_v53, %v957_v37  ;;  %vm600_vm10 = vcmp.eq.s32.totalorder %v264_v60, %v953_v36  ;;  %vm601_vm11 = vcmp.eq.s32.totalorder %v264_v60, %v957_v37  ;;  %v270_v45 = vadd.s32 80, %v944_v32 }
   0xe   :  { %vm602_vm12 = vcmp.eq.s32.totalorder %v265_v12, %v953_v36  ;;  %vm603_vm13 = vcmp.eq.s32.totalorder %v265_v12, %v957_v37 }
  0x10   :  { %735 = vmatmul.mubr.msk.f32.gmra.mrb[2].mxu0 %vm49_vm0, %v26_v15  ;;  %743 = vmatmul.mubr.msk.f32.gmra.mrb[2].mxu1 %vm49_vm0, %v34_v16  ;;  %v266_v15 = vadd.s32 48, %v944_v32 }
  0x11   :  { %174 = vmatprep.mubr.f32.mxu0 %v805_v3  ;;  %222 = vmatprep.mubr.f32.mxu1 %v805_v3 }
  0x12   :  { %vm604_vm14 = vcmp.eq.s32.totalorder %v266_v15, %v953_v36  ;;  %vm605_vm15 = vcmp.eq.s32.totalorder %v266_v15, %v957_v37 }
  0x14   :  { %736 = vmatmul.mubr.msk.f32.gmra.mrb[4].mxu0 %vm49_vm0, %v27_v17  ;;  %744 = vmatmul.mubr.msk.f32.gmra.mrb[4].mxu1 %vm49_vm0, %v35_v18 }
  0x15   :  { %180 = vmatprep.mubr.f32.mxu0 %v805_v3  ;;  %228 = vmatprep.mubr.f32.mxu1 %v805_v3 }
  0x18   :  { %737 = vmatmul.mubr.msk.f32.gmra.mrb[6].mxu0 %vm49_vm0, %v28_v19  ;;  %745 = vmatmul.mubr.msk.f32.gmra.mrb[6].mxu1 %vm49_vm0, %v36_v20 }
  0x19   :  { %186 = vmatprep.mubr.f32.mxu0 %v805_v3  ;;  %234 = vmatprep.mubr.f32.mxu1 %v805_v3 }
  0x1c   :  { %738 = vmatmul.mubr.msk.f32.gmra.mrb[8].mxu0 %vm49_vm0, %v29_v21  ;;  %746 = vmatmul.mubr.msk.f32.gmra.mrb[8].mxu1 %vm49_vm0, %v37_v22 }
  0x1d   :  { %192 = vmatprep.mubr.f32.mxu0 %v805_v3  ;;  %240 = vmatprep.mubr.f32.mxu1 %v805_v3 }
  0x20   :  { %739 = vmatmul.mubr.msk.f32.gmra.mrb[10].mxu0 %vm49_vm0, %v30_v23  ;;  %747 = vmatmul.mubr.msk.f32.gmra.mrb[10].mxu1 %vm49_vm0, %v38_v24 }
  0x21   :  { %198 = vmatprep.mubr.f32.mxu0 %v805_v3  ;;  %246 = vmatprep.mubr.f32.mxu1 %v805_v3 }
  0x24   :  { %740 = vmatmul.mubr.msk.f32.gmra.mrb[12].mxu0 %vm49_vm0, %v31_v25  ;;  %748 = vmatmul.mubr.msk.f32.gmra.mrb[12].mxu1 %vm49_vm0, %v39_v26  ;;  %v267_v26 = vadd.s32 56, %v944_v32 }
  0x25   :  { %204 = vmatprep.mubr.f32.mxu0 %v805_v3  ;;  %252 = vmatprep.mubr.f32.mxu1 %v805_v3 }
  0x28   :  { %741 = vmatmul.mubr.msk.f32.gmra.mrb[14].mxu0 %vm49_vm0, %v32_v27  ;;  %749 = vmatmul.mubr.msk.f32.gmra.mrb[14].mxu1 %vm49_vm0, %v40_v28  ;;  %vm606_vm0 = vcmp.eq.s32.totalorder %v267_v26, %v953_v36 }
  0xdf   :  { %v964_v39 = vpop.f32.mrb[0].mxu0  ;;  %v212_v40 = vpop.f32.mrb[0].mxu1 }
  0xe0   :  { %v624_v41 = vsel %vm592_vm2, %v964_v39, 0.0  ;;  %v967_v42 = vpop.f32.mrb[1].mxu0  ;;  %v214_v43 = vpop.f32.mrb[1].mxu1  ;;  %vm608_vm2 = vcmp.eq.s32.totalorder %v268_v34, %v953_v36 }
  0xe1   :  { %v625_v44 = vsel %vm593_vm3, %v967_v42, 0.0  ;;  %vm610_vm3 = vcmp.eq.s32.totalorder %v269_v38, %v953_v36 }
  0xe3   :  { %v973_v46 = vpop.f32.mrb[2].mxu0  ;;  %v218_v47 = vpop.f32.mrb[2].mxu1 }
  0xe4   :  { %v626_v48 = vsel %vm594_vm4, %v973_v46, 0.0  ;;  %v976_v49 = vpop.f32.mrb[3].mxu0  ;;  %v220_v50 = vpop.f32.mrb[3].mxu1  ;;  %vm612_vm4 = vcmp.eq.s32.totalorder %v270_v45, %v953_v36 }
  0xe5   :  { %v656_v51 = vadd.f32 %v626_v48, %v624_v41  ;;  %v627_v52 = vsel %vm595_vm5, %v976_v49, 0.0  ;;  %v271_v50 = vadd.s32 88, %v944_v32  ;;  %vm607_vm5 = vcmp.eq.s32.totalorder %v267_v26, %v957_v37 }
  0xe6   :  { %v677_v54 = vadd.f32 %v627_v52, %v625_v44  ;;  %v1044_v52 = vadd.s32 104, %v944_v32 }
  0xe7   :  { %v982_v55 = vpop.f32.mrb[4].mxu0  ;;  %v224_v56 = vpop.f32.mrb[4].mxu1 }
  0xe8   :  { %v343_v57 = vmax.f32 %v964_v39, %v982_v55  ;;  %v628_v58 = vsel %vm596_vm6, %v982_v55, 0.0  ;;  %v987_v59 = vpop.f32.mrb[5].mxu0  ;;  %v226_v61 = vpop.f32.mrb[5].mxu1  ;;  %vm609_vm6 = vcmp.eq.s32.totalorder %v268_v34, %v957_v37 }
  0xe9   :  { %v657_v62 = vadd.f32 %v656_v51, %v628_v58  ;;  %v364_v63 = vmax.f32 %v967_v42, %v987_v59  ;;  %v629_v0 = vsel %vm597_vm7, %v987_v59, 0.0  ;;  %v1041_v51 = vadd.s32 96, %v944_v32 }
  0xea   :  { %v678_v1 = vadd.f32 %v677_v54, %v629_v0  ;;  %v1061_v0 = vadd.s32 112, %v944_v32  ;;  %vm614_vm7 = vcmp.eq.s32.totalorder %v271_v50, %v953_v36 }
  0xeb   :  { %v995_v2 = vpop.f32.mrb[6].mxu0  ;;  %v230_v4 = vpop.f32.mrb[6].mxu1 }
  0xec   :  { %v344_v5 = vmax.f32 %v973_v46, %v995_v2  ;;  %v630_v6 = vsel %vm598_vm8, %v995_v2, 0.0  ;;  %v1000_v7 = vpop.f32.mrb[7].mxu0  ;;  %v232_v8 = vpop.f32.mrb[7].mxu1  ;;  %v1068_v4 = vadd.s32 120, %v944_v32  ;;  %vm611_vm8 = vcmp.eq.s32.totalorder %v269_v38, %v957_v37 }
  0xed   :  { %v658_v9 = vadd.f32 %v657_v62, %v630_v6  ;;  %v365_v10 = vmax.f32 %v976_v49, %v1000_v7  ;;  %v631_v11 = vsel %vm599_vm9, %v1000_v7, 0.0  ;;  %v642_v6 = vsel %vm610_vm3, -inf, %v805_v3 }
  0xee   :  { %v679_v13 = vadd.f32 %v678_v1, %v631_v11  ;;  %v644_v11 = vsel %vm612_vm4, -inf, %v805_v3  ;;  %vm613_vm9 = vcmp.eq.s32.totalorder %v270_v45, %v957_v37  ;;  %vm623_vm3 = vcmp.eq.s32.totalorder %v1068_v4, %v957_v37 }
  0xef   :  { %v1008_v14 = vpop.f32.mrb[8].mxu0  ;;  %v236_v16 = vpop.f32.mrb[8].mxu1  ;;  %v645_v38 = vsel %vm613_vm9, -inf, %v805_v3 }
  0xf0   :  { %v1012_v17 = vmax.f32 %v343_v57, %v1008_v14  ;;  %v632_v18 = vsel %vm600_vm10, %v1008_v14, 0.0  ;;  %v1015_v19 = vpop.f32.mrb[9].mxu0  ;;  %v238_v20 = vpop.f32.mrb[9].mxu1  ;;  %vm616_vm10 = vcmp.eq.s32.totalorder %v1041_v51, %v953_v36 }
  0xf1   :  { %v659_v21 = vadd.f32 %v658_v9, %v632_v18  ;;  %v1018_v22 = vmax.f32 %v364_v63, %v1015_v19  ;;  %v633_v23 = vsel %vm601_vm11, %v1015_v19, 0.0  ;;  %v641_v18 = vsel %vm609_vm6, -inf, %v805_v3 }
  0xf2   :  { %v680_v24 = vadd.f32 %v679_v13, %v633_v23  ;;  %vm615_vm11 = vcmp.eq.s32.totalorder %v271_v50, %v957_v37 }
  0xf3   :  { %v1023_v25 = vpop.f32.mrb[10].mxu0  ;;  %v242_v27 = vpop.f32.mrb[10].mxu1  ;;  %v647_v50 = vsel %vm615_vm11, -inf, %v805_v3 }
  0xf4   :  { %v346_v28 = vmax.f32 %v344_v5, %v1023_v25  ;;  %v634_v29 = vsel %vm602_vm12, %v1023_v25, 0.0  ;;  %v1029_v31 = vpop.f32.mrb[11].mxu0  ;;  %v244_v40 = vpop.f32.mrb[11].mxu1  ;;  %v640_v5 = vsel %vm608_vm2, -inf, %v805_v3  ;;  %v643_v27 = vsel %vm611_vm8, -inf, %v805_v3 }
  0xf5   :  { %v660_v41 = vadd.f32 %v659_v21, %v634_v29  ;;  %v367_v43 = vmax.f32 %v365_v10, %v1029_v31  ;;  %v635_v44 = vsel %vm603_vm13, %v1029_v31, 0.0  ;;  %v646_v21 = vsel %vm614_vm7, -inf, %v805_v3 }
  0xf6   :  { %v681_v47 = vadd.f32 %v680_v24, %v635_v44  ;;  %vm618_vm12 = vcmp.eq.s32.totalorder %v1044_v52, %v953_v36  ;;  %vm617_vm13 = vcmp.eq.s32.totalorder %v1041_v51, %v957_v37  ;;  %vm621_vm2 = vcmp.eq.s32.totalorder %v1061_v0, %v957_v37 }
  0xf7   :  { %v1037_v48 = vpop.f32.mrb[12].mxu0  ;;  %v248_v53 = vpop.f32.mrb[12].mxu1  ;;  %v649_v51 = vsel %vm617_vm13, -inf, %v805_v3 }
  0xf8   :  { %v347_v54 = vmax.f32 %v1012_v17, %v1037_v48  ;;  %v636_v56 = vsel %vm604_vm14, %v1037_v48, 0.0  ;;  %v1052_v57 = vpop.f32.mrb[13].mxu0  ;;  %v250_v58 = vpop.f32.mrb[13].mxu1  ;;  %vm619_vm14 = vcmp.eq.s32.totalorder %v1044_v52, %v957_v37 }
  0xf9   :  { %v661_v60 = vadd.f32 %v660_v41, %v636_v56  ;;  %v368_v61 = vmax.f32 %v1018_v22, %v1052_v57  ;;  %v637_v62 = vsel %vm605_vm15, %v1052_v57, 0.0  ;;  %v648_v41 = vsel %vm616_vm10, -inf, %v805_v3 }
  0xfa   :  { %v682_v63 = vadd.f32 %v681_v47, %v637_v62  ;;  %v807_v47 = vmov 1966171168   ;;  %v650_v56 = vsel %vm618_vm12, -inf, %v805_v3  ;;  %vm620_vm15 = vcmp.eq.s32.totalorder %v1061_v0, %v953_v36 }
  0xfb   :  { %v1065_v1 = vpop.f32.mrb[14].mxu0  ;;  %v254_v8 = vpop.f32.mrb[14].mxu1  ;;  %v389_v53 = vunpack.c.l.s4 %v807_v47  ;;  %v651_v52 = vsel %vm619_vm14, -inf, %v805_v3 }
  0xfc   :  { %v348_v9 = vmax.f32 %v346_v28, %v1065_v1  ;;  %v638_v10 = vsel %vm606_vm0, %v1065_v1, 0.0  ;;  %v1078_v12 = vpop.f32.mrb[15].mxu0  ;;  %v256_v13 = vpop.f32.mrb[15].mxu1  ;;  %vm622_vm0 = vcmp.eq.s32.totalorder %v1068_v4, %v953_v36  ;;  %v653_v36 = vsel %vm621_vm2, -inf, %v805_v3 }
  0xfd   :  { %v662_v15 = vadd.f32 %v661_v60, %v638_v10  ;;  %v369_v16 = vmax.f32 %v367_v43, %v1078_v12  ;;  %v639_v17 = vsel %vm607_vm5, %v1078_v12, 0.0  ;;  %v390_v8 = vunpack.c.0.s8 %v389_v53 }
  0xfe   :  { %v357_v20 = vmax.f32 %v347_v54, %v348_v9  ;;  %v683_v22 = vadd.f32 %v682_v63, %v639_v17  ;;  %v652_v10 = vsel %vm620_vm15, -inf, %v805_v3  ;;  %v654_v0 = vsel %vm622_vm0, -inf, %v805_v3 }
  0xff   :  { %v663_v23 = vadd.f32 %v662_v15, %v640_v5  ;;  %v378_v24 = vmax.f32 %v368_v61, %v369_v16 }
 0x100   :  { %v358_v28 = vrot.slane %v357_v20, 4  ;;  %v684_v26 = vadd.f32 %v683_v22, %v641_v18  ;;  %v655_v22 = vsel %vm623_vm3, -inf, %v805_v3 }
 0x101   :  { %v664_v29 = vadd.f32 %v663_v23, %v642_v6  ;;  %v379_v34 = vrot.slane %v378_v24, 4 }
 0x102   :  { %v359_v40 = vmax.f32 %v357_v20, %v358_v28  ;;  %v685_v43 = vadd.f32 %v684_v26, %v643_v27  ;;  %v1122_v26 = vld [vmem:[#allocation2] sm:$0x3] }
 0x103   :  { %v665_v44 = vadd.f32 %v664_v29, %v644_v11  ;;  %v380_v45 = vmax.f32 %v378_v24, %v379_v34 }
 0x104   :  { %v360_v54 = vrot.slane %v359_v40, 2  ;;  %v686_v58 = vadd.f32 %v685_v43, %v645_v38 }
 0x105   :  { %v666_v60 = vadd.f32 %v665_v44, %v646_v21  ;;  %v381_v61 = vrot.slane %v380_v45, 2  ;;  %v1118_v21 = vsub.s32 %v390_v8, %v944_v32 }
 0x106   :  { %v361_v62 = vmax.f32 %v359_v40, %v360_v54  ;;  %v687_v63 = vadd.f32 %v686_v58, %v647_v50 }
 0x107   :  { %v667_v5 = vadd.f32 %v666_v60, %v648_v41  ;;  %v382_v6 = vmax.f32 %v380_v45, %v381_v61 }
 0x108   :  { %v362_v9 = vrot.slane %v361_v62, 1  ;;  %v688_v11 = vadd.f32 %v687_v63, %v649_v51 }
 0x109   :  { %v668_v13 = vadd.f32 %v667_v5, %v650_v56  ;;  %v383_v15 = vrot.slane %v382_v6, 1 }
 0x10a   :  { %v363_v16 = vmax.f32 %v361_v62, %v362_v9  ;;  %v689_v17 = vadd.f32 %v688_v11, %v651_v52 }
 0x10b   :  { %v669_v18 = vadd.f32 %v668_v13, %v652_v10  ;;  %v384_v20 = vmax.f32 %v382_v6, %v383_v15 }
 0x10c   :  { %v690_v23 = vadd.f32 %v689_v17, %v653_v36 }
 0x10d   :  { %v670_v24 = vadd.f32 %v669_v18, %v654_v0  ;;  %v387_v27 = vcombine.low %v363_v16, %v384_v20  ;;  %v582_v20 = vld [vmem:[#allocation4] sm:$0x3] }
 0x10e   :  { %v691_v37 = vadd.f32 %v690_v23, %v655_v22 }
 0x10f   :  { %v671_v4 = vrot.slane %v670_v24, 4  ;;  %v394_v28 = vrot.slane %v387_v27, %v1118_v21 }
 0x110   :  { %v692_v38 = vrot.slane %v691_v37, 4 }
 0x111   :  { %v672_v29 = vadd.f32 %v671_v4, %v670_v24  ;;  %v401_v34 = vrot.slane %v394_v28, %v1118_v21 }
 0x112   :  { %v693_v44 = vadd.f32 %v692_v38, %v691_v37 }
 0x113   :  { %v1126_v40 = vmax.f32 %v1122_v26, %v401_v34  ;;  %v673_v41 = vrot.slane %v672_v29, 2 }
 0x115   :  { %v1131_v3 = vrot.slane %v1126_v40, %v412_v33  ;;  %v1136_v43 = vrot.slane %v1126_v40, %v416_v35  ;;  %718 = vst.msk [vmem:[#allocation2] sm:$0x3] %vm932_vm1, %v1126_v40  ;;  %v674_v50 = vadd.f32 %v673_v41, %v672_v29 }
 0x117   :  { %v420_v45 = vsub.f32 %v964_v39, %v1131_v3  ;;  %v421_v47 = vsub.f32 %v967_v42, %v1136_v43  ;;  %v422_v33 = vsub.f32 %v973_v46, %v1131_v3  ;;  %v423_v32 = vsub.f32 %v976_v49, %v1136_v43 }
 0x118   :  { %v424_v35 = vsub.f32 %v982_v55, %v1131_v3  ;;  %v425_v53 = vsub.f32 %v987_v59, %v1136_v43  ;;  %v426_v54 = vsub.f32 %v995_v2, %v1131_v3  ;;  %v427_v39 = vsub.f32 %v1000_v7, %v1136_v43 }
 0x119   :  { %v694_v42 = vrot.slane %v693_v44, 2  ;;  %v428_v46 = vsub.f32 %v1008_v14, %v1131_v3  ;;  %v429_v49 = vsub.f32 %v1015_v19, %v1136_v43  ;;  %v430_v55 = vsub.f32 %v1023_v25, %v1131_v3 }
 0x11a   :  { %v431_v59 = vsub.f32 %v1029_v31, %v1136_v43  ;;  %v432_v56 = vsub.f32 %v1037_v48, %v1131_v3  ;;  %v433_v2 = vsub.f32 %v1052_v57, %v1136_v43  ;;  %v434_v7 = vsub.f32 %v1065_v1, %v1131_v3 }
 0x11b   :  { %v435_v14 = vsub.f32 %v1078_v12, %v1136_v43  ;;  %v452_v58 = vmul.f32 1.442695, %v420_v45  ;;  %v454_v19 = vmul.f32 1.442695, %v421_v47  ;;  %v456_v60 = vmul.f32 1.442695, %v422_v33 }
 0x11c   :  { %v458_v61 = vmul.f32 1.442695, %v423_v32  ;;  %v675_v25 = vrot.slane %v674_v50, 1  ;;  %v460_v51 = vmul.f32 1.442695, %v424_v35  ;;  %v695_v31 = vadd.f32 %v694_v42, %v693_v44 }
 0x11d   :  { %765 = vpow2.f32 %v452_v58  ;;  %v462_v62 = vmul.f32 1.442695, %v425_v53  ;;  %v464_v48 = vmul.f32 1.442695, %v426_v54  ;;  %v466_v57 = vmul.f32 1.442695, %v427_v39 }
 0x11e   :  { %767 = vpow2.f32 %v454_v19  ;;  %v676_v63 = vadd.f32 %v675_v25, %v674_v50  ;;  %v468_v1 = vmul.f32 1.442695, %v428_v46  ;;  %v696_v5 = vrot.slane %v695_v31, 1 }
 0x11f   :  { %769 = vpow2.f32 %v456_v60  ;;  %v470_v12 = vmul.f32 1.442695, %v429_v49  ;;  %v472_v6 = vmul.f32 1.442695, %v430_v55  ;;  %v474_v52 = vmul.f32 1.442695, %v431_v59 }
 0x120   :  { %771 = vpow2.f32 %v458_v61  ;;  %v697_v8 = vadd.f32 %v696_v5, %v695_v31  ;;  %v436_v9 = vsub.f32 -inf, %v1131_v3  ;;  %v476_v10 = vmul.f32 1.442695, %v432_v56 }
 0x121   :  { %773 = vpow2.f32 %v460_v51  ;;  %v437_v13 = vsub.f32 -inf, %v1136_v43  ;;  %v478_v15 = vmul.f32 1.442695, %v433_v2  ;;  %v480_v16 = vmul.f32 1.442695, %v434_v7 }
 0x122   :  { %775 = vpow2.f32 %v462_v62  ;;  %v700_v11 = vcombine.low %v676_v63, %v697_v8  ;;  %v482_v18 = vmul.f32 1.442695, %v435_v14  ;;  %v484_v23 = vmul.f32 1.442695, %v436_v9 }
 0x123   :  { %777 = vpow2.f32 %v464_v48  ;;  %v486_v37 = vmul.f32 1.442695, %v437_v13 }
 0x124   :  { %779 = vpow2.f32 %v466_v57  ;;  %v707_v0 = vrot.slane %v700_v11, %v1118_v21 }
 0x125   :  { %781 = vpow2.f32 %v468_v1 }
 0x126   :  { %783 = vpow2.f32 %v470_v12  ;;  %v714_v24 = vrot.slane %v707_v0, %v1118_v21 }
 0x127   :  { %v766_v36 = vpop.eup %765  ;;  %785 = vpow2.f32 %v472_v6  ;;  %v405_v6 = vsub.f32 %v1122_v26, %v1126_v40  ;;  %v404_v40 = vld [vmem:[#allocation3] sm:$0x3] }
 0x128   :  { %v768_v17 = vpop.eup %767  ;;  %787 = vpow2.f32 %v474_v52  ;;  %v716_v34 = vadd.f32 %v714_v24, %v582_v20 }
 0x129   :  { %v770_v22 = vpop.eup %769  ;;  %789 = vpow2.f32 %v476_v10  ;;  %v406_v11 = vmul.f32 1.442695, %v405_v6 }
 0x12a   :  { %v772_v27 = vpop.eup %771  ;;  %791 = vpow2.f32 %v478_v15  ;;  %v516_v4 = vadd.f32 %v770_v22, %v766_v36  ;;  %717 = vst.msk [vmem:[#allocation4] sm:$0x3] %vm932_vm1, %v716_v34 }
 0x12b   :  { %v774_v28 = vpop.eup %773  ;;  %793 = vpow2.f32 %v480_v16  ;;  %v537_v29 = vadd.f32 %v772_v27, %v768_v17 }
 0x12c   :  { %v776_v38 = vpop.eup %775  ;;  %795 = vpow2.f32 %v482_v18  ;;  %v517_v41 = vadd.f32 %v774_v28, %v516_v4 }
 0x12d   :  { %v778_v3 = vpop.eup %777  ;;  %797 = vpow2.f32 %v484_v23  ;;  %v538_v43 = vadd.f32 %v776_v38, %v537_v29 }
 0x12e   :  { %v780_v44 = vpop.eup %779  ;;  %799 = vpow2.f32 %v486_v37  ;;  %v518_v45 = vadd.f32 %v778_v3, %v517_v41 }
 0x12f   :  { %v782_v47 = vpop.eup %781  ;;  %v539_v33 = vadd.f32 %v780_v44, %v538_v43  ;;  %801 = vpow2.f32 %v406_v11  ;;  %v726_v43 = vld [vmem:[#allocation2] sm:$0x3] }
 0x130   :  { %v784_v32 = vpop.eup %783  ;;  %v519_v35 = vadd.f32 %v782_v47, %v518_v45 }
 0x131   :  { %v786_v53 = vpop.eup %785  ;;  %v540_v50 = vadd.f32 %v784_v32, %v539_v33  ;;  %v722_v45 = vld [vmem:[#allocation4] sm:$0x3] }
 0x132   :  { %v788_v54 = vpop.eup %787  ;;  %v520_v39 = vadd.f32 %v786_v53, %v519_v35 }
 0x133   :  { %v790_v42 = vpop.eup %789  ;;  %v541_v46 = vadd.f32 %v788_v54, %v540_v50 }
 0x134   :  { %v792_v49 = vpop.eup %791  ;;  %v521_v55 = vadd.f32 %v790_v42, %v520_v39 }
 0x135   :  { %v794_v59 = vpop.eup %793  ;;  %v542_v56 = vadd.f32 %v792_v49, %v541_v46 }
 0x136   :  { %v796_v2 = vpop.eup %795  ;;  %v522_v7 = vadd.f32 %v794_v59, %v521_v55 }
 0x137   :  { %v798_v14 = vpop.eup %797  ;;  %v543_v58 = vadd.f32 %v796_v2, %v542_v56 }
 0x138   :  { %v800_v19 = vpop.eup %799  ;;  %v523_v60 = vadd.f32 %v798_v14, %v522_v7 }
 0x139   :  { %v544_v61 = vadd.f32 %v800_v19, %v543_v58  ;;  %v802_v26 = vpop.eup %801 }
 0x13a   :  { %v524_v25 = vadd.f32 %v798_v14, %v523_v60  ;;  %v408_v28 = vmul.f32 %v802_v26, %v404_v40 }
 0x13b   :  { %v545_v51 = vadd.f32 %v800_v19, %v544_v61 }
 0x13c   :  { %v525_v31 = vadd.f32 %v798_v14, %v524_v25 }
 0x13d   :  { %v546_v62 = vadd.f32 %v800_v19, %v545_v51 }
 0x13e   :  { %v526_v48 = vadd.f32 %v798_v14, %v525_v31 }
 0x13f   :  { %v547_v57 = vadd.f32 %v800_v19, %v546_v62 }
 0x140   :  { %v527_v63 = vadd.f32 %v798_v14, %v526_v48 }
 0x141   :  { %v548_v1 = vadd.f32 %v800_v19, %v547_v57 }
 0x142   :  { %v528_v5 = vadd.f32 %v798_v14, %v527_v63 }
 0x143   :  { %v549_v12 = vadd.f32 %v800_v19, %v548_v1 }
 0x144   :  { %v529_v8 = vadd.f32 %v798_v14, %v528_v5 }
 0x145   :  { %v550_v52 = vadd.f32 %v800_v19, %v549_v12 }
 0x146   :  { %v530_v9 = vadd.f32 %v798_v14, %v529_v8 }
 0x147   :  { %v551_v10 = vadd.f32 %v800_v19, %v550_v52 }
 0x148   :  { %v531_v13 = vrot.slane %v530_v9, 4 }
 0x149   :  { %v552_v15 = vrot.slane %v551_v10, 4 }
 0x14a   :  { %v532_v36 = vadd.f32 %v531_v13, %v530_v9 }
 0x14b   :  { %v553_v16 = vadd.f32 %v552_v15, %v551_v10 }
 0x14c   :  { %v533_v0 = vrot.slane %v532_v36, 2 }
 0x14d   :  { %v554_v17 = vrot.slane %v553_v16, 2 }
 0x14e   :  { %v534_v18 = vadd.f32 %v533_v0, %v532_v36 }
 0x14f   :  { %v555_v20 = vadd.f32 %v554_v17, %v553_v16 }
 0x150   :  { %v535_v22 = vrot.slane %v534_v18, 1 }
 0x151   :  { %v556_v23 = vrot.slane %v555_v20, 1 }
 0x152   :  { %v536_v24 = vadd.f32 %v535_v22, %v534_v18 }
 0x153   :  { %v557_v27 = vadd.f32 %v556_v23, %v555_v20 }
 0x155   :  { %v560_v37 = vcombine.low %v536_v24, %v557_v27 }
 0x157   :  { %v567_v4 = vrot.slane %v560_v37, %v1118_v21 }
 0x159   :  { %v574_v29 = vrot.slane %v567_v4, %v1118_v21 }
 0x15b   :  { %v576_v34 = vadd.f32 %v574_v29, %v408_v28 }
 0x15d   :  { %581 = vst.msk [vmem:[#allocation3] sm:$0x3] %vm932_vm1, %v576_v34 }
 0x164   :  { %v723_v38 = vld [vmem:[#allocation3] sm:$0x3] }
 0x165   :  { %803 = vlog2.f32 %v723_v38 }
 0x16f   :  { %v804_v41 = vpop.eup %803 }
 0x170   :  { %v725_v3 = vmul.f32 0.6931472, %v804_v41 }
 0x172   :  { %v727_v44 = vadd.f32 %v726_v43, %v725_v3 }
 0x174   :  { %v728_v47 = vsub.f32 %v722_v45, %v727_v44 }
 0x176   :  { %729 = vst.msk [vmem:[%s1193_s3] sm:$0x3] %vm932_vm1, %v728_v47 }

// kernel: nmt_forward.4
= control target key start
LH: loop header
LB: loop body
LE: loop exit
PB: predicated region body
PF: predicated region fallthrough
CT: control target
= control target key end

     0   :  { %19 = vsyncpa [#allocation8], 0  ;;  %s2844_s0 = inlined_call_operand.hbm [shape: f32[7,8,32], index: 0, kind: input, shape index: {}]   ;;  %s2845_s1 = inlined_call_operand.hbm [shape: f32[8,8,64], index: 1, kind: input, shape index: {}]   ;;  %s2846_s2 = inlined_call_operand.hbm [shape: f32[8,8,1], index: 2, kind: input, shape index: {}]   ;;  %s2847_s3 = inlined_call_operand.hbm [shape: f32[8,64], index: 3, kind: input, shape index: {}]   ;;  %s2848_s4 = inlined_call_operand.hbm [shape: f32[8,64], index: 4, kind: input, shape index: {}]   ;;  %s2849_s5 = inlined_call_operand.hbm [shape: f32[32,128], index: 5, kind: input, shape index: {}]   ;;  %s2850_s6 = inlined_call_operand.hbm [shape: f32[32,128], index: 6, kind: input, shape index: {}]   ;;  %s2851_s7 = inlined_call_operand.hbm [shape: f32[32,128], index: 7, kind: input, shape index: {}]   ;;  %s2852_s8 = inlined_call_operand.hbm [shape: f32[1,128], index: 8, kind: input, shape index: {}]   ;;  %s2853_s9 = inlined_call_operand.hbm [shape: f32[64,32], index: 9, kind: input, shape index: {}]   ;;  %s2854_s10 = inlined_call_operand.hbm [shape: f32[64,32], index: 10, kind: input, shape index: {}]   ;;  %s2855_s11 = inlined_call_operand.hbm [shape: f32[64,32], index: 11, kind: input, shape index: {}]   ;;  %s2856_s12 = inlined_call_operand.hbm [shape: f32[64,32], index: 12, kind: input, shape index: {}]   ;;  %s2857_s13 = inlined_call_operand.hbm [shape: f32[32,32], index: 13, kind: input, shape index: {}]   ;;  %s2858_s14 = inlined_call_operand.hbm [shape: f32[7,8,32], index: 14, kind: output, shape index: {}]  }
   0x1   :  { %20 = vsyncpa [#allocation11], 0 }
   0x2   :  { %21 = vsyncpa [#allocation14], 0 }
   0x3   :  { %22 = vsyncpa [#allocation17], 0 }
   0x4   :  { %23 = vsyncpa [#allocation20], 0 }
   0x5   :  { %24 = vsyncpa [#allocation23], 0 }
   0x6   :  { %25 = vsyncpa [#allocation26], 0 }
   0x7   :  { %26 = vsyncpa [#allocation29], 0 }
   0x8   :  { %27 = vsyncpa [#allocation9], 0  ;;  %s2312_s29 = smov [#allocation10]   ;;  %s2313_s15 = smov [#allocation13]  }
   0x9   :  { %s45_s30 = sshll.u32 %s2312_s29, 4  ;;  %s70_s16 = sshll.u32 %s2313_s15, 4  ;;  %s46_s30 = int_to_ptr.vmem [resolvable:$true] %s45_s30  ;;  %s71_s16 = int_to_ptr.vmem [resolvable:$true] %s70_s16 }
   0xa   :  { %s1956_s19 = scalar_lea.hbm %s2845_s1, 1024 }
   0xb   :  { %p1957_p0 = scmp.ne.s32.totalorder %s2845_s1, %s1956_s19  ;;  %p1960_p1 = scmp.lt.u32.totalorder %s1956_s19, %s2845_s1 }
   0xd   :  { %p1962_p2 = pnand %p1960_p1, %p1957_p0 }
   0xf   :  { %1965 = shalt.err (!%p1962_p2)
}
  0x10   :  { %s1966_s24 = scalar_lea.vmem %s46_s30, 1024  ;;  %p1971_p4 = scmp.lt.s32.totalorder %s46_s30, %s46_s30 }
  0x11   :  { %p1967_p3 = scmp.ne.s32.totalorder %s46_s30, %s1966_s24  ;;  %p1972_p5 = scmp.lt.s32.totalorder %s1966_s24, %s1966_s24 }
  0x13   :  { %p1973_p6 = por %p1972_p5, %p1971_p4 }
  0x15   :  { %p1974_p7 = pnand %p1973_p6, %p1967_p3 }
  0x17   :  { %1977 = shalt.err (!%p1974_p7)
}
  0x18   :  { %s2314_s25 = smov 128   ;;  %s2315_s26 = smov 8  }
  0x19   :  { %51 = dma.hbm_to_vmem [thread:$0]  %s2845_s1, 1024, %s46_s30, [#allocation11], %s2314_s25, %s2314_s25, %s2315_s26  }
  0x1a   :  { %s1978_s17 = scalar_lea.hbm %s2847_s3, 128 }
  0x1b   :  { %p1979_p8 = scmp.ne.s32.totalorder %s2847_s3, %s1978_s17  ;;  %p1982_p9 = scmp.lt.u32.totalorder %s1978_s17, %s2847_s3 }
  0x1d   :  { %p1984_p10 = pnand %p1982_p9, %p1979_p8 }
  0x1f   :  { %1987 = shalt.err (!%p1984_p10)
}
  0x20   :  { %s1988_s22 = scalar_lea.vmem %s71_s16, 128  ;;  %p1993_p12 = scmp.lt.s32.totalorder %s71_s16, %s71_s16 }
  0x21   :  { %p1989_p11 = scmp.ne.s32.totalorder %s71_s16, %s1988_s22  ;;  %p1994_p13 = scmp.lt.s32.totalorder %s1988_s22, %s1988_s22 }
  0x23   :  { %p1995_p0 = por %p1994_p13, %p1993_p12 }
  0x25   :  { %p1996_p1 = pnand %p1995_p0, %p1989_p11 }
  0x27   :  { %1999 = shalt.err (!%p1996_p1)
}
  0x28   :  { %73 = dma.hbm_to_vmem [thread:$0]  %s2847_s3, 128, %s71_s16, [#allocation14]  }
  0x29   :  { %s2316_s23 = smov [#allocation16]   ;;  %s2317_s27 = smov [#allocation19]  }
  0x2a   :  { %s89_s24 = sshll.u32 %s2316_s23, 4  ;;  %s113_s28 = sshll.u32 %s2317_s27, 4  ;;  %s90_s24 = int_to_ptr.vmem [resolvable:$true] %s89_s24  ;;  %s2442_s28 = int_to_ptr.vmem [resolvable:$true] %s113_s28 }
  0x2b   :  { %s2000_s17 = scalar_lea.hbm %s2849_s5, 512 }
  0x2c   :  { %p2001_p2 = scmp.ne.s32.totalorder %s2849_s5, %s2000_s17  ;;  %p2004_p3 = scmp.lt.u32.totalorder %s2000_s17, %s2849_s5 }
  0x2e   :  { %p2006_p4 = pnand %p2004_p3, %p2001_p2 }
  0x30   :  { %2009 = shalt.err (!%p2006_p4)
}
  0x31   :  { %s2010_s3 = scalar_lea.vmem %s90_s24, 512  ;;  %p2015_p6 = scmp.lt.s32.totalorder %s90_s24, %s90_s24 }
  0x32   :  { %p2011_p5 = scmp.ne.s32.totalorder %s90_s24, %s2010_s3  ;;  %p2016_p7 = scmp.lt.s32.totalorder %s2010_s3, %s2010_s3 }
  0x34   :  { %p2017_p8 = por %p2016_p7, %p2015_p6 }
  0x36   :  { %p2018_p9 = pnand %p2017_p8, %p2011_p5 }
  0x38   :  { %2021 = shalt.err (!%p2018_p9)
}
  0x39   :  { %95 = dma.hbm_to_vmem [thread:$0]  %s2849_s5, 512, %s90_s24, [#allocation17], %s2314_s25, %s2314_s25, %s2315_s26  }
  0x3a   :  { %s2022_s23 = scalar_lea.hbm %s2851_s7, 512 }
  0x3b   :  { %p2023_p10 = scmp.ne.s32.totalorder %s2851_s7, %s2022_s23  ;;  %p2026_p11 = scmp.lt.u32.totalorder %s2022_s23, %s2851_s7 }
  0x3d   :  { %p2028_p12 = pnand %p2026_p11, %p2023_p10 }
  0x3f   :  { %2031 = shalt.err (!%p2028_p12)
}
  0x40   :  { %s2032_s18 = scalar_lea.vmem %s2442_s28, 512  ;;  %p2037_p0 = scmp.lt.s32.totalorder %s2442_s28, %s2442_s28 }
  0x41   :  { %p2033_p13 = scmp.ne.s32.totalorder %s2442_s28, %s2032_s18  ;;  %p2038_p1 = scmp.lt.s32.totalorder %s2032_s18, %s2032_s18 }
  0x43   :  { %p2039_p2 = por %p2038_p1, %p2037_p0 }
  0x45   :  { %p2040_p3 = pnand %p2039_p2, %p2033_p13 }
  0x47   :  { %2043 = shalt.err (!%p2040_p3)
}
  0x48   :  { %119 = dma.hbm_to_vmem [thread:$0]  %s2851_s7, 512, %s2442_s28, [#allocation20], %s2314_s25, %s2314_s25, %s2315_s26  }
  0x49   :  { %s2318_s19 = smov [#allocation22]   ;;  %s2319_s21 = smov [#allocation25]  }
  0x4a   :  { %s135_s20 = sshll.u32 %s2318_s19, 4  ;;  %s159_s3 = sshll.u32 %s2319_s21, 4  ;;  %s136_s20 = int_to_ptr.vmem [resolvable:$true] %s135_s20  ;;  %s2479_s3 = int_to_ptr.vmem [resolvable:$true] %s159_s3 }
  0x4b   :  { %s2044_s1 = scalar_lea.hbm %s2853_s9, 1024 }
  0x4c   :  { %p2045_p4 = scmp.ne.s32.totalorder %s2853_s9, %s2044_s1  ;;  %p2048_p5 = scmp.lt.u32.totalorder %s2044_s1, %s2853_s9 }
  0x4e   :  { %p2050_p6 = pnand %p2048_p5, %p2045_p4 }
  0x50   :  { %2053 = shalt.err (!%p2050_p6)
}
  0x51   :  { %s2054_s7 = scalar_lea.vmem %s136_s20, 1024  ;;  %p2059_p8 = scmp.lt.s32.totalorder %s136_s20, %s136_s20 }
  0x52   :  { %p2055_p7 = scmp.ne.s32.totalorder %s136_s20, %s2054_s7  ;;  %p2060_p9 = scmp.lt.s32.totalorder %s2054_s7, %s2054_s7 }
  0x54   :  { %p2061_p10 = por %p2060_p9, %p2059_p8 }
  0x56   :  { %p2062_p11 = pnand %p2061_p10, %p2055_p7 }
  0x58   :  { %2065 = shalt.err (!%p2062_p11)
}
  0x59   :  { %141 = dma.hbm_to_vmem [thread:$0]  %s2853_s9, 1024, %s136_s20, [#allocation23], %s2314_s25, %s2314_s25, %s2315_s26  }
  0x5a   :  { %s2066_s5 = scalar_lea.hbm %s2855_s11, 1024 }
  0x5b   :  { %p2067_p12 = scmp.ne.s32.totalorder %s2855_s11, %s2066_s5  ;;  %p2070_p13 = scmp.lt.u32.totalorder %s2066_s5, %s2855_s11 }
  0x5d   :  { %p2072_p0 = pnand %p2070_p13, %p2067_p12 }
  0x5f   :  { %2075 = shalt.err (!%p2072_p0)
}
  0x60   :  { %s2076_s22 = scalar_lea.vmem %s2479_s3, 1024  ;;  %p2081_p2 = scmp.lt.s32.totalorder %s2479_s3, %s2479_s3 }
  0x61   :  { %p2077_p1 = scmp.ne.s32.totalorder %s2479_s3, %s2076_s22  ;;  %p2082_p3 = scmp.lt.s32.totalorder %s2076_s22, %s2076_s22 }
  0x63   :  { %p2083_p4 = por %p2082_p3, %p2081_p2 }
  0x65   :  { %p2084_p5 = pnand %p2083_p4, %p2077_p1 }
  0x67   :  { %2087 = shalt.err (!%p2084_p5)
}
  0x68   :  { %165 = dma.hbm_to_vmem [thread:$0]  %s2855_s11, 1024, %s2479_s3, [#allocation26], %s2314_s25, %s2314_s25, %s2315_s26  }
  0x69   :  { %s2320_s1 = smov [#allocation7]   ;;  %s2321_s23 = smov [#allocation12]  }
  0x6a   :  { %s33_s30 = sshll.u32 %s2320_s1, 4  ;;  %s57_s27 = sshll.u32 %s2321_s23, 4  ;;  %s34_s30 = int_to_ptr.vmem [resolvable:$true] %s33_s30  ;;  %s2516_s27 = int_to_ptr.vmem [resolvable:$true] %s57_s27 }
  0x6b   :  { %s2088_s28 = scalar_lea.hbm %s2844_s0, 896 }
  0x6c   :  { %p2089_p6 = scmp.ne.s32.totalorder %s2844_s0, %s2088_s28  ;;  %p2092_p7 = scmp.lt.u32.totalorder %s2088_s28, %s2844_s0 }
  0x6e   :  { %p2094_p8 = pnand %p2092_p7, %p2089_p6 }
  0x70   :  { %2097 = shalt.err (!%p2094_p8)
}
  0x71   :  { %s2098_s11 = scalar_lea.vmem %s34_s30, 896  ;;  %p2103_p10 = scmp.lt.s32.totalorder %s34_s30, %s34_s30 }
  0x72   :  { %p2099_p9 = scmp.ne.s32.totalorder %s34_s30, %s2098_s11  ;;  %p2104_p11 = scmp.lt.s32.totalorder %s2098_s11, %s2098_s11 }
  0x74   :  { %p2105_p12 = por %p2104_p11, %p2103_p10 }
  0x76   :  { %p2106_p13 = pnand %p2105_p12, %p2099_p9 }
  0x78   :  { %2109 = shalt.err (!%p2106_p13)
}
  0x79   :  { %39 = dma.hbm_to_vmem [thread:$0]  %s2844_s0, 896, %s34_s30, [#allocation8], %s2314_s25, %s2314_s25, %s2315_s26  }
  0x7a   :  { %s2110_s16 = scalar_lea.hbm %s2846_s2, 1024 }
  0x7b   :  { %p2111_p0 = scmp.ne.s32.totalorder %s2846_s2, %s2110_s16  ;;  %p2114_p1 = scmp.lt.u32.totalorder %s2110_s16, %s2846_s2 }
  0x7d   :  { %p2116_p2 = pnand %p2114_p1, %p2111_p0 }
  0x7f   :  { %2119 = shalt.err (!%p2116_p2)
}
  0x80   :  { %s2120_s23 = scalar_lea.vmem %s2516_s27, 1024  ;;  %p2125_p4 = scmp.lt.s32.totalorder %s2516_s27, %s2516_s27 }
  0x81   :  { %p2121_p3 = scmp.ne.s32.totalorder %s2516_s27, %s2120_s23  ;;  %p2126_p5 = scmp.lt.s32.totalorder %s2120_s23, %s2120_s23 }
  0x83   :  { %p2127_p6 = por %p2126_p5, %p2125_p4 }
  0x85   :  { %p2128_p7 = pnand %p2127_p6, %p2121_p3 }
  0x87   :  { %2131 = shalt.err (!%p2128_p7)
}
  0x88   :  { %63 = dma.hbm_to_vmem [thread:$0]  %s2846_s2, 1024, %s2516_s27, [#allocation11], %s2314_s25, %s2314_s25, %s2315_s26  }
  0x89   :  { %s2322_s29 = smov [#allocation15]   ;;  %s2323_s28 = smov [#allocation18]  }
  0x8a   :  { %s80_s7 = sshll.u32 %s2322_s29, 4  ;;  %s101_s15 = sshll.u32 %s2323_s28, 4  ;;  %s81_s7 = int_to_ptr.vmem [resolvable:$true] %s80_s7  ;;  %s2553_s15 = int_to_ptr.vmem [resolvable:$true] %s101_s15 }
  0x8b   :  { %s2132_s5 = scalar_lea.hbm %s2848_s4, 128 }
  0x8c   :  { %p2133_p8 = scmp.ne.s32.totalorder %s2848_s4, %s2132_s5  ;;  %p2136_p9 = scmp.lt.u32.totalorder %s2132_s5, %s2848_s4 }
  0x8e   :  { %p2138_p10 = pnand %p2136_p9, %p2133_p8 }
  0x90   :  { %2141 = shalt.err (!%p2138_p10)
}
  0x91   :  { %s2142_s2 = scalar_lea.vmem %s81_s7, 128  ;;  %p2147_p12 = scmp.lt.s32.totalorder %s81_s7, %s81_s7 }
  0x92   :  { %p2143_p11 = scmp.ne.s32.totalorder %s81_s7, %s2142_s2  ;;  %p2148_p13 = scmp.lt.s32.totalorder %s2142_s2, %s2142_s2 }
  0x94   :  { %p2149_p0 = por %p2148_p13, %p2147_p12 }
  0x96   :  { %p2150_p1 = pnand %p2149_p0, %p2143_p11 }
  0x98   :  { %2153 = shalt.err (!%p2150_p1)
}
  0x99   :  { %83 = dma.hbm_to_vmem [thread:$0]  %s2848_s4, 128, %s81_s7, [#allocation14]  }
  0x9a   :  { %s2154_s9 = scalar_lea.hbm %s2850_s6, 512 }
  0x9b   :  { %p2155_p2 = scmp.ne.s32.totalorder %s2850_s6, %s2154_s9  ;;  %p2158_p3 = scmp.lt.u32.totalorder %s2154_s9, %s2850_s6 }
  0x9d   :  { %p2160_p4 = pnand %p2158_p3, %p2155_p2 }
  0x9f   :  { %2163 = shalt.err (!%p2160_p4)
}
  0xa0   :  { %s2164_s30 = scalar_lea.vmem %s2553_s15, 512  ;;  %p2169_p6 = scmp.lt.s32.totalorder %s2553_s15, %s2553_s15 }
  0xa1   :  { %p2165_p5 = scmp.ne.s32.totalorder %s2553_s15, %s2164_s30  ;;  %p2170_p7 = scmp.lt.s32.totalorder %s2164_s30, %s2164_s30 }
  0xa3   :  { %p2171_p8 = por %p2170_p7, %p2169_p6 }
  0xa5   :  { %p2172_p9 = pnand %p2171_p8, %p2165_p5 }
  0xa7   :  { %2175 = shalt.err (!%p2172_p9)
}
  0xa8   :  { %107 = dma.hbm_to_vmem [thread:$0]  %s2850_s6, 512, %s2553_s15, [#allocation17], %s2314_s25, %s2314_s25, %s2315_s26  }
  0xa9   :  { %s2324_s7 = smov [#allocation21]   ;;  %s2325_s17 = smov [#allocation24]  }
  0xaa   :  { %s126_s28 = sshll.u32 %s2324_s7, 4  ;;  %s147_s18 = sshll.u32 %s2325_s17, 4  ;;  %s127_s28 = int_to_ptr.vmem [resolvable:$true] %s126_s28  ;;  %s2587_s18 = int_to_ptr.vmem [resolvable:$true] %s147_s18 }
  0xab   :  { %s2176_s3 = scalar_lea.hbm %s2852_s8, 16 }
  0xac   :  { %p2177_p10 = scmp.ne.s32.totalorder %s2852_s8, %s2176_s3  ;;  %p2180_p11 = scmp.lt.u32.totalorder %s2176_s3, %s2852_s8 }
  0xae   :  { %p2182_p12 = pnand %p2180_p11, %p2177_p10 }
  0xb0   :  { %2185 = shalt.err (!%p2182_p12)
}
  0xb1   :  { %s2186_s6 = scalar_lea.vmem %s127_s28, 16  ;;  %s2190_s15 = scalar_lea.vmem %s127_s28, 32 }
  0xb2   :  { %p2187_p13 = scmp.ne.s32.totalorder %s127_s28, %s2186_s6  ;;  %p2191_p0 = scmp.lt.s32.totalorder %s127_s28, %s127_s28 }
  0xb3   :  { %p2192_p1 = scmp.lt.s32.totalorder %s2190_s15, %s2186_s6 }
  0xb5   :  { %p2193_p2 = por %p2192_p1, %p2191_p0 }
  0xb7   :  { %p2194_p3 = pnand %p2193_p2, %p2187_p13 }
  0xb9   :  { %2197 = shalt.err (!%p2194_p3)
}
  0xba   :  { %129 = dma.hbm_to_vmem [thread:$0]  %s2852_s8, 16, %s127_s28, [#allocation20]  }
  0xbb   :  { %s2198_s20 = scalar_lea.hbm %s2854_s10, 1024 }
  0xbc   :  { %p2199_p4 = scmp.ne.s32.totalorder %s2854_s10, %s2198_s20  ;;  %p2202_p5 = scmp.lt.u32.totalorder %s2198_s20, %s2854_s10 }
  0xbe   :  { %p2204_p6 = pnand %p2202_p5, %p2199_p4 }
  0xc0   :  { %2207 = shalt.err (!%p2204_p6)
}
  0xc1   :  { %s2208_s4 = scalar_lea.vmem %s2587_s18, 1024  ;;  %p2213_p8 = scmp.lt.s32.totalorder %s2587_s18, %s2587_s18 }
  0xc2   :  { %p2209_p7 = scmp.ne.s32.totalorder %s2587_s18, %s2208_s4  ;;  %p2214_p9 = scmp.lt.s32.totalorder %s2208_s4, %s2208_s4 }
  0xc4   :  { %p2215_p10 = por %p2214_p9, %p2213_p8 }
  0xc6   :  { %p2216_p11 = pnand %p2215_p10, %p2209_p7 }
  0xc8   :  { %2219 = shalt.err (!%p2216_p11)
}
  0xc9   :  { %153 = dma.hbm_to_vmem [thread:$0]  %s2854_s10, 1024, %s2587_s18, [#allocation23], %s2314_s25, %s2314_s25, %s2315_s26  }
  0xca   :  { %s2326_s7 = smov [#allocation27]   ;;  %s2327_s17 = smov [#allocation28]  }
  0xcb   :  { %s171_s28 = sshll.u32 %s2326_s7, 4  ;;  %s183_s5 = sshll.u32 %s2327_s17, 4  ;;  %s172_s28 = int_to_ptr.vmem [resolvable:$true] %s171_s28  ;;  %s2621_s5 = int_to_ptr.vmem [resolvable:$true] %s183_s5 }
  0xcc   :  { %s2220_s24 = scalar_lea.hbm %s2856_s12, 1024 }
  0xcd   :  { %p2221_p12 = scmp.ne.s32.totalorder %s2856_s12, %s2220_s24  ;;  %p2224_p13 = scmp.lt.u32.totalorder %s2220_s24, %s2856_s12 }
  0xcf   :  { %p2226_p0 = pnand %p2224_p13, %p2221_p12 }
  0xd1   :  { %2229 = shalt.err (!%p2226_p0)
}
  0xd2   :  { %s2230_s10 = scalar_lea.vmem %s172_s28, 1024  ;;  %p2235_p2 = scmp.lt.s32.totalorder %s172_s28, %s172_s28 }
  0xd3   :  { %p2231_p1 = scmp.ne.s32.totalorder %s172_s28, %s2230_s10  ;;  %p2236_p3 = scmp.lt.s32.totalorder %s2230_s10, %s2230_s10 }
  0xd5   :  { %p2237_p4 = por %p2236_p3, %p2235_p2 }
  0xd7   :  { %p2238_p5 = pnand %p2237_p4, %p2231_p1 }
  0xd9   :  { %2241 = shalt.err (!%p2238_p5)
}
  0xda   :  { %177 = dma.hbm_to_vmem [thread:$0]  %s2856_s12, 1024, %s172_s28, [#allocation26], %s2314_s25, %s2314_s25, %s2315_s26  }
  0xdb   :  { %s2242_s22 = scalar_lea.hbm %s2857_s13, 512 }
  0xdc   :  { %p2243_p6 = scmp.ne.s32.totalorder %s2857_s13, %s2242_s22  ;;  %p2246_p7 = scmp.lt.u32.totalorder %s2242_s22, %s2857_s13 }
  0xde   :  { %p2248_p8 = pnand %p2246_p7, %p2243_p6 }
  0xe0   :  { %2251 = shalt.err (!%p2248_p8)
}
  0xe1   :  { %s2252_s0 = scalar_lea.vmem %s2621_s5, 512  ;;  %p2257_p10 = scmp.lt.s32.totalorder %s2621_s5, %s2621_s5 }
  0xe2   :  { %p2253_p9 = scmp.ne.s32.totalorder %s2621_s5, %s2252_s0  ;;  %p2258_p11 = scmp.lt.s32.totalorder %s2252_s0, %s2252_s0 }
  0xe4   :  { %p2259_p12 = por %p2258_p11, %p2257_p10 }
  0xe6   :  { %p2260_p13 = pnand %p2259_p12, %p2253_p9 }
  0xe8   :  { %2263 = shalt.err (!%p2260_p13)
}
  0xe9   :  { %189 = dma.hbm_to_vmem [thread:$0]  %s2857_s13, 512, %s2621_s5, [#allocation29], %s2314_s25, %s2314_s25, %s2315_s26  }
  0xea   :  { %2290 = dma.done.wait [#allocation8], 896  }
  0xeb   :  { %2291 = vsyncadd [#allocation8], 4294966400 }
  0xec   :  { %2292 = dma.done.wait [#allocation11], 2048  }
  0xed   :  { %2293 = vsyncadd [#allocation11], 4294965248 }
  0xee   :  { %2294 = dma.done.wait [#allocation14], 256  }
  0xef   :  { %2295 = vsyncadd [#allocation14], 4294967040 }
  0xf0   :  { %2296 = dma.done.wait [#allocation17], 1024  }
  0xf1   :  { %2297 = vsyncadd [#allocation17], 4294966272 }
  0xf2   :  { %2298 = dma.done.wait [#allocation20], 528  }
  0xf3   :  { %2299 = vsyncadd [#allocation20], 4294966768 }
  0xf4   :  { %2300 = dma.done.wait [#allocation23], 2048  }
  0xf5   :  { %2301 = vsyncadd [#allocation23], 4294965248 }
  0xf6   :  { %2302 = dma.done.wait [#allocation26], 2048  }
  0xf7   :  { %2303 = vsyncadd [#allocation26], 4294965248 }
  0xf8   :  { %2304 = dma.done.wait [#allocation29], 512  }
  0xf9   :  { %2305 = vsyncadd [#allocation29], 4294966784  ;;  %vm315_vm0 = vcmask 261120   ;;  %v2328_v0 = vmov 0.0|0.0   ;;  %v2329_v1 = vmov 0.0   ;;  %vm2330_vm1 = vmmov 0  }
  0xfa   :  { %1807 = vmatprep.subr.bf16.mxu1 %v2328_v0  ;;  %1795 = vmatprep.subr.bf16.mxu0 %v2328_v0  ;;  %400 = vst.msk [vmem:[#allocation5] sm:$0xff] %vm315_vm0, %v2329_v1  ;;  %v318_v2 = vld [vmem:[#allocation24] sm:$0xff]  ;;  %v319_v3 = vld [vmem:[#allocation24 + $0x8] sm:$0xff]  ;;  %v320_v7 = vld [vmem:[#allocation24 + $0x10] sm:$0xff]  ;;  %vm241_vm2 = vcmask 523264   ;;  %s2715_s13 = smov 0  }
  0xfb   :  { %1683 = vmatprep.mubr.msk.f32.mxu1 %vm2330_vm1, %v2329_v1  ;;  %1664 = vmatprep.mubr.msk.f32.mxu0 %vm2330_vm1, %v2329_v1  ;;  %v233_v4 = vld [vmem:[#allocation22] sm:$0xff]  ;;  %v1808_v5 = vpack.c.bf16 %v319_v3, %v318_v2  ;;  %v234_v6 = vld [vmem:[#allocation22 + $0x8] sm:$0xff]  ;;  %v321_v8 = vld [vmem:[#allocation24 + $0x18] sm:$0xff] }
  0xfc   :  { %v1796_v9 = vpack.c.bf16 %v234_v6, %v233_v4  ;;  %v235_v10 = vld [vmem:[#allocation22 + $0x10] sm:$0xff]  ;;  %v236_v11 = vld [vmem:[#allocation22 + $0x18] sm:$0xff]  ;;  %v1811_v12 = vpack.c.bf16 %v321_v8, %v320_v7  ;;  %v322_v14 = vld [vmem:[#allocation24 + $0x20] sm:$0xff] }
  0xfd   :  { %1809 = vmatpush3.bf16.msra.mxu1 %v1808_v5  ;;  %v1799_v13 = vpack.c.bf16 %v236_v11, %v235_v10  ;;  %v323_v15 = vld [vmem:[#allocation24 + $0x28] sm:$0xff]  ;;  %v237_v16 = vld [vmem:[#allocation22 + $0x20] sm:$0xff]  ;;  %v324_v20 = vld [vmem:[#allocation24 + $0x30] sm:$0xff] }
  0xfe   :  { %1810 = vmatprep.subr.bf16.mxu1 %v2328_v0  ;;  %1797 = vmatpush3.bf16.msra.mxu0 %v1796_v9  ;;  %v238_v17 = vld [vmem:[#allocation22 + $0x28] sm:$0xff]  ;;  %v1814_v18 = vpack.c.bf16 %v323_v15, %v322_v14  ;;  %v325_v21 = vld [vmem:[#allocation24 + $0x38] sm:$0xff]  ;;  %v239_v22 = vld [vmem:[#allocation22 + $0x30] sm:$0xff] }
  0xff   :  { %1798 = vmatprep.subr.bf16.mxu0 %v2328_v0  ;;  %v1802_v19 = vpack.c.bf16 %v238_v17, %v237_v16  ;;  %v240_v23 = vld [vmem:[#allocation22 + $0x38] sm:$0xff]  ;;  %v409_v24 = vld [vmem:[#allocation25] sm:$0xff]  ;;  %v410_v25 = vld [vmem:[#allocation25 + $0x8] sm:$0xff]  ;;  %v1817_v26 = vpack.c.bf16 %v325_v21, %v324_v20 }
 0x100   :  { %v1805_v27 = vpack.c.bf16 %v240_v23, %v239_v22  ;;  %v561_v28 = vld [vmem:[#allocation16] sm:$0xff]  ;;  %v562_v29 = vld [vmem:[#allocation16 + $0x8] sm:$0xff]  ;;  %v1819_v30 = vpack.c.bf16 %v410_v25, %v409_v24  ;;  %v411_v31 = vld [vmem:[#allocation25 + $0x10] sm:$0xff] }
 0x101   :  { %1812 = vmatpush3.bf16.msra.mxu1 %v1811_v12  ;;  %v412_v32 = vld [vmem:[#allocation25 + $0x18] sm:$0xff]  ;;  %v1836_v34 = vpack.c.bf16 %v562_v29, %v561_v28  ;;  %v232_v35 = vld [vmem:[#allocation13] sm:$0xff]  ;;  %v413_v39 = vld [vmem:[#allocation25 + $0x20] sm:$0xff] }
 0x102   :  { %1813 = vmatprep.subr.bf16.mxu1 %v2328_v0  ;;  %1800 = vmatpush3.bf16.msra.mxu0 %v1799_v13  ;;  %v317_v33 = vld [vmem:[#allocation15] sm:$0xff]  ;;  %v563_v36 = vld [vmem:[#allocation16 + $0x10] sm:$0xff]  ;;  %v1823_v38 = vpack.c.bf16 %v412_v32, %v411_v31  ;;  %v555_v48 = vld [vmem:[#allocation7 + $0x8] sm:$0xff] }
 0x103   :  { %1801 = vmatprep.subr.bf16.mxu0 %v2328_v0  ;;  %v564_v37 = vld [vmem:[#allocation16 + $0x18] sm:$0xff]  ;;  %v414_v40 = vld [vmem:[#allocation25 + $0x28] sm:$0xff]  ;;  %v403_v51 = vld [vmem:[#allocation10 + $0x10] sm:$0xff] }
 0x104   :  { %v1839_v41 = vpack.c.bf16 %v564_v37, %v563_v36  ;;  %v401_v42 = vld [vmem:[#allocation10] sm:$0xff]  ;;  %v1827_v43 = vpack.c.bf16 %v414_v40, %v413_v39  ;;  %v416_v45 = vld [vmem:[#allocation25 + $0x38] sm:$0xff]  ;;  %v556_v49 = vld [vmem:[#allocation7 + $0x10] sm:$0xff] }
 0x105   :  { %1815 = vmatpush3.bf16.msra.mxu1 %v1814_v18  ;;  %v415_v44 = vld [vmem:[#allocation25 + $0x30] sm:$0xff]  ;;  %v404_v53 = vld [vmem:[#allocation10 + $0x18] sm:$0xff]  ;;  %v407_v57 = vld [vmem:[#allocation10 + $0x30] sm:$0xff] }
 0x106   :  { %1816 = vmatprep.subr.bf16.mxu1 %v2328_v0  ;;  %1803 = vmatpush3.bf16.msra.mxu0 %v1802_v19  ;;  %v554_v46 = vld [vmem:[#allocation7] sm:$0xff]  ;;  %v1831_v47 = vpack.c.bf16 %v416_v45, %v415_v44  ;;  %v557_v52 = vld [vmem:[#allocation7 + $0x18] sm:$0xff]  ;;  %v559_v58 = vld [vmem:[#allocation7 + $0x28] sm:$0xff] }
 0x107   :  { %1804 = vmatprep.subr.bf16.mxu0 %v2328_v0  ;;  %v402_v50 = vld [vmem:[#allocation10 + $0x8] sm:$0xff]  ;;  %v405_v54 = vld [vmem:[#allocation10 + $0x20] sm:$0xff]  ;;  %v408_v59 = vld [vmem:[#allocation10 + $0x38] sm:$0xff] }
 0x108   :  { %v558_v55 = vld [vmem:[#allocation7 + $0x20] sm:$0xff]  ;;  %v560_v60 = vld [vmem:[#allocation7 + $0x30] sm:$0xff]  ;;  %v1565_v2 = vld [vmem:[#allocation21] ss:$0 sm:$0xff] }
 0x109   :  { %1818 = vmatpush3.bf16.msra.mxu1 %v1817_v26  ;;  %v406_v56 = vld [vmem:[#allocation10 + $0x28] sm:$0xff] }
 0x10a   :  { %1835 = vmatprep.subr.bf16.mxu1 %v2328_v0  ;;  %1806 = vmatpush3.bf16.msra.mxu0 %v1805_v27 }
 0x10b   :  { %1820 = vmatprep.subr.bf16.mxu0 %v1819_v30 }
 0x10c   :  { %1684 = vmatmul.mubr.msk.f32.vlgmr.msra.gmra.mrb[0].mxu1 %vm241_vm2, %v317_v33 }
 0x10d   :  { %1837 = vmatpush3.bf16.msra.mxu1 %v1836_v34  ;;  %1665 = vmatmul.mubr.msk.f32.vlgmr.msra.gmra.mrb[0].mxu0 %vm241_vm2, %v232_v35 }
 0x10e   :  { %1838 = vmatprep.subr.bf16.mxu1 %v2328_v0  ;;  %1822 = vmatpush3.bf16.msra.mxu0 %v1819_v30 }
 0x10f   :  { %1722 = vmatprep.mubr.msk.f32.mxu1 %vm2330_vm1, %v2329_v1  ;;  %1824 = vmatprep.subr.bf16.mxu0 %v1823_v38 }
 0x110   :  { %1702 = vmatprep.mubr.msk.f32.mxu0 %vm241_vm2, %v401_v42 }
 0x111   :  { %1840 = vmatpush3.bf16.msra.mxu1 %v1839_v41 }
 0x112   :  { %1826 = vmatpush3.bf16.msra.mxu0 %v1823_v38 }
 0x113   :  { %1828 = vmatprep.subr.bf16.mxu0 %v1827_v43 }
 0x114   :  { %1723 = vmatmul.mubr.msk.f32.vlgmr.msra.gmra.mrb[2].mxu1 %vm315_vm0, %v554_v46 }
 0x115   :  { %1725 = vmatprep.mubr.msk.f32.mxu1 %vm2330_vm1, %v2329_v1 }
 0x116   :  { %1830 = vmatpush3.bf16.msra.mxu0 %v1827_v43 }
 0x117   :  { %1832 = vmatprep.subr.bf16.mxu0 %v1831_v47 }
 0x118   :  { %1726 = vmatmul.mubr.msk.f32.gmra.mrb[4].mxu1 %vm315_vm0, %v555_v48 }
 0x119   :  { %1728 = vmatprep.mubr.msk.f32.mxu1 %vm2330_vm1, %v2329_v1 }
 0x11a   :  { %1834 = vmatpush3.bf16.msra.mxu0 %v1831_v47 }
 0x11c   :  { %1729 = vmatmul.mubr.msk.f32.gmra.mrb[6].mxu1 %vm315_vm0, %v556_v49 }
 0x11d   :  { %1731 = vmatprep.mubr.msk.f32.mxu1 %vm2330_vm1, %v2329_v1  ;;  %1703 = vmatmul.mubr.msk.f32.vlgmr.msra.gmra.mrb[2].mxu0 %vm241_vm2, %v402_v50 }
 0x11e   :  { %1705 = vmatprep.mubr.msk.f32.mxu0 %vm241_vm2, %v403_v51 }
 0x120   :  { %1732 = vmatmul.mubr.msk.f32.gmra.mrb[8].mxu1 %vm315_vm0, %v557_v52 }
 0x121   :  { %1734 = vmatprep.mubr.msk.f32.mxu1 %vm2330_vm1, %v2329_v1  ;;  %1706 = vmatmul.mubr.msk.f32.gmra.mrb[4].mxu0 %vm241_vm2, %v404_v53 }
 0x122   :  { %1708 = vmatprep.mubr.msk.f32.mxu0 %vm241_vm2, %v405_v54 }
 0x124   :  { %1735 = vmatmul.mubr.msk.f32.gmra.mrb[10].mxu1 %vm315_vm0, %v558_v55 }
 0x125   :  { %1737 = vmatprep.mubr.msk.f32.mxu1 %vm2330_vm1, %v2329_v1  ;;  %1709 = vmatmul.mubr.msk.f32.gmra.mrb[6].mxu0 %vm241_vm2, %v406_v56 }
 0x126   :  { %1711 = vmatprep.mubr.msk.f32.mxu0 %vm241_vm2, %v407_v57 }
 0x128   :  { %1738 = vmatmul.mubr.msk.f32.gmra.mrb[12].mxu1 %vm315_vm0, %v559_v58 }
 0x129   :  { %1740 = vmatprep.mubr.msk.f32.mxu1 %vm2330_vm1, %v2329_v1  ;;  %1712 = vmatmul.mubr.msk.f32.gmra.mrb[8].mxu0 %vm241_vm2, %v408_v59 }
 0x12c   :  { %1741 = vmatmul.mubr.msk.f32.gmra.mrb[14].mxu1 %vm315_vm0, %v560_v60 }
 0x1df   :  { %v395_v61 = vpop.f32.mrb[0].mxu1 }
 0x1e0   :  { %399 = vst.msk [vmem:[#allocation4] sm:$0xff] %vm315_vm0, %v395_v61  ;;  %v1685_v62 = vpop.f32.mrb[1].mxu1  ;;  %v311_v63 = vpop.f32.mrb[0].mxu0 }
 0x1e1   :  { %316 = vst.msk [vmem:[#allocation3] sm:$0xff] %vm315_vm0, %v311_v63  ;;  %v1666_v0 = vpop.f32.mrb[1].mxu0 }
 0x1e7   :  { %v659_v3 = vpop.f32.mrb[2].mxu1 }
 0x1e8   :  { %v660_v4 = vadd.f32 %v1565_v2, %v659_v3  ;;  %v1724_v5 = vpop.f32.mrb[3].mxu1 }
 0x1ea   :  { %693 = vst [vmem:[#allocation2] sm:$0xff] %v660_v4 }
 0x1eb   :  { %v664_v6 = vpop.f32.mrb[4].mxu1 }
 0x1ec   :  { %v665_v1 = vadd.f32 %v1565_v2, %v664_v6  ;;  %v1727_v7 = vpop.f32.mrb[5].mxu1 }
 0x1ee   :  { %694 = vst [vmem:[#allocation2 + $0x8] sm:$0xff] %v665_v1 }
 0x1ef   :  { %v669_v8 = vpop.f32.mrb[6].mxu1 }
 0x1f0   :  { %v670_v9 = vadd.f32 %v1565_v2, %v669_v8  ;;  %v1730_v10 = vpop.f32.mrb[7].mxu1  ;;  %v1704_v11 = vpop.f32.mrb[2].mxu0 }
 0x1f1   :  { %547 = vst.msk [vmem:[#allocation6 + $0x8] sm:$0xff] %vm315_vm0, %v1704_v11  ;;  %v507_v12 = vpop.f32.mrb[3].mxu0 }
 0x1f2   :  { %695 = vst [vmem:[#allocation2 + $0x10] sm:$0xff] %v670_v9  ;;  %546 = vst.msk [vmem:[#allocation6] sm:$0xff] %vm315_vm0, %v507_v12 }
 0x1f3   :  { %v674_v13 = vpop.f32.mrb[8].mxu1 }
 0x1f4   :  { %v675_v14 = vadd.f32 %v1565_v2, %v674_v13  ;;  %v1733_v15 = vpop.f32.mrb[9].mxu1  ;;  %v1707_v16 = vpop.f32.mrb[4].mxu0 }
 0x1f5   :  { %549 = vst.msk [vmem:[#allocation6 + $0x18] sm:$0xff] %vm315_vm0, %v1707_v16  ;;  %v517_v17 = vpop.f32.mrb[5].mxu0 }
 0x1f6   :  { %696 = vst [vmem:[#allocation2 + $0x18] sm:$0xff] %v675_v14  ;;  %548 = vst.msk [vmem:[#allocation6 + $0x10] sm:$0xff] %vm315_vm0, %v517_v17 }
 0x1f7   :  { %v679_v18 = vpop.f32.mrb[10].mxu1 }
 0x1f8   :  { %v680_v19 = vadd.f32 %v1565_v2, %v679_v18  ;;  %v1736_v20 = vpop.f32.mrb[11].mxu1  ;;  %v1710_v21 = vpop.f32.mrb[6].mxu0 }
 0x1f9   :  { %551 = vst.msk [vmem:[#allocation6 + $0x28] sm:$0xff] %vm315_vm0, %v1710_v21  ;;  %v527_v22 = vpop.f32.mrb[7].mxu0 }
 0x1fa   :  { %697 = vst [vmem:[#allocation2 + $0x20] sm:$0xff] %v680_v19  ;;  %550 = vst.msk [vmem:[#allocation6 + $0x20] sm:$0xff] %vm315_vm0, %v527_v22 }
 0x1fb   :  { %v684_v23 = vpop.f32.mrb[12].mxu1 }
 0x1fc   :  { %v685_v24 = vadd.f32 %v1565_v2, %v684_v23  ;;  %v1739_v25 = vpop.f32.mrb[13].mxu1  ;;  %v1713_v26 = vpop.f32.mrb[8].mxu0 }
 0x1fd   :  { %553 = vst.msk [vmem:[#allocation6 + $0x38] sm:$0xff] %vm315_vm0, %v1713_v26  ;;  %v537_v27 = vpop.f32.mrb[9].mxu0 }
 0x1fe   :  { %698 = vst [vmem:[#allocation2 + $0x28] sm:$0xff] %v685_v24  ;;  %552 = vst.msk [vmem:[#allocation6 + $0x30] sm:$0xff] %vm315_vm0, %v537_v27 }
 0x1ff   :  { %v689_v28 = vpop.f32.mrb[14].mxu1 }
 0x200   :  { %v690_v29 = vadd.f32 %v1565_v2, %v689_v28  ;;  %v1742_v30 = vpop.f32.mrb[15].mxu1 }
 0x202   :  { %699 = vst [vmem:[#allocation2 + $0x30] sm:$0xff] %v690_v29 }
 0x203 LB: > { %v712_v31 = vld [vmem:[#allocation18] sm:$0xff]  ;;  %v713_v32 = vld [vmem:[#allocation18 + $0x8] sm:$0xff]  ;;  %v714_v33 = vld [vmem:[#allocation18 + $0x10] sm:$0xff]  ;;  %v2331_v34 = vmov 0.0|0.0   ;;  %vm2332_vm3 = vmmov 0   ;;  %v2333_v37 = vmov 0.0   ;;  %v909_v3 = vlaneseq  ;;  %s2310_s13 = sphi %s2715_s13, %s705_s13  }
 0x204   : > { %1841 = vmatprep.subr.bf16.mxu0 %v2331_v34  ;;  %v1842_v35 = vpack.c.bf16 %v713_v32, %v712_v31  ;;  %v715_v36 = vld [vmem:[#allocation18 + $0x18] sm:$0xff]  ;;  %1751 = vmatprep.mubr.msk.f32.mxu0 %vm2332_vm3, %v2333_v37  ;;  %v790_v39 = vld [vmem:[#allocation19] sm:$0xff]  ;;  %v791_v40 = vld [vmem:[#allocation19 + $0x8] sm:$0xff]  ;;  %s1573_s4 = sshll.u32 %s2310_s13, 3  ;;  %s2334_s29 = smov 64   ;;  %vm1066_vm5 = vcmask 7168  }
 0x205   : > { %1853 = vmatprep.subr.bf16.mxu1 %v2331_v34  ;;  %1773 = vmatprep.mubr.msk.f32.mxu1 %vm2332_vm3, %v2333_v37  ;;  %v1845_v38 = vpack.c.bf16 %v715_v36, %v714_v33  ;;  %v708_v41 = vld [vmem:[#allocation5] sm:$0xff]  ;;  %v1848_v42 = vpack.c.bf16 %v791_v40, %v790_v39  ;;  %v793_v44 = vld [vmem:[#allocation19 + $0x18] sm:$0xff]  ;;  %v706_v46 = vld [vmem:[#allocation3] sm:$0xff]  ;;  %s710_s8 = scalar_lea.vmem [#allocation2], %s1573_s4  ;;  %s2335_s7 = smov 32   ;;  %v910_v5 = vshrl.u32 %v909_v3, 7 }
 0x206   : > { %1843 = vmatpush3.bf16.msra.mxu0 %v1842_v35  ;;  %v792_v43 = vld [vmem:[#allocation19 + $0x10] sm:$0xff]  ;;  %v707_v52 = vld [vmem:[#allocation4] sm:$0xff]  ;;  %v2336_v0 = vmov 1966171168   ;;  %v896_v30 = vld [vmem:[#allocation6] sm:$0xff]  ;;  %s2338_s28 = smov 96  }
 0x207   : > { %1844 = vmatprep.subr.bf16.mxu0 %v2331_v34  ;;  %v1851_v45 = vpack.c.bf16 %v793_v44, %v792_v43  ;;  %v907_v2 = vunpack.c.l.s4 %v2336_v0  ;;  %v956_v8 = vsub.s32 0, %v910_v5  ;;  %v897_v32 = vld [vmem:[#allocation6 + $0x8] sm:$0xff]  ;;  %v898_v36 = vld [vmem:[#allocation6 + $0x10] sm:$0xff]  ;;  %v1042_v3 = vld [vmem:[#allocation12] sm:$0xff]  ;;  %vm1425_vm13 = vcmask 1041409   ;;  %s1512_s17 = scalar_lea.vmem [#allocation30], %s1573_s4 }
 0x208   : > { %vm1050_vm4 = vcmp.gt.f32.partialorder %v1042_v3, 0.0  ;;  %vm1427_vm14 = vcmask 1042434   ;;  %vm1429_vm15 = vcmask 1043459   ;;  %vm1431_vm1 = vcmask 1044484   ;;  %s705_s13 = sadd.s32 1, %s2310_s13  }
 0x209   : > { %v711_v47 = vld [vmem:[%s710_s8] sm:$0xff]  ;;  %v908_v4 = vunpack.c.0.s8 %v907_v2  ;;  %v2337_v2 = vmov 0   ;;  %p702_p0 = scmp.ge.s32.totalorder %s705_s13, 7  }
 0x20a   : > { %1846 = vmatpush3.bf16.msra.mxu0 %v1845_v38  ;;  %1912 = vset.pattern.permute.xlu1 %v2337_v2  ;;  %s2339_s5 = smov (%p702_p0), [#allocation30]  }
 0x20b   : > { %1847 = vmatprep.subr.bf16.mxu0 %v2331_v34  ;;  %v911_v6 = vsub.s32 %v908_v4, %v910_v5  ;;  %1913 = vset.pattern.permute.xlu0 %v2337_v2  ;;  %v1043_v4 = vld [vmem:[#allocation12 + $0x8] sm:$0xff]  ;;  %v1044_v5 = vld [vmem:[#allocation12 + $0x10] sm:$0xff]  ;;  %s1527_s11 = sshll.u32 (%p702_p0), %s2339_s5, 4  ;;  %s1528_s11 = int_to_ptr.vmem [resolvable:$true] %s1527_s11 }
 0x20c   : > { %vm1051_vm6 = vcmp.gt.f32.partialorder %v1043_v4, 0.0  ;;  %vm1052_vm7 = vcmp.gt.f32.partialorder %v1044_v5, 0.0  ;;  %s2264_s3 = scalar_lea.vmem (%p702_p0), %s1528_s11, 896  ;;  %p2269_p2 = scmp.lt.s32.totalorder (%p702_p0), %s1528_s11, %s1528_s11 }
 0x20d   : > { %1752 = vmatmul.mubr.msk.f32.vlgmr.msra.gmra.mrb[0].mxu0 %vm315_vm0, %v708_v41  ;;  %v899_v41 = vld [vmem:[#allocation6 + $0x18] sm:$0xff]  ;;  %p2265_p1 = scmp.ne.s32.totalorder (%p702_p0), %s1528_s11, %s2264_s3  ;;  %p2270_p3 = scmp.lt.s32.totalorder (%p702_p0), %s2264_s3, %s2264_s3 }
 0x20e   : > { %1849 = vmatpush3.bf16.msra.mxu0 %v1848_v42  ;;  %1762 = vmatprep.mubr.msk.f32.mxu0 %vm2332_vm3, %v2333_v37 }
 0x20f   : > { %1850 = vmatprep.subr.bf16.mxu0 %v2331_v34  ;;  %p2271_p4 = por (%p702_p0), %p2270_p3, %p2269_p2 }
 0x211   :  { %p2272_p5 = pnand (%p702_p0), %p2271_p4, %p2265_p1 }
 0x212   : > { %1852 = vmatpush3.bf16.msra.mxu0 %v1851_v45  ;;  %v900_v45 = vld [vmem:[#allocation6 + $0x20] sm:$0xff] }
 0x215   : > { %1763 = vmatmul.mubr.msk.f32.vlgmr.msra.gmra.mrb[0].mxu0 %vm315_vm0, %v706_v46 }
 0x2e8   : > { %v863_v48 = vpop.f32.mrb[0].mxu0 }
 0x2e9   : > { %v1871_v49 = vadd.f32 %v863_v48, %v711_v47  ;;  %v1764_v50 = vpop.f32.mrb[1].mxu0 }
 0x2eb   : > { %1914 = vtanh.f32 %v1871_v49  ;;  %v1576_v53 = vmul.f32 -1.442695, %v1871_v49  ;;  %v901_v49 = vld [vmem:[#allocation6 + $0x28] sm:$0xff] }
 0x2ed   : > { %1916 = vpow2.f32 %v1576_v53 }
 0x2f5   : > { %v1915_v51 = vpop.eup %1914 }
 0x2f6   : > { %881 = vrot.lane.b32.xlu0 %v1915_v51, %s2334_s29 }
 0x2f7   : > { %v1917_v54 = vpop.eup %1916 }
 0x2f8   : > { %v871_v55 = vadd.f32 1.0, %v1917_v54 }
 0x2fa   : > { %876 = vrot.lane.b32.xlu0 %v707_v52, %s2335_s7  ;;  %1918 = vrcp.f32 %v871_v55  ;;  %v902_v52 = vld [vmem:[#allocation6 + $0x30] sm:$0xff] }
 0x304   : > { %v1919_v56 = vpop.eup %1918 }
 0x368   : > { %v882_v57 = vpop.permute.xlu0 %881 }
 0x369   : > { %v884_v58 = vmul.f32 %v1919_v56, %v882_v57  ;;  %v903_v57 = vld [vmem:[#allocation6 + $0x38] sm:$0xff] }
 0x36b   : > { %886 = vrot.lane.b32.xlu1 %v884_v58, %s2335_s7 }
 0x36c   : > { %v877_v59 = vpop.permute.xlu0 %876 }
 0x36d   : > { %v879_v60 = vmul.f32 %v1919_v56, %v877_v59 }
 0x3dd   : > { %v887_v61 = vpop.permute.xlu1 %886 }
 0x3de   : > { %v2738_v62 = vadd.f32 %v887_v61, %v879_v60 }
 0x3e0   : > { %1920 = vtanh.f32 %v2738_v62 }
 0x3ea   : > { %v1921_v63 = vpop.eup %1920 }
 0x3eb   : > { %892 = vrot.lane.b32.xlu1 %v1921_v63, %s2334_s29 }
 0x45d   : > { %v893_v1 = vpop.permute.xlu1 %892 }
 0x45e   : > { %v2741_v7 = vmul.f32 %v1919_v56, %v893_v1 }
 0x460   : > { %v905_v9 = vcombine.high %v2741_v7, %v2741_v7  ;;  %v912_v10 = vrot.slane %v2741_v7, %v911_v6 }
 0x462   : > { %v919_v11 = vrot.slane %v905_v9, %v911_v6  ;;  %v920_v12 = vcombine.high %v912_v10, %v912_v10  ;;  %v928_v13 = vrot.slane %v912_v10, %v911_v6 }
 0x464   : > { %v957_v14 = vrot.slane %v928_v13, %v956_v8  ;;  %v942_v15 = vrot.slane %v920_v12, %v911_v6  ;;  %v950_v16 = vcombine.high %v928_v13, %v928_v13  ;;  %v921_v19 = vcombine.high %v919_v11, %v919_v11  ;;  %v1045_v12 = vld [vmem:[#allocation12 + $0x18] sm:$0xff] }
 0x465   : > { %v935_v21 = vrot.slane %v919_v11, %v911_v6  ;;  %vm1053_vm8 = vcmp.gt.f32.partialorder %v1045_v12, 0.0 }
 0x466   : > { %986 = vrot.lane.b32.xlu0 %v957_v14, %s2335_s7  ;;  %v961_v17 = vrot.slane %v942_v15, %v956_v8  ;;  %v952_v18 = vcombine.high %v942_v15, %v942_v15  ;;  %v965_v20 = vrot.slane %v950_v16, %v956_v8  ;;  %v949_v23 = vrot.slane %v921_v19, %v911_v6  ;;  %v1046_v15 = vld [vmem:[#allocation12 + $0x20] sm:$0xff] }
 0x467   : > { %v973_v24 = vrot.slane %v935_v21, %v956_v8  ;;  %v951_v25 = vcombine.high %v935_v21, %v935_v21  ;;  %vm1054_vm9 = vcmp.gt.f32.partialorder %v1046_v15, 0.0 }
 0x468   : > { %988 = vrot.lane.b32.xlu1 %v961_v17, %s2335_s7  ;;  %v969_v22 = vrot.slane %v952_v18, %v956_v8  ;;  %v977_v26 = vrot.slane %v949_v23, %v956_v8  ;;  %v953_v27 = vcombine.high %v949_v23, %v949_v23  ;;  %v1047_v23 = vld [vmem:[#allocation12 + $0x28] sm:$0xff] }
 0x469   : > { %v981_v28 = vrot.slane %v951_v25, %v956_v8  ;;  %vm1055_vm10 = vcmp.gt.f32.partialorder %v1047_v23, 0.0 }
 0x46a   : > { %990 = vrot.lane.b32.xlu0 %v965_v20, %s2335_s7  ;;  %v985_v29 = vrot.slane %v953_v27, %v956_v8 }
 0x46c   : > { %992 = vrot.lane.b32.xlu1 %v969_v22, %s2335_s7 }
 0x46e   : > { %994 = vrot.lane.b32.xlu0 %v973_v24, %s2335_s7  ;;  %v1048_v24 = vld [vmem:[#allocation12 + $0x30] sm:$0xff] }
 0x46f   : > { %vm1056_vm11 = vcmp.gt.f32.partialorder %v1048_v24, 0.0 }
 0x470   : > { %996 = vrot.lane.b32.xlu1 %v977_v26, %s2335_s7 }
 0x472   : > { %998 = vrot.lane.b32.xlu0 %v981_v28, %s2335_s7 }
 0x474   : > { %1000 = vrot.lane.b32.xlu1 %v985_v29, %s2335_s7 }
 0x4d8   : > { %v987_v31 = vpop.permute.xlu0 %986 }
 0x4d9   : > { %v1010_v33 = vmul.f32 %v987_v31, %v896_v30 }
 0x4da   : > { %v989_v35 = vpop.permute.xlu1 %988 }
 0x4db   : > { %v1011_v38 = vmul.f32 %v989_v35, %v897_v32  ;;  %v1018_v39 = vsel %vm315_vm0, %v1010_v33, 0.0 }
 0x4dc   : > { %v991_v40 = vpop.permute.xlu0 %990  ;;  %1019 = vadd.xlane.f32.xlu0 %v1018_v39  ;;  %v1049_v39 = vld [vmem:[#allocation12 + $0x38] sm:$0xff] }
 0x4dd   : > { %v1012_v42 = vmul.f32 %v991_v40, %v898_v36  ;;  %v1021_v43 = vsel %vm315_vm0, %v1011_v38, 0.0  ;;  %vm1057_vm12 = vcmp.gt.f32.partialorder %v1049_v39, 0.0 }
 0x4de   : > { %v993_v44 = vpop.permute.xlu1 %992  ;;  %1022 = vadd.xlane.f32.xlu1 %v1021_v43 }
 0x4df   : > { %v1013_v46 = vmul.f32 %v993_v44, %v899_v41  ;;  %v1024_v47 = vsel %vm315_vm0, %v1012_v42, 0.0 }
 0x4e0   : > { %v995_v48 = vpop.permute.xlu0 %994  ;;  %1025 = vadd.xlane.f32.xlu0 %v1024_v47 }
 0x4e1   : > { %v1014_v50 = vmul.f32 %v995_v48, %v900_v45  ;;  %v1027_v54 = vsel %vm315_vm0, %v1013_v46, 0.0 }
 0x4e2   : > { %v997_v51 = vpop.permute.xlu1 %996 }
 0x4e3   : > { %v1015_v53 = vmul.f32 %v997_v51, %v901_v49  ;;  %v1030_v55 = vsel %vm315_vm0, %v1014_v50, 0.0 }
 0x4e4   : > { %1028 = vadd.xlane.f32.xlu0 %v1027_v54  ;;  %v999_v56 = vpop.permute.xlu0 %998  ;;  %1031 = vadd.xlane.f32.xlu1 %v1030_v55 }
 0x4e5   : > { %v1016_v58 = vmul.f32 %v999_v56, %v902_v52  ;;  %v1033_v61 = vsel %vm315_vm0, %v1015_v53, 0.0 }
 0x4e6   : > { %v1001_v59 = vpop.permute.xlu1 %1000 }
 0x4e7   : > { %v1017_v60 = vmul.f32 %v1001_v59, %v903_v57  ;;  %v1036_v63 = vsel %vm315_vm0, %v1016_v58, 0.0 }
 0x4e8   : > { %1034 = vadd.xlane.f32.xlu0 %v1033_v61  ;;  %1037 = vadd.xlane.f32.xlu1 %v1036_v63 }
 0x4e9   : > { %v1039_v0 = vsel %vm315_vm0, %v1017_v60, 0.0 }
 0x4ec   : > { %1040 = vadd.xlane.f32.xlu0 %v1039_v0 }
 0x569   : > { %v1020_v6 = vpop.xlane.xlu0 %1019 }
 0x56a   : > { %v1058_v1 = vsel %vm1050_vm4, -1e+09, %v1020_v6  ;;  %vm1435_vm4 = vcmask 1046534  }
 0x56b   : > { %v1067_v8 = vsel %vm1066_vm5, %v1058_v1, -inf  ;;  %v1023_v9 = vpop.xlane.xlu1 %1022 }
 0x56c   : > { %v1068_v10 = vrot.slane %v1067_v8, 4  ;;  %v1059_v11 = vsel %vm1051_vm6, -1e+09, %v1023_v9 }
 0x56d   : > { %v1074_v13 = vsel %vm1066_vm5, %v1059_v11, -inf  ;;  %v1026_v14 = vpop.xlane.xlu0 %1025 }
 0x56e   : > { %v1069_v16 = vmax.f32 %v1067_v8, %v1068_v10  ;;  %v1075_v17 = vrot.slane %v1074_v13, 4  ;;  %v1060_v18 = vsel %vm1052_vm7, -1e+09, %v1026_v14 }
 0x56f   : > { %v1081_v19 = vsel %vm1066_vm5, %v1060_v18, -inf }
 0x570   : > { %v1070_v20 = vrot.slane %v1069_v16, 2  ;;  %v1076_v21 = vmax.f32 %v1074_v13, %v1075_v17  ;;  %v1082_v22 = vrot.slane %v1081_v19, 4 }
 0x571   : > { %v1029_v25 = vpop.xlane.xlu0 %1028  ;;  %v1032_v26 = vpop.xlane.xlu1 %1031 }
 0x572   : > { %v1071_v27 = vmax.f32 %v1069_v16, %v1070_v20  ;;  %v1077_v28 = vrot.slane %v1076_v21, 2  ;;  %v1083_v29 = vmax.f32 %v1081_v19, %v1082_v22  ;;  %v1061_v30 = vsel %vm1053_vm8, -1e+09, %v1029_v25 }
 0x573   : > { %v1088_v31 = vsel %vm1066_vm5, %v1061_v30, -inf  ;;  %v2766_v32 = vsel %vm1054_vm9, -1e+09, %v1032_v26 }
 0x574   : > { %v1072_v33 = vrot.slane %v1071_v27, 1  ;;  %v1078_v35 = vmax.f32 %v1076_v21, %v1077_v28  ;;  %v1084_v36 = vrot.slane %v1083_v29, 2  ;;  %v1089_v38 = vrot.slane %v1088_v31, 4 }
 0x575   : > { %v1095_v40 = vsel %vm1066_vm5, %v2766_v32, -inf  ;;  %v1035_v41 = vpop.xlane.xlu0 %1034  ;;  %v1038_v42 = vpop.xlane.xlu1 %1037 }
 0x576   : > { %v1073_v43 = vmax.f32 %v1071_v27, %v1072_v33  ;;  %v1079_v44 = vrot.slane %v1078_v35, 1  ;;  %v1085_v45 = vmax.f32 %v1083_v29, %v1084_v36  ;;  %v1090_v46 = vmax.f32 %v1088_v31, %v1089_v38 }
 0x577   : > { %v1096_v47 = vrot.slane %v1095_v40, 4  ;;  %v1063_v48 = vsel %vm1055_vm10, -1e+09, %v1035_v41  ;;  %v1064_v49 = vsel %vm1056_vm11, -1e+09, %v1038_v42 }
 0x578   : > { %v1123_v50 = vsub.f32 %v1058_v1, %v1073_v43  ;;  %v1080_v51 = vmax.f32 %v1078_v35, %v1079_v44  ;;  %v1086_v52 = vrot.slane %v1085_v45, 1  ;;  %v1091_v53 = vrot.slane %v1090_v46, 2 }
 0x579   : > { %v1097_v54 = vmax.f32 %v1095_v40, %v1096_v47  ;;  %v1102_v55 = vsel %vm1066_vm5, %v1063_v48, -inf  ;;  %v1109_v56 = vsel %vm1066_vm5, %v1064_v49, -inf  ;;  %v1041_v57 = vpop.xlane.xlu0 %1040 }
 0x57a   : > { %v1131_v58 = vmul.f32 1.442695, %v1123_v50  ;;  %v1124_v59 = vsub.f32 %v1059_v11, %v1080_v51  ;;  %v1087_v60 = vmax.f32 %v1085_v45, %v1086_v52  ;;  %v1092_v61 = vmax.f32 %v1090_v46, %v1091_v53 }
 0x57b   : > { %v1098_v63 = vrot.slane %v1097_v54, 2  ;;  %v1103_v0 = vrot.slane %v1102_v55, 4  ;;  %v1110_v2 = vrot.slane %v1109_v56, 4  ;;  %v1065_v3 = vsel %vm1057_vm12, -1e+09, %v1041_v57 }
 0x57c   : > { %1922 = vpow2.f32 %v1131_v58  ;;  %v1133_v4 = vmul.f32 1.442695, %v1124_v59  ;;  %v1125_v5 = vsub.f32 %v1060_v18, %v1087_v60  ;;  %v1093_v6 = vrot.slane %v1092_v61, 1 }
 0x57d   : > { %v1099_v1 = vmax.f32 %v1097_v54, %v1098_v63  ;;  %v1104_v8 = vmax.f32 %v1102_v55, %v1103_v0  ;;  %v1111_v9 = vmax.f32 %v1109_v56, %v1110_v2  ;;  %v1116_v10 = vsel %vm1066_vm5, %v1065_v3, -inf }
 0x57e   : > { %1924 = vpow2.f32 %v1133_v4  ;;  %v1135_v12 = vmul.f32 1.442695, %v1125_v5  ;;  %v1094_v13 = vmax.f32 %v1092_v61, %v1093_v6  ;;  %v1117_v11 = vrot.slane %v1116_v10, 4 }
 0x57f   : > { %v1100_v14 = vrot.slane %v1099_v1, 1  ;;  %v1105_v15 = vrot.slane %v1104_v8, 2  ;;  %v1112_v16 = vrot.slane %v1111_v9, 2 }
 0x580   : > { %1926 = vpow2.f32 %v1135_v12  ;;  %v1126_v17 = vsub.f32 %v1061_v30, %v1094_v13  ;;  %v1118_v19 = vmax.f32 %v1116_v10, %v1117_v11 }
 0x581   : > { %v1101_v20 = vmax.f32 %v1099_v1, %v1100_v14  ;;  %v1106_v21 = vmax.f32 %v1104_v8, %v1105_v15  ;;  %v1113_v22 = vmax.f32 %v1111_v9, %v1112_v16 }
 0x582   : > { %v1137_v18 = vmul.f32 1.442695, %v1126_v17  ;;  %v1119_v23 = vrot.slane %v1118_v19, 2 }
 0x583   : > { %v1127_v24 = vsub.f32 %v2766_v32, %v1101_v20  ;;  %v1107_v25 = vrot.slane %v1106_v21, 1  ;;  %v1114_v26 = vrot.slane %v1113_v22, 1 }
 0x584   : > { %1928 = vpow2.f32 %v1137_v18  ;;  %v1120_v27 = vmax.f32 %v1118_v19, %v1119_v23 }
 0x585   : > { %v1139_v28 = vmul.f32 1.442695, %v1127_v24  ;;  %v1108_v29 = vmax.f32 %v1106_v21, %v1107_v25  ;;  %v1115_v31 = vmax.f32 %v1113_v22, %v1114_v26 }
 0x586   : > { %v2775_v33 = vpop.eup %1922  ;;  %v1121_v35 = vrot.slane %v1120_v27, 1 }
 0x587   : > { %v1147_v30 = vsel %vm1066_vm5, %v2775_v33, 0.0  ;;  %1930 = vpow2.f32 %v1139_v28  ;;  %v1128_v36 = vsub.f32 %v1063_v48, %v1108_v29  ;;  %v1129_v38 = vsub.f32 %v1064_v49, %v1115_v31 }
 0x588   : > { %v2779_v39 = vpop.eup %1924  ;;  %v1148_v40 = vrot.slane %v1147_v30, 4  ;;  %v1122_v32 = vmax.f32 %v1120_v27, %v1121_v35 }
 0x589   : > { %v1154_v41 = vsel %vm1066_vm5, %v2779_v39, 0.0  ;;  %v1141_v42 = vmul.f32 1.442695, %v1128_v36  ;;  %v1143_v43 = vmul.f32 1.442695, %v1129_v38 }
 0x58a   : > { %v2783_v44 = vpop.eup %1926  ;;  %v1149_v45 = vadd.f32 %v1148_v40, %v1147_v30  ;;  %v1155_v46 = vrot.slane %v1154_v41, 4  ;;  %v1130_v47 = vsub.f32 %v1065_v3, %v1122_v32 }
 0x58b   : > { %v1161_v50 = vsel %vm1066_vm5, %v2783_v44, 0.0  ;;  %1932 = vpow2.f32 %v1141_v42 }
 0x58c   : > { %v1150_v48 = vrot.slane %v1149_v45, 2  ;;  %v1156_v49 = vadd.f32 %v1155_v46, %v1154_v41  ;;  %v1162_v51 = vrot.slane %v1161_v50, 4  ;;  %1934 = vpow2.f32 %v1143_v43 }
 0x58d   : > { %v1145_v52 = vmul.f32 1.442695, %v1130_v47 }
 0x58e   : > { %v2787_v53 = vpop.eup %1928  ;;  %v1151_v54 = vadd.f32 %v1150_v48, %v1149_v45  ;;  %v1157_v55 = vrot.slane %v1156_v49, 2  ;;  %v1163_v56 = vadd.f32 %v1162_v51, %v1161_v50 }
 0x58f   : > { %v1168_v57 = vsel %vm1066_vm5, %v2787_v53, 0.0  ;;  %1936 = vpow2.f32 %v1145_v52 }
 0x590   : > { %v1158_v58 = vadd.f32 %v1157_v55, %v1156_v49  ;;  %v1164_v59 = vrot.slane %v1163_v56, 2  ;;  %v1169_v60 = vrot.slane %v1168_v57, 4  ;;  %v1152_v61 = vrot.slane %v1151_v54, 1 }
 0x591   : > { %v1931_v63 = vpop.eup %1930 }
 0x592   : > { %v1165_v0 = vadd.f32 %v1164_v59, %v1163_v56  ;;  %v1170_v2 = vadd.f32 %v1169_v60, %v1168_v57  ;;  %v1175_v3 = vsel %vm1066_vm5, %v1931_v63, 0.0  ;;  %v1153_v4 = vadd.f32 %v1152_v61, %v1151_v54  ;;  %v1339_v60 = vld [vmem:[#allocation28] sm:$0xff]  ;;  %v1340_v61 = vld [vmem:[#allocation28 + $0x8] sm:$0xff] }
 0x593   : > { %v1176_v5 = vrot.slane %v1175_v3, 4  ;;  %v1159_v6 = vrot.slane %v1158_v58, 1 }
 0x594   : > { %v1171_v1 = vrot.slane %v1170_v2, 2  ;;  %1938 = vrcp.f32 %v1153_v4  ;;  %v1166_v8 = vrot.slane %v1165_v0, 1  ;;  %v1342_v4 = vld [vmem:[#allocation28 + $0x18] sm:$0xff] }
 0x595   : > { %v1933_v9 = vpop.eup %1932  ;;  %v1177_v10 = vadd.f32 %v1176_v5, %v1175_v3  ;;  %v1160_v12 = vadd.f32 %v1159_v6, %v1158_v58  ;;  %v1220_v6 = vld [vmem:[#allocation10 + $0x8] sm:$0xff] }
 0x596   : > { %v1935_v13 = vpop.eup %1934  ;;  %v1172_v11 = vadd.f32 %v1171_v1, %v1170_v2  ;;  %v1182_v14 = vsel %vm1066_vm5, %v1933_v9, 0.0  ;;  %v1167_v15 = vadd.f32 %v1166_v8, %v1165_v0  ;;  %v1854_v2 = vpack.c.bf16 %v1340_v61, %v1339_v60  ;;  %v1219_v8 = vld [vmem:[#allocation10] sm:$0xff] }
 0x597   : > { %v1178_v16 = vrot.slane %v1177_v10, 2  ;;  %v1183_v17 = vrot.slane %v1182_v14, 4  ;;  %v1189_v19 = vsel %vm1066_vm5, %v1935_v13, 0.0  ;;  %1940 = vrcp.f32 %v1160_v12  ;;  %v1221_v12 = vld [vmem:[#allocation10 + $0x10] sm:$0xff] }
 0x598   : > { %v1190_v20 = vrot.slane %v1189_v19, 4  ;;  %1942 = vrcp.f32 %v1167_v15  ;;  %v1173_v23 = vrot.slane %v1172_v11, 1  ;;  %1855 = vmatpush3.bf16.msra.mxu1 %v1854_v2 }
 0x599   : > { %v1937_v21 = vpop.eup %1936  ;;  %v1179_v22 = vadd.f32 %v1178_v16, %v1177_v10  ;;  %v1184_v18 = vadd.f32 %v1183_v17, %v1182_v14  ;;  %1856 = vmatprep.subr.bf16.mxu1 %v2331_v34  ;;  %v1223_v17 = vld [vmem:[#allocation10 + $0x20] sm:$0xff] }
 0x59a   : > { %v1191_v24 = vadd.f32 %v1190_v20, %v1189_v19  ;;  %v1196_v25 = vsel %vm1066_vm5, %v1937_v21, 0.0  ;;  %v1174_v36 = vadd.f32 %v1173_v23, %v1172_v11  ;;  %v1222_v20 = vld [vmem:[#allocation10 + $0x18] sm:$0xff]  ;;  %vm1437_vm5 = vcmask 1047559  }
 0x59b   : > { %v1185_v26 = vrot.slane %v1184_v18, 2  ;;  %v1197_v27 = vrot.slane %v1196_v25, 4  ;;  %v1180_v28 = vrot.slane %v1179_v22, 1 }
 0x59c   : > { %v1192_v29 = vrot.slane %v1191_v24, 2 }
 0x59d   : > { %v1186_v31 = vadd.f32 %v1185_v26, %v1184_v18  ;;  %v1198_v35 = vadd.f32 %v1197_v27, %v1196_v25  ;;  %v1181_v30 = vadd.f32 %v1180_v28, %v1179_v22  ;;  %v1224_v25 = vld [vmem:[#allocation10 + $0x28] sm:$0xff] }
 0x59e   : > { %v1939_v38 = vpop.eup %1938  ;;  %v1193_v40 = vadd.f32 %v1192_v29, %v1191_v24 }
 0x59f   : > { %v1199_v32 = vrot.slane %v1198_v35, 2  ;;  %v1211_v41 = vmul.f32 %v1939_v38, %v2775_v33  ;;  %1944 = vrcp.f32 %v1181_v30  ;;  %v1187_v42 = vrot.slane %v1186_v31, 1 }
 0x5a0   : > { %1946 = vrcp.f32 %v1174_v36  ;;  %v1194_v47 = vrot.slane %v1193_v40, 1 }
 0x5a1   : > { %v1941_v43 = vpop.eup %1940  ;;  %v1200_v45 = vadd.f32 %v1199_v32, %v1198_v35  ;;  %1229 = vperm.xlu1 %1912, %v1211_v41   ;;  %v1188_v46 = vadd.f32 %v1187_v42, %v1186_v31 }
 0x5a2   : > { %v1943_v50 = vpop.eup %1942  ;;  %v1212_v48 = vmul.f32 %v1941_v43, %v2779_v39  ;;  %v1195_v51 = vadd.f32 %v1194_v47, %v1193_v40  ;;  %v1225_v40 = vld [vmem:[#allocation10 + $0x30] sm:$0xff] }
 0x5a3   : > { %v1213_v49 = vmul.f32 %v1943_v50, %v2783_v44  ;;  %1948 = vrcp.f32 %v1188_v46  ;;  %v1201_v52 = vrot.slane %v1200_v45, 1 }
 0x5a4   : > { %1234 = vperm.xlu0 %1913, %v1212_v48   ;;  %1950 = vrcp.f32 %v1195_v51  ;;  %v1226_v51 = vld [vmem:[#allocation10 + $0x38] sm:$0xff] }
 0x5a5   : > { %1239 = vperm.xlu1 %1912, %v1213_v49   ;;  %v1202_v33 = vadd.f32 %v1201_v52, %v1200_v45  ;;  %v1331_v52 = vld [vmem:[#allocation27] sm:$0xff] }
 0x5a7   : > { %1952 = vrcp.f32 %v1202_v33 }
 0x5a9   : > { %v1945_v54 = vpop.eup %1944 }
 0x5aa   : > { %v1215_v55 = vmul.f32 %v1945_v54, %v1931_v63  ;;  %v1947_v56 = vpop.eup %1946  ;;  %v1341_v63 = vld [vmem:[#allocation28 + $0x10] sm:$0xff]  ;;  %v1332_v54 = vld [vmem:[#allocation27 + $0x8] sm:$0xff] }
 0x5ab   : > { %v1214_v57 = vmul.f32 %v1947_v56, %v2787_v53  ;;  %v1857_v5 = vpack.c.bf16 %v1342_v4, %v1341_v63  ;;  %v1334_v63 = vld [vmem:[#allocation27 + $0x18] sm:$0xff] }
 0x5ac   : > { %1249 = vperm.xlu1 %1912, %v1215_v55  }
 0x5ad   : > { %v1949_v58 = vpop.eup %1948  ;;  %1858 = vmatpush3.bf16.msra.mxu1 %v1857_v5 }
 0x5ae   : > { %v1216_v59 = vmul.f32 %v1949_v58, %v1933_v9  ;;  %v1951_v39 = vpop.eup %1950  ;;  %1859 = vmatprep.subr.bf16.mxu1 %v2331_v34 }
 0x5af   : > { %v1217_v44 = vmul.f32 %v1951_v39, %v1935_v13 }
 0x5b0   : > { %1244 = vperm.xlu1 %1912, %v1214_v57  }
 0x5b1   : > { %v1953_v0 = vpop.eup %1952 }
 0x5b2   : > { %v1218_v3 = vmul.f32 %v1953_v0, %v1937_v21 }
 0x5b4   : > { %1254 = vperm.xlu1 %1912, %v1216_v59  }
 0x5b8   : > { %1259 = vperm.xlu1 %1912, %v1217_v44   ;;  %v1860_v44 = vpack.c.bf16 %v1332_v54, %v1331_v52 }
 0x5bc   : > { %1264 = vperm.xlu1 %1912, %v1218_v3   ;;  %v1333_v3 = vld [vmem:[#allocation27 + $0x10] sm:$0xff] }
 0x5c0   : > { %1343 = vrot.lane.b32.xlu1 %v2741_v7, %s2335_s7 }
 0x5c4   : > { %1517 = vrot.lane.b32.xlu1 %v2738_v62, %s2338_s28 }
 0x620   : > { %v1230_v53 = vpop.permute.xlu1 %1229 }
 0x621   : > { %v1267_v13 = vmul.f32 %v1230_v53, %v1219_v8 }
 0x623   : > { %v1235_v1 = vpop.permute.xlu0 %1234  ;;  %v1275_v16 = vsel %vm241_vm2, %v1267_v13, 0.0 }
 0x624   : > { %v1240_v9 = vpop.permute.xlu1 %1239  ;;  %v1268_v10 = vmul.f32 %v1235_v1, %v1220_v6  ;;  %v1276_v62 = vrot.slane %v1275_v16, 4 }
 0x625   : > { %v1269_v11 = vmul.f32 %v1240_v9, %v1221_v12 }
 0x626   : > { %v1282_v14 = vsel %vm241_vm2, %v1268_v10, 0.0  ;;  %v1277_v27 = vadd.f32 %v1276_v62, %v1275_v16  ;;  %v1863_v10 = vpack.c.bf16 %v1334_v63, %v1333_v3  ;;  %v1336_v16 = vld [vmem:[#allocation27 + $0x28] sm:$0xff] }
 0x627   : > { %v1283_v19 = vrot.slane %v1282_v14, 4  ;;  %v1289_v7 = vsel %vm241_vm2, %v1269_v11, 0.0 }
 0x628   : > { %v1290_v18 = vrot.slane %v1289_v7, 4  ;;  %v1278_v42 = vrot.slane %v1277_v27, 2 }
 0x629   : > { %v1284_v24 = vadd.f32 %v1283_v19, %v1282_v14 }
 0x62a   : > { %v1291_v35 = vadd.f32 %v1290_v18, %v1289_v7  ;;  %v1279_v56 = vadd.f32 %v1278_v42, %v1277_v27  ;;  %v1337_v27 = vld [vmem:[#allocation27 + $0x30] sm:$0xff] }
 0x62b   : > { %v1250_v15 = vpop.permute.xlu1 %1249  ;;  %v1285_v36 = vrot.slane %v1284_v24, 2 }
 0x62c   : > { %v1271_v21 = vmul.f32 %v1250_v15, %v1223_v17  ;;  %v1292_v46 = vrot.slane %v1291_v35, 2  ;;  %v1280_v53 = vrot.slane %v1279_v56, 1  ;;  %v1335_v15 = vld [vmem:[#allocation27 + $0x20] sm:$0xff] }
 0x62d   : > { %v1286_v50 = vadd.f32 %v1285_v36, %v1284_v24 }
 0x62e   : > { %v1303_v28 = vsel %vm241_vm2, %v1271_v21, 0.0  ;;  %v1293_v59 = vadd.f32 %v1292_v46, %v1291_v35  ;;  %v1281_v7 = vadd.f32 %v1280_v53, %v1279_v56 }
 0x62f   : > { %v1245_v22 = vpop.permute.xlu1 %1244  ;;  %v1304_v32 = vrot.slane %v1303_v28, 4  ;;  %v1287_v60 = vrot.slane %v1286_v50, 1 }
 0x630   : > { %v1270_v23 = vmul.f32 %v1245_v22, %v1222_v20  ;;  %v1294_v9 = vrot.slane %v1293_v59, 1  ;;  %v1866_v22 = vpack.c.bf16 %v1336_v16, %v1335_v15 }
 0x631   : > { %v1305_v33 = vadd.f32 %v1304_v32, %v1303_v28  ;;  %v1288_v12 = vadd.f32 %v1287_v60, %v1286_v50  ;;  %v1338_v28 = vld [vmem:[#allocation27 + $0x38] sm:$0xff] }
 0x632   : > { %v1296_v26 = vsel %vm241_vm2, %v1270_v23, 0.0  ;;  %v1295_v21 = vadd.f32 %v1294_v9, %v1293_v59  ;;  %v1869_v36 = vpack.c.bf16 %v1338_v28, %v1337_v27 }
 0x633   : > { %v1297_v29 = vrot.slane %v1296_v26, 4  ;;  %v1255_v31 = vpop.permute.xlu1 %1254  ;;  %v1306_v4 = vrot.slane %v1305_v33, 2  ;;  %v1426_v18 = vsel %vm1425_vm13, %v1288_v12, %v1281_v7 }
 0x634   : > { %v1272_v30 = vmul.f32 %v1255_v31, %v1224_v25  ;;  %v1428_v31 = vsel %vm1427_vm14, %v1295_v21, %v1426_v18 }
 0x635   : > { %v1298_v38 = vadd.f32 %v1297_v29, %v1296_v26  ;;  %v1307_v17 = vadd.f32 %v1306_v4, %v1305_v33 }
 0x636   : > { %v1310_v41 = vsel %vm241_vm2, %v1272_v30, 0.0 }
 0x637   : > { %v1311_v43 = vrot.slane %v1310_v41, 4  ;;  %v1260_v45 = vpop.permute.xlu1 %1259  ;;  %v1299_v48 = vrot.slane %v1298_v38, 2  ;;  %v1308_v26 = vrot.slane %v1307_v17, 1 }
 0x638   : > { %v1273_v47 = vmul.f32 %v1260_v45, %v1225_v40 }
 0x639   : > { %v1312_v49 = vadd.f32 %v1311_v43, %v1310_v41  ;;  %v1300_v61 = vadd.f32 %v1299_v48, %v1298_v38  ;;  %v1309_v38 = vadd.f32 %v1308_v26, %v1307_v17 }
 0x63a   : > { %v1317_v55 = vsel %vm241_vm2, %v1273_v47, 0.0 }
 0x63b   : > { %v1318_v57 = vrot.slane %v1317_v55, 4  ;;  %v1265_v58 = vpop.permute.xlu1 %1264  ;;  %v1313_v0 = vrot.slane %v1312_v49, 2  ;;  %v1301_v13 = vrot.slane %v1300_v61, 1 }
 0x63c   : > { %v1274_v39 = vmul.f32 %v1265_v58, %v1226_v51 }
 0x63d   : > { %v1319_v2 = vadd.f32 %v1318_v57, %v1317_v55  ;;  %v1314_v11 = vadd.f32 %v1313_v0, %v1312_v49  ;;  %v1302_v23 = vadd.f32 %v1301_v13, %v1300_v61 }
 0x63e   : > { %v1324_v5 = vsel %vm241_vm2, %v1274_v39, 0.0 }
 0x63f   : > { %v1320_v6 = vrot.slane %v1319_v2, 2  ;;  %v1325_v1 = vrot.slane %v1324_v5, 4  ;;  %v1344_v8 = vpop.permute.xlu1 %1343  ;;  %v1315_v24 = vrot.slane %v1314_v11, 1  ;;  %v1430_v35 = vsel %vm1429_vm15, %v1302_v23, %v1428_v31 }
 0x640   : > { %1515 = vst.msk [vmem:[#allocation3] sm:$0xff] %vm315_vm0, %v1344_v8  ;;  %1774 = vmatmul.mubr.msk.f32.vlgmr.msra.gmra.mrb[0].mxu1 %vm315_vm0, %v1344_v8  ;;  %v1432_v41 = vsel %vm1431_vm1, %v1309_v38, %v1430_v35 }
 0x641   : > { %v1326_v14 = vadd.f32 %v1325_v1, %v1324_v5  ;;  %1861 = vmatpush3.bf16.msra.mxu1 %v1860_v44  ;;  %1792 = vmatprep.mubr.msk.f32.mxu1 %vm2332_vm3, %v2333_v37  ;;  %v1321_v19 = vadd.f32 %v1320_v6, %v1319_v2  ;;  %v1316_v30 = vadd.f32 %v1315_v24, %v1314_v11  ;;  %vm1433_vm3 = vcmask 1045509  }
 0x642   : > { %1862 = vmatprep.subr.bf16.mxu1 %v2331_v34 }
 0x643   : > { %v1327_v20 = vrot.slane %v1326_v14, 2  ;;  %v1518_v62 = vpop.permute.xlu1 %1517  ;;  %v1322_v37 = vrot.slane %v1321_v19, 1  ;;  %v1434_v42 = vsel %vm1433_vm3, %v1316_v30, %v1432_v41 }
 0x644   : > { %1520 = vst.msk [vmem:[#allocation4] sm:$0xff] %vm315_vm0, %v1518_v62 }
 0x645   : > { %v1328_v25 = vadd.f32 %v1327_v20, %v1326_v14  ;;  %1864 = vmatpush3.bf16.msra.mxu1 %v1863_v10  ;;  %v1323_v40 = vadd.f32 %v1322_v37, %v1321_v19 }
 0x646   : > { %1865 = vmatprep.subr.bf16.mxu1 %v2331_v34 }
 0x647   : > { %v1329_v29 = vrot.slane %v1328_v25, 1  ;;  %v1436_v43 = vsel %vm1435_vm4, %v1323_v40, %v1434_v42 }
 0x649   : > { %1867 = vmatpush3.bf16.msra.mxu1 %v1866_v22  ;;  %v1330_v32 = vadd.f32 %v1329_v29, %v1328_v25 }
 0x64a   : > { %1868 = vmatprep.subr.bf16.mxu1 %v2331_v34 }
 0x64b   : > { %v1438_v45 = vsel %vm1437_vm5, %v1330_v32, %v1436_v43 }
 0x64d   : > { %1870 = vmatpush3.bf16.msra.mxu1 %v1869_v36 }
 0x650   : > { %1793 = vmatmul.mubr.msk.f32.vlgmr.msra.gmra.mrb[0].mxu1 %vm241_vm2, %v1438_v45 }
 0x723   : > { %v1507_v46 = vpop.f32.mrb[0].mxu1 }
 0x724   : > { %1954 = vtanh.f32 %v1507_v46  ;;  %v1794_v47 = vpop.f32.mrb[1].mxu1 }
 0x729   :  { %704 = sbr.rel (!%p702_p0) target bundleno = 515 (0x203), region = 141 }
 0x72e   : > { %v1955_v50 = vpop.eup %1954 }
 0x72f   : > { %1513 = vst.msk [vmem:[%s1512_s17] sm:$0xff] %vm315_vm0, %v1955_v50  ;;  %1521 = vst.msk [vmem:[#allocation5] sm:$0xff] %vm315_vm0, %v1955_v50 }
 0x730   :  { %2275 = shalt.err (!%p2272_p5)
}
 0x731   :  { %s2276_s2 = scalar_lea.hbm %s2858_s14, 896 }
 0x732   :  { %p2277_p6 = scmp.ne.s32.totalorder %s2858_s14, %s2276_s2  ;;  %p2280_p7 = scmp.lt.u32.totalorder %s2276_s2, %s2858_s14 }
 0x734   :  { %p2282_p8 = pnand %p2280_p7, %p2277_p6 }
 0x736   :  { %2285 = shalt.err (!%p2282_p8)
}
 0x737   :  { %1533 = dma.vmem_to_hbm [thread:$0]  %s1528_s11, 896, %s2858_s14, [#allocation9], %s2314_s25, %s2314_s25, %s2315_s26  }
 0x738   :  { %2306 = dma.done.wait [#allocation9], 896  }
 0x739   :  { %2307 = vsyncadd [#allocation9], 4294966400 }
 0x73a   :  { %1537 = vsyncpa [#allocation8], 1 }
 0x73b   :  { %1538 = vsyncpa [#allocation11], 1 }
 0x73c   :  { %1539 = vsyncpa [#allocation14], 1 }
 0x73d   :  { %1540 = vsyncpa [#allocation17], 1 }
 0x73e   :  { %1541 = vsyncpa [#allocation20], 1 }
 0x73f   :  { %1542 = vsyncpa [#allocation23], 1 }
 0x740   :  { %1543 = vsyncpa [#allocation26], 1 }
 0x741   :  { %1544 = vsyncpa [#allocation29], 1 }
 0x742   :  { %1545 = vsyncpa [#allocation9], 1 }

// kernel: nmt_forward.3
= control target key start
LH: loop header
LB: loop body
LE: loop exit
PB: predicated region body
PF: predicated region fallthrough
CT: control target
= control target key end

     0   :  { %s3648_s0 = inlined_call_operand.hbm [shape: f32[8,8,32], index: 0, kind: input, shape index: {}]   ;;  %s3649_s1 = inlined_call_operand.hbm [shape: s32[8,1], index: 1, kind: input, shape index: {}]   ;;  %s3650_s2 = inlined_call_operand.hbm [shape: f32[2,32,128], index: 2, kind: input, shape index: {}]   ;;  %s3651_s3 = inlined_call_operand.hbm [shape: f32[2,32,128], index: 3, kind: input, shape index: {}]   ;;  %s3652_s4 = inlined_call_operand.hbm [shape: f32[2,1,128], index: 4, kind: input, shape index: {}]   ;;  %s3653_s5 = inlined_call_operand.hbm [shape: f32[2,8,8,32], index: 5, kind: output, shape index: {0}]   ;;  %s3654_s6 = inlined_call_operand.hbm [shape: f32[2,8,32], index: 6, kind: output, shape index: {1}]   ;;  %s3655_s7 = inlined_call_operand.hbm [shape: f32[2,8,32], index: 7, kind: output, shape index: {2}]  }
   0x1   :  { %3679 = sst [smem:[#allocation25_spill]] %s3648_s0 }
   0x2   :  { %3680 = sst [smem:[#allocation26_spill]] %s3649_s1 }
   0x3   :  { %3681 = sst [smem:[#allocation27_spill]] %s3650_s2 }
   0x4   :  { %3682 = sst [smem:[#allocation28_spill]] %s3651_s3 }
   0x5   :  { %3683 = sst [smem:[#allocation29_spill]] %s3652_s4 }
   0x6   :  { %13 = vsyncpa [#allocation6], 0 }
   0x7   :  { %14 = vsyncpa [#allocation9], 0 }
   0x8   :  { %15 = vsyncpa [#allocation7], 0 }
   0x9   :  { %17 = vsyncpa [#allocation7 + $0x1], 0 }
   0xa   :  { %18 = vsyncpa [#allocation15], 0 }
   0xb   :  { %20 = vsyncpa [#allocation15 + $0x1], 0  ;;  %s2910_s24 = smov 0   ;;  %s2912_s25 = smov 0  }
   0xc   :  { %s2914_s26 = smov 0   ;;  %s2916_s27 = smov 0  }
   0xd LB: > { %s2931_s28 = sadd.s32 4294967295, %s2849_s27   ;;  %s3656_s29 = sadd.s32 4294967294, %s2849_s27   ;;  %s2849_s27 = sphi %s2916_s27, %s3734_s27   ;;  %s2845_s26 = sphi %s2914_s26, %s3738_s26   ;;  %s2841_s25 = sphi %s2912_s25, %s3737_s25   ;;  %s2837_s24 = sphi %s2910_s24, %s3736_s24  }
   0xe   : > { %s2935_s30 = sadd.s32 1, %s2849_s27   ;;  %s75_s8 = sadd.s32 1, %s2845_s26 }
   0xf   : > { %3684 = sst [smem:[#allocation22_spill]] %s2935_s30  ;;  %s72_s9 = ssub.s32 %s2849_s27, %s2935_s30 }
  0x10   : > { %p82_p0 = scmp.ne.s32.totalorder %s2845_s26, %s2841_s25  ;;  %p73_p1 = scmp.eq.s32.totalorder %s72_s9, 0 }
  0x11   : > { %p83_p2 = scmp.eq.s32.totalorder %s2849_s27, 0  ;;  %p88_p3 = scmp.ne.s32.totalorder %s2841_s25, %s2837_s24 }
  0x12   : > { %p3657_p4 = scmp.eq.s32.totalorder %s2931_s28, 0  ;;  %p164_p7 = scmp.eq.s32.totalorder %s2931_s28, 1 }
  0x13   : > { %s2947_s10 = scalar_select %p73_p1, %s2845_s26, %s75_s8  }
  0x14   : > { %p2949_p5 = por %p83_p2, %p82_p0  ;;  %p2955_p6 = por %p3657_p4, %p88_p3 }
  0x15   : > { %3685 = sst [smem:[#allocation23_spill]] %s2947_s10  ;;  %p170_p8 = scmp.eq.s32.totalorder %s3656_s29, 1 }
  0x16   : > { %s3686_s11 = scalar_select %p2949_p5, 1, 0 }
  0x17   : > { %s3687_s12 = scalar_select %p2955_p6, 1, 0 }
  0x18   : > { %p2117_p9 = scmp.ge.s32.totalorder %s2849_s27, 1  ;;  %p229_p10 = scmp.lt.s32.totalorder %s2849_s27, 3 }
  0x19   : > { %p2964_p11 = por %p164_p7, %p82_p0  ;;  %p2968_p12 = por %p170_p8, %p88_p3 }
  0x1a   : > { %p2972_p13 = pnand %p2117_p9, %p229_p10  ;;  %s2851_s16 = smov [#allocation5]  }
  0x1b   : > { %s3688_s13 = scalar_select %p2964_p11, 1, 0 }
  0x1c   : > { %s3689_s14 = scalar_select %p2968_p12, 1, 0 }
  0x1d   : > { %s3691_s15 = scalar_select %p2972_p13, 1, 0 }
  0x1e   : > { %3690 = sst [smem:[#allocation24_spill]] %s3689_s14  ;;  %p2425_p1 = pneg %p2972_p13 }
  0x1f   : > { %s241_s17 = sshll.u32 %s2851_s16, 4  ;;  %s266_s19 = sand.u32 1, %s2849_s27   ;;  %s242_s17 = int_to_ptr.vmem [resolvable:$true] %s241_s17 }
  0x20   : > { %p2980_p2 = pnand %p2425_p1, %p3657_p4  ;;  %s3693_s0 = sld [smem:[#allocation25_spill]] }
  0x22   : > { %s3692_s18 = scalar_select %p2980_p2, 1, 0 }
  0x23   : > { %p3668_p8 = pneg %p2980_p2 }
  0x26   : > { %s2569_s22 = scalar_lea.hbm %s3693_s0, 1024 }
  0x27   : > { %p2570_p7 = scmp.ne.s32.totalorder %s3693_s0, %s2569_s22  ;;  %p2576_p1 = scmp.lt.u32.totalorder %s2569_s22, %s3693_s0 }
  0x29   : > { %p2572_p9 = pnand %p3668_p8, %p2570_p7 }
  0x2b   : > { %p2573_p10 = pneg %p2572_p9 }
  0x2d   : > { %p2578_p0 = pnand %p2576_p1, %p2573_p10 }
  0x2f   : > { %2581 = shalt.err (!%p2578_p0)
}
  0x30   : > { %s2582_s29 = scalar_lea.vmem %s242_s17, 1024  ;;  %p2590_p11 = scmp.lt.s32.totalorder %s242_s17, %s242_s17 }
  0x31   : > { %p2583_p4 = scmp.ne.s32.totalorder %s242_s17, %s2582_s29  ;;  %p2591_p6 = scmp.lt.s32.totalorder %s2582_s29, %s2582_s29 }
  0x33   : > { %p2585_p3 = pnand %p2583_p4, %p3668_p8  ;;  %p2592_p13 = por %p2591_p6, %p2590_p11 }
  0x35   : > { %p2586_p12 = pneg %p2585_p3 }
  0x37   : > { %p2593_p5 = pnand %p2592_p13, %p2586_p12 }
  0x39   : > { %2596 = shalt.err (!%p2593_p5)
}
  0x3a   : > { %s3666_s20 = smov 128   ;;  %s3671_s21 = smov 8  }
  0x3b   : > { %2428 = dma.hbm_to_vmem [thread:$0]  (!%p2980_p2), %s3693_s0, 1024, %s242_s17, [#allocation6], %s3666_s20, %s3666_s20, %s3671_s21  }
  0x3c   : > { %p3694_p4 = scmp.ne.s32.totalorder %s3686_s11, 0  ;;  %p3695_p6 = scmp.lt.s32.totalorder %s2849_s27, 2 }
  0x3d   : > { %s3664_s8 = sand.u32 1, %s2845_s26   ;;  %s3665_s16 = sshll.u32 %s2849_s27, 9 }
  0x3e   : > { %p3016_p5 = pnand %p3695_p6, %p3694_p4  ;;  %s3023_s9 = sshll.u32 %s3664_s8, 5 }
  0x3f   : > { %s3697_s2 = sld [smem:[#allocation27_spill]]  ;;  %s270_s11 = scalar_lea.vmem [#allocation10], %s3023_s9 }
  0x40   : > { %s3696_s29 = scalar_select %p3016_p5, 1, 0 }
  0x41   : > { %s277_s17 = sshll.u32 %s270_s11, 4  ;;  %s3036_s22 = scalar_lea.sflag [#allocation6], %s266_s19  ;;  %s3034_s17 = int_to_ptr.vmem [resolvable:$true] %s277_s17 }
  0x42   : > { %p3042_p12 = pneg %p3016_p5 }
  0x44   : > { %s3698_s8 = scalar_select %p3042_p12, 1, 0 }
  0x45   : > { %s3031_s14 = scalar_lea.hbm %s3697_s2, %s3665_s16  ;;  %s2602_s16 = scalar_lea.hbm %s3697_s2, 1024 }
  0x46   : > { %s2597_s23 = scalar_lea.hbm %s3031_s14, 512  ;;  %p2603_p3 = scmp.lt.u32.totalorder %s3031_s14, %s3697_s2 }
  0x47   : > { %p2598_p11 = scmp.ne.s32.totalorder %s3031_s14, %s2597_s23  ;;  %p2604_p7 = scmp.lt.u32.totalorder %s2602_s16, %s2597_s23 }
  0x48   : > { %p2606_p10 = scmp.lt.u32.totalorder %s2597_s23, %s3031_s14 }
  0x49   : > { %p2600_p13 = pnand %p3042_p12, %p2598_p11  ;;  %p2605_p9 = por %p2604_p7, %p2603_p3 }
  0x4b   : > { %p2601_p0 = pneg %p2600_p13  ;;  %p2607_p1 = por %p2606_p10, %p2605_p9 }
  0x4d   : > { %p2608_p4 = pnand %p2607_p1, %p2601_p0 }
  0x4f   : > { %2611 = shalt.err (!%p2608_p4)
}
  0x50   : > { %s2612_s19 = scalar_lea.vmem %s3034_s17, 512  ;;  %s2854_s30 = smov [#allocation10]  }
  0x51   : > { %p2613_p6 = scmp.ne.s32.totalorder %s3034_s17, %s2612_s19  ;;  %s2617_s10 = sshll.u32 %s2854_s30, 4  ;;  %s2618_s10 = int_to_ptr.vmem [resolvable:$false] %s2617_s10 }
  0x52   : > { %s2619_s20 = scalar_lea.vmem %s2618_s10, 1024  ;;  %p2620_p8 = scmp.lt.s32.totalorder %s3034_s17, %s2618_s10 }
  0x53   : > { %p2615_p11 = pnand %p2613_p6, %p3042_p12  ;;  %p2621_p2 = scmp.lt.s32.totalorder %s2619_s20, %s2612_s19 }
  0x55   : > { %p2616_p13 = pneg %p2615_p11  ;;  %p2622_p3 = por %p2621_p2, %p2620_p8 }
  0x57   : > { %p2623_p7 = pnand %p2622_p3, %p2616_p13 }
  0x59   : > { %2626 = shalt.err (!%p2623_p7)
}
  0x5a   : > { %s3699_s16 = smov 128   ;;  %s3700_s23 = sshll.u32 %s2849_s27, 9 }
  0x5b   : > { %2435 = dma.hbm_to_vmem [thread:$0]  (!%p3016_p5), %s3031_s14, 512, %s3034_s17, %s3036_s22, %s3699_s16, %s3699_s16, %s3671_s21  }
  0x5c   : > { %s3701_s3 = sld [smem:[#allocation28_spill]]  ;;  %s291_s10 = scalar_lea.vmem [#allocation11], %s3023_s9 }
  0x5d   : > { %s298_s20 = sshll.u32 %s291_s10, 4  ;;  %s3077_s20 = int_to_ptr.vmem [resolvable:$true] %s298_s20 }
  0x62   : > { %s3074_s19 = scalar_lea.hbm %s3701_s3, %s3700_s23  ;;  %s2632_s21 = scalar_lea.hbm %s3701_s3, 1024 }
  0x63   : > { %s2627_s0 = scalar_lea.hbm %s3074_s19, 512  ;;  %p2633_p9 = scmp.lt.u32.totalorder %s3074_s19, %s3701_s3 }
  0x64   : > { %p2628_p2 = scmp.ne.s32.totalorder %s3074_s19, %s2627_s0  ;;  %p2634_p10 = scmp.lt.u32.totalorder %s2632_s21, %s2627_s0 }
  0x65   : > { %p2636_p4 = scmp.lt.u32.totalorder %s2627_s0, %s3074_s19 }
  0x66   : > { %p2630_p8 = pnand %p2628_p2, %p3042_p12  ;;  %p2635_p1 = por %p2634_p10, %p2633_p9 }
  0x68   : > { %p2631_p0 = pneg %p2630_p8  ;;  %p2637_p6 = por %p2636_p4, %p2635_p1 }
  0x6a   : > { %p2638_p11 = pnand %p2637_p6, %p2631_p0 }
  0x6c   : > { %2641 = shalt.err (!%p2638_p11)
}
  0x6d   : > { %s2642_s9 = scalar_lea.vmem %s3077_s20, 512  ;;  %s2855_s30 = smov [#allocation11]  }
  0x6e   : > { %p2643_p13 = scmp.ne.s32.totalorder %s3077_s20, %s2642_s9  ;;  %s2647_s10 = sshll.u32 %s2855_s30, 4  ;;  %s2648_s10 = int_to_ptr.vmem [resolvable:$false] %s2647_s10 }
  0x6f   : > { %s2649_s14 = scalar_lea.vmem %s2648_s10, 1024  ;;  %p2650_p2 = scmp.lt.s32.totalorder %s3077_s20, %s2648_s10 }
  0x70   : > { %p2645_p3 = pnand %p2643_p13, %p3042_p12  ;;  %p2651_p8 = scmp.lt.s32.totalorder %s2649_s14, %s2642_s9 }
  0x72   : > { %p2646_p7 = pneg %p2645_p3  ;;  %p2652_p9 = por %p2651_p8, %p2650_p2 }
  0x74   : > { %p2653_p10 = pnand %p2652_p9, %p2646_p7 }
  0x76   : > { %2656 = shalt.err (!%p2653_p10)
}
  0x77   : > { %s3702_s0 = smov 8   ;;  %s2856_s21 = smov [#allocation8]  }
  0x78   : > { %2438 = dma.hbm_to_vmem [thread:$0]  (!%p3016_p5), %s3074_s19, 512, %s3077_s20, %s3036_s22, %s3699_s16, %s3699_s16, %s3702_s0  }
  0x79   : > { %s255_s17 = sshll.u32 %s2856_s21, 4  ;;  %s2127_s11 = sshll.u32 %s2849_s27, 4  ;;  %s256_s17 = int_to_ptr.vmem [resolvable:$true] %s255_s17 }
  0x7a   : > { %s3703_s1 = sld [smem:[#allocation26_spill]]  ;;  %p3704_p1 = scmp.ne.s32.totalorder %s3692_s18, 0 }
  0x7c   : > { %p3705_p4 = pneg %p3704_p1 }
  0x80   : > { %s2657_s30 = scalar_lea.hbm %s3703_s1, 128 }
  0x81   : > { %p2658_p0 = scmp.ne.s32.totalorder %s3703_s1, %s2657_s30  ;;  %p2664_p13 = scmp.lt.u32.totalorder %s2657_s30, %s3703_s1 }
  0x83   : > { %p2660_p6 = pnand %p2658_p0, %p3705_p4 }
  0x85   : > { %p2661_p11 = pneg %p2660_p6 }
  0x87   : > { %p2666_p3 = pnand %p2664_p13, %p2661_p11 }
  0x89   : > { %2669 = shalt.err (!%p2666_p3)
}
  0x8a   : > { %s2670_s16 = scalar_lea.vmem %s256_s17, 128  ;;  %p3706_p2 = pmov %p3705_p4 }
  0x8b   : > { %p2671_p7 = scmp.ne.s32.totalorder %s256_s17, %s2670_s16  ;;  %p2678_p10 = scmp.lt.s32.totalorder %s256_s17, %s256_s17 }
  0x8c   : > { %p2679_p5 = scmp.lt.s32.totalorder %s2670_s16, %s2670_s16 }
  0x8d   : > { %p2673_p8 = pnand %p2671_p7, %p3706_p2 }
  0x8e   : > { %p2680_p12 = por %p2679_p5, %p2678_p10 }
  0x8f   : > { %p2674_p9 = pneg %p2673_p8 }
  0x91   : > { %p2681_p0 = pnand %p2680_p12, %p2674_p9 }
  0x93   : > { %2684 = shalt.err (!%p2681_p0)
}
  0x94   : > { %2431 = dma.hbm_to_vmem [thread:$0]  (!%p3704_p1), %s3703_s1, 128, %s256_s17, [#allocation9]  }
  0x95   : > { %s3707_s4 = sld [smem:[#allocation29_spill]]  ;;  %s3708_s21 = sand.u32 1, %s2845_s26  }
  0x96   : > { %s311_s23 = scalar_lea.vmem [#allocation12], %s3708_s21  ;;  %p3709_p12 = scmp.ne.s32.totalorder %s3698_s8, 0 }
  0x97   : > { %s318_s9 = sshll.u32 %s311_s23, 4  ;;  %s319_s9 = int_to_ptr.vmem [resolvable:$true] %s318_s9 }
  0x9b   : > { %s3128_s0 = scalar_lea.hbm %s3707_s4, %s2127_s11  ;;  %s2690_s10 = scalar_lea.hbm %s3707_s4, 32 }
  0x9c   : > { %s2685_s18 = scalar_lea.hbm %s3128_s0, 16  ;;  %p2691_p1 = scmp.lt.u32.totalorder %s3128_s0, %s3707_s4 }
  0x9d   : > { %p2686_p5 = scmp.ne.s32.totalorder %s3128_s0, %s2685_s18  ;;  %p2692_p11 = scmp.lt.u32.totalorder %s2690_s10, %s2685_s18 }
  0x9e   : > { %p2694_p3 = scmp.lt.u32.totalorder %s2685_s18, %s3128_s0 }
  0x9f   : > { %p2688_p4 = pnand %p2686_p5, %p3709_p12  ;;  %p2693_p13 = por %p2692_p11, %p2691_p1 }
  0xa1   : > { %p2689_p6 = pneg %p2688_p4  ;;  %p2695_p7 = por %p2694_p3, %p2693_p13 }
  0xa3   : > { %p2696_p2 = pnand %p2695_p7, %p2689_p6 }
  0xa5   : > { %2699 = shalt.err (!%p2696_p2)
}
  0xa6   : > { %s2700_s16 = scalar_lea.vmem %s319_s9, 16  ;;  %s2857_s19 = smov [#allocation12]  }
  0xa7   : > { %p2701_p8 = scmp.ne.s32.totalorder %s319_s9, %s2700_s16  ;;  %s2705_s20 = sshll.u32 %s2857_s19, 4  ;;  %s2706_s20 = int_to_ptr.vmem [resolvable:$false] %s2705_s20 }
  0xa8   : > { %s2707_s2 = scalar_lea.vmem %s2706_s20, 32  ;;  %p2708_p0 = scmp.lt.s32.totalorder %s319_s9, %s2706_s20 }
  0xa9   : > { %p2703_p9 = pnand %p2701_p8, %p3709_p12  ;;  %p2709_p5 = scmp.lt.s32.totalorder %s2707_s2, %s2700_s16 }
  0xab   : > { %p2704_p10 = pneg %p2703_p9  ;;  %p2710_p4 = por %p2709_p5, %p2708_p0 }
  0xad   : > { %p2711_p1 = pnand %p2710_p4, %p2704_p10 }
  0xaf   : > { %2714 = shalt.err (!%p2711_p1)
}
  0xb0   : > { %p3710_p11 = scmp.ne.s32.totalorder %s3696_s29, 0  ;;  %p3711_p6 = scmp.ne.s32.totalorder %s3691_s15, 0 }
  0xb1   : > { %p3712_p12 = scmp.eq.s32.totalorder (!%p3711_p6), %s2931_s28, 0 }
  0xb2   : > { %2441 = dma.hbm_to_vmem [thread:$0]  (!%p3710_p11), %s3128_s0, 16, %s319_s9, %s3036_s22  }
  0xb3   : > { %327 = sbr.rel (%p3711_p6) target bundleno = 6011 (0x177b), region = 40 }
  0xba   : > { %2816 = dma.done.wait (%p3712_p12), [#allocation6], 1024   ;;  %p3713_p13 = pmov %p3712_p12 }
  0xbb   : > { %p3714_p3 = pmov %p3712_p12 }
  0xbc   : > { %2818 = vsyncadd (%p3713_p13), [#allocation6], 4294966272 }
  0xbd   : > { %2820 = dma.done.wait (%p3714_p3), [#allocation9], 128   ;;  %p3715_p7 = pmov %p3714_p3 }
  0xbe   : > { %s3675_s29 = sand.u32 1, %s2931_s28   ;;  %s3162_s8 = sand.u32 1, %s2841_s25  }
  0xbf   : > { %2822 = vsyncadd (%p3715_p7), [#allocation9], 4294967168  ;;  %s2131_s15 = sshll.u32 %s3162_s8, 5  ;;  %s338_s22 = scalar_lea.sflag [#allocation6], %s3675_s29 }
  0xc0   : > { %s341_s3 = scalar_lea.vmem [#allocation10], %s2131_s15  ;;  %p3716_p2 = scmp.ne.s32.totalorder %s3687_s12, 0 }
  0xc2   : > { %2824 = dma.done.wait (%p3716_p2), %s338_s22, 1040  }
  0xc3   : > { %2826 = vsyncadd (%p3716_p2), %s338_s22, 4294966256  ;;  %vm427_vm0 = vcmask 261120   ;;  %v2858_v0 = vmov 0.0|0.0   ;;  %vm2859_vm1 = vmmov 0   ;;  %v2860_v1 = vmov 0.0   ;;  %v416_v2 = vld [vmem:[%s341_s3] sm:$0xff]  ;;  %p3717_p8 = pmov %p3714_p3  ;;  %p3718_p9 = pmov %p3714_p3 }
  0xc4   : > { %2357 = vmatprep.subr.bf16.mxu1 %v2858_v0  ;;  %2269 = vmatprep.mubr.msk.f32.mxu1 %vm2859_vm1, %v2860_v1  ;;  %565 = vst.msk [vmem:[#allocation3] sm:$0xff] %vm427_vm0, %v2860_v1  ;;  %566 = vst.msk [vmem:[#allocation4] sm:$0xff] %vm427_vm0, %v2860_v1  ;;  %v417_v3 = vld [vmem:[%s341_s3 + $0x8] sm:$0xff]  ;;  %v418_v4 = vld [vmem:[%s341_s3 + $0x10] sm:$0xff]  ;;  %s350_s12 = scalar_lea.vmem [#allocation11], %s2131_s15  ;;  %v2861_v23 = vmov 0   ;;  %p3719_p10 = pmov %p3714_p3 }
  0xc5   : > { %v2349_v5 = vpack.c.bf16 %v417_v3, %v416_v2  ;;  %v419_v6 = vld [vmem:[%s341_s3 + $0x18] sm:$0xff]  ;;  %v579_v9 = vld [vmem:[%s350_s12] sm:$0xff]  ;;  %v580_v10 = vld [vmem:[%s350_s12 + $0x8] sm:$0xff]  ;;  %2504 = vset.pattern.permute.xlu0 %v2861_v23  ;;  %2503 = vset.pattern.permute.xlu1 %v2861_v23  ;;  %s358_s0 = scalar_lea.vmem [#allocation12], %s3162_s8  ;;  %s2862_s18 = smov 64  }
  0xc6   : > { %v408_v7 = vld [vmem:[#allocation5] sm:$0xff]  ;;  %v2353_v8 = vpack.c.bf16 %v419_v6, %v418_v4  ;;  %v581_v11 = vld [vmem:[%s350_s12 + $0x10] sm:$0xff]  ;;  %v3179_v12 = vpack.c.bf16 %v580_v10, %v579_v9  ;;  %v409_v15 = vld [vmem:[#allocation5 + $0x8] sm:$0xff]  ;;  %s3214_s21 = scalar_select %p3717_p8, 0, 7 }
  0xc7   : > { %2249 = vmatprep.mubr.msk.f32.mxu0 %vm427_vm0, %v408_v7  ;;  %2350 = vmatprep.subr.bf16.mxu0 %v2349_v5  ;;  %v582_v13 = vld [vmem:[%s350_s12 + $0x18] sm:$0xff]  ;;  %v410_v16 = vld [vmem:[#allocation5 + $0x10] sm:$0xff]  ;;  %v411_v18 = vld [vmem:[#allocation5 + $0x18] sm:$0xff]  ;;  %s2863_s30 = smov 32   ;;  %s2864_s17 = smov 96  }
  0xc8   : > { %2352 = vmatpush3.bf16.msra.mxu0 %v2349_v5  ;;  %2359 = vmatpush3.bf16.msra.mxu1 %v3179_v12  ;;  %v3182_v14 = vpack.c.bf16 %v582_v13, %v581_v11  ;;  %v412_v19 = vld [vmem:[#allocation5 + $0x20] sm:$0xff]  ;;  %v413_v20 = vld [vmem:[#allocation5 + $0x28] sm:$0xff]  ;;  %v414_v21 = vld [vmem:[#allocation5 + $0x30] sm:$0xff]  ;;  %s2146_s23 = sshll.u32 %s3214_s21, 3  ;;  %v572_v47 = vstv %s3214_s21  ;;  %p3720_p0 = pmov %p3714_p3 }
  0xc9   : > { %2354 = vmatprep.subr.bf16.mxu0 %v2353_v8  ;;  %2360 = vmatprep.subr.bf16.mxu1 %v2858_v0  ;;  %v415_v22 = vld [vmem:[#allocation5 + $0x38] sm:$0xff]  ;;  %v2136_v24 = vld [vmem:[%s358_s0] ss:$0 sm:$0xff]  ;;  %s577_s9 = scalar_lea.vmem [#allocation2], %s2146_s23  ;;  %v3219_v46 = vld [vmem:[#allocation8] sm:$0xff]  ;;  %s2134_s21 = sshll.u32 %s3162_s8, 3 }
  0xca   : > { %vm573_vm2 = vcmp.lt.s32.totalorder %v572_v47, %v3219_v46  ;;  %s3243_s10 = scalar_select %p3718_p9, 1, 6 }
  0xcb   : > { %v3188_v17 = vld [vmem:[#allocation3] sm:$0xff]  ;;  %v570_v48 = vld [vmem:[#allocation4] sm:$0xff]  ;;  %v2145_v49 = vsel %vm573_vm2, 1.0, %v2860_v1  ;;  %s3277_s16 = scalar_select %p3719_p10, 2, 5 }
  0xcc   : > { %2356 = vmatpush3.bf16.msra.mxu0 %v2353_v8  ;;  %2362 = vmatpush3.bf16.msra.mxu1 %v3182_v14  ;;  %v691_v56 = vsub.f32 1.0, %v2145_v49  ;;  %s2150_s14 = sshll.u32 %s3243_s10, 3  ;;  %p3721_p5 = pmov %p3720_p0 }
  0xcd   : > { %2369 = vmatprep.subr.bf16.mxu0 %v2858_v0  ;;  %2363 = vmatprep.subr.bf16.mxu1 %v2858_v0  ;;  %s736_s11 = scalar_lea.vmem [#allocation2], %s2150_s14  ;;  %s2154_s19 = sshll.u32 %s3277_s16, 3 }
  0xce   : > { %s895_s20 = scalar_lea.vmem [#allocation2], %s2154_s19  ;;  %p3722_p4 = pmov %p3720_p0 }
  0xcf   : > { %2250 = vmatmul.mubr.msk.f32.vlgmr.msra.gmra.mrb[0].mxu0 %vm427_vm0, %v409_v15  ;;  %2270 = vmatmul.mubr.msk.f32.vlgmr.msra.gmra.mrb[0].mxu1 %vm427_vm0, %v3188_v17  ;;  %s3311_s2 = scalar_select %p3720_p0, 3, 4 }
  0xd0   : > { %2252 = vmatprep.mubr.msk.f32.mxu0 %vm427_vm0, %v410_v16  ;;  %2371 = vmatpush3.bf16.msra.mxu0 %v3179_v12  ;;  %v731_v16 = vstv %s3243_s10  ;;  %s3345_s3 = scalar_select %p3721_p5, 4, 3 }
  0xd1   : > { %2372 = vmatprep.subr.bf16.mxu0 %v2858_v0  ;;  %2365 = vmatpush3.bf16.msra.mxu1 %v3179_v12  ;;  %vm732_vm3 = vcmp.lt.s32.totalorder %v731_v16, %v3219_v46  ;;  %s3676_s15 = sshll.u32 %s3311_s2, 3  ;;  %p3723_p1 = pmov %p3720_p0 }
  0xd2   : > { %2366 = vmatprep.subr.bf16.mxu1 %v2858_v0  ;;  %2280 = vmatprep.mubr.msk.f32.mxu1 %vm2859_vm1, %v2860_v1  ;;  %s1054_s22 = scalar_lea.vmem [#allocation2], %s3676_s15  ;;  %s2162_s12 = sshll.u32 %s3345_s3, 3 }
  0xd3   : > { %2253 = vmatmul.mubr.msk.f32.gmra.mrb[2].mxu0 %vm427_vm0, %v411_v18  ;;  %v2149_v18 = vsel %vm732_vm3, 1.0, %v2860_v1  ;;  %s1213_s0 = scalar_lea.vmem [#allocation2], %s2162_s12  ;;  %p3724_p11 = pmov %p3720_p0 }
  0xd4   : > { %2255 = vmatprep.mubr.msk.f32.mxu0 %vm427_vm0, %v412_v19  ;;  %2374 = vmatpush3.bf16.msra.mxu0 %v3182_v14  ;;  %p3728_p12 = scmp.ne.s32.totalorder %s3688_s13, 0 }
  0xd5   : > { %2381 = vmatprep.subr.bf16.mxu0 %v2858_v0  ;;  %2368 = vmatpush3.bf16.msra.mxu1 %v3182_v14 }
  0xd6   : > { %2375 = vmatprep.subr.bf16.mxu1 %v2858_v0 }
  0xd7   : > { %2256 = vmatmul.mubr.msk.f32.gmra.mrb[4].mxu0 %vm427_vm0, %v413_v20  ;;  %v850_v20 = vsub.f32 1.0, %v2149_v18 }
  0xd8   : > { %2258 = vmatprep.mubr.msk.f32.mxu0 %vm427_vm0, %v414_v21 }
  0xdb   : > { %2259 = vmatmul.mubr.msk.f32.gmra.mrb[6].mxu0 %vm427_vm0, %v415_v22 }
  0xdc   : > { %2291 = vmatprep.mubr.msk.f32.mxu0 %vm2859_vm1, %v2860_v1 }
 0x1a2   : > { %v2251_v25 = vpop.f32.mrb[0].mxu0  ;;  %v652_v29 = vpop.f32.mrb[0].mxu1 }
 0x1a3   : > { %v524_v26 = vadd.f32 %v2251_v25, %v2136_v24  ;;  %v518_v27 = vpop.f32.mrb[1].mxu0  ;;  %v2271_v31 = vpop.f32.mrb[1].mxu1 }
 0x1a4   : > { %v519_v28 = vadd.f32 %v2136_v24, %v518_v27 }
 0x1a5   : > { %558 = vst [vmem:[#allocation2 + $0x8] sm:$0xff] %v524_v26 }
 0x1a6   : > { %557 = vst [vmem:[#allocation2] sm:$0xff] %v519_v28  ;;  %v2254_v30 = vpop.f32.mrb[2].mxu0 }
 0x1a7   : > { %v534_v32 = vadd.f32 %v2254_v30, %v2136_v24  ;;  %v528_v33 = vpop.f32.mrb[3].mxu0 }
 0x1a8   : > { %v529_v34 = vadd.f32 %v2136_v24, %v528_v33 }
 0x1a9   : > { %560 = vst [vmem:[#allocation2 + $0x18] sm:$0xff] %v534_v32 }
 0x1aa   : > { %559 = vst [vmem:[#allocation2 + $0x10] sm:$0xff] %v529_v34  ;;  %v2257_v35 = vpop.f32.mrb[4].mxu0 }
 0x1ab   : > { %v544_v36 = vadd.f32 %v2257_v35, %v2136_v24  ;;  %v538_v37 = vpop.f32.mrb[5].mxu0 }
 0x1ac   : > { %v539_v38 = vadd.f32 %v2136_v24, %v538_v37 }
 0x1ad   : > { %562 = vst [vmem:[#allocation2 + $0x28] sm:$0xff] %v544_v36 }
 0x1ae   : > { %561 = vst [vmem:[#allocation2 + $0x20] sm:$0xff] %v539_v38  ;;  %v2260_v39 = vpop.f32.mrb[6].mxu0 }
 0x1af   : > { %v554_v40 = vadd.f32 %v2260_v39, %v2136_v24  ;;  %v548_v41 = vpop.f32.mrb[7].mxu0 }
 0x1b0   : > { %v549_v42 = vadd.f32 %v2136_v24, %v548_v41 }
 0x1b1   : > { %564 = vst [vmem:[#allocation2 + $0x38] sm:$0xff] %v554_v40 }
 0x1b2   : > { %563 = vst [vmem:[#allocation2 + $0x30] sm:$0xff] %v549_v42 }
 0x1b9   : > { %v578_v43 = vld [vmem:[%s577_s9] sm:$0xff]  ;;  %s3378_s9 = scalar_select %p3722_p4, 5, 2 }
 0x1ba   : > { %v656_v44 = vadd.f32 %v652_v29, %v578_v43  ;;  %v737_v21 = vld [vmem:[%s736_s11] sm:$0xff] }
 0x1bb   : > { %s2166_s11 = sshll.u32 %s3378_s9, 3 }
 0x1bc   : > { %2505 = vtanh.f32 %v656_v44  ;;  %v2148_v50 = vmul.f32 -1.442695, %v656_v44 }
 0x1be   : > { %2507 = vpow2.f32 %v2148_v50 }
 0x1c6   : > { %v2506_v45 = vpop.eup %2505 }
 0x1c7   : > { %670 = vrot.lane.b32.xlu0 %v2506_v45, %s2862_s18 }
 0x1c8   : > { %v2508_v51 = vpop.eup %2507 }
 0x1c9   : > { %v660_v52 = vadd.f32 1.0, %v2508_v51 }
 0x1cb   : > { %665 = vrot.lane.b32.xlu0 %v570_v48, %s2863_s30  ;;  %2509 = vrcp.f32 %v660_v52  ;;  %v890_v52 = vstv %s3277_s16 }
 0x1cc   : > { %vm891_vm4 = vcmp.lt.s32.totalorder %v890_v52, %v3219_v46 }
 0x1cf   : > { %687 = vperm.xlu0 %2504, %v2145_v49  }
 0x1d5   : > { %v2510_v53 = vpop.eup %2509 }
 0x239   : > { %v671_v54 = vpop.permute.xlu0 %670 }
 0x23a   : > { %v673_v55 = vmul.f32 %v2510_v53, %v671_v54  ;;  %v2153_v54 = vsel %vm891_vm4, 1.0, %v2860_v1 }
 0x23c   : > { %675 = vrot.lane.b32.xlu1 %v673_v55, %s2863_s30 }
 0x23d   : > { %v666_v57 = vpop.permute.xlu0 %665 }
 0x23e   : > { %v668_v58 = vmul.f32 %v2510_v53, %v666_v57  ;;  %v896_v57 = vld [vmem:[%s895_s20] sm:$0xff]  ;;  %s1372_s20 = scalar_lea.vmem [#allocation2], %s2166_s11 }
 0x240   : > { %694 = vperm.xlu1 %2503, %v691_v56   ;;  %v1009_v56 = vsub.f32 1.0, %v2153_v54 }
 0x24e   : > { %v3231_v5 = vpop.permute.xlu0 %687 }
 0x2ae   : > { %v676_v59 = vpop.permute.xlu1 %675 }
 0x2af   : > { %v678_v60 = vadd.f32 %v676_v59, %v668_v58 }
 0x2b1   : > { %2511 = vtanh.f32 %v678_v60  ;;  %v703_v9 = vmul.f32 %v3231_v5, %v678_v60 }
 0x2bb   : > { %v2512_v61 = vpop.eup %2511 }
 0x2bc   : > { %681 = vrot.lane.b32.xlu1 %v2512_v61, %s2862_s18 }
 0x2bf   : > { %v695_v62 = vpop.permute.xlu1 %694 }
 0x2c0   : > { %v697_v63 = vmul.f32 %v695_v62, %v3188_v17  ;;  %v704_v2 = vmul.f32 %v695_v62, %v570_v48 }
 0x2c2   : > { %699 = vrot.lane.b32.xlu1 %v697_v63, %s2864_s17 }
 0x2c6   : > { %706 = vrot.lane.b32.xlu1 %v704_v2, %s2863_s30 }
 0x32e   : > { %v682_v3 = vpop.permute.xlu1 %681 }
 0x32f   : > { %v684_v4 = vmul.f32 %v2510_v53, %v682_v3 }
 0x331   : > { %v690_v6 = vmul.f32 %v3231_v5, %v684_v4 }
 0x334   : > { %v700_v7 = vpop.permute.xlu1 %699 }
 0x335   : > { %v3234_v8 = vadd.f32 %v700_v7, %v690_v6 }
 0x337   : > { %711 = vrot.lane.b32.xlu0 %v3234_v8, %s2863_s30 }
 0x338   : > { %v707_v10 = vpop.permute.xlu1 %706 }
 0x339   : > { %v709_v11 = vadd.f32 %v707_v10, %v703_v9 }
 0x33b   : > { %716 = vrot.lane.b32.xlu0 %v709_v11, %s2864_s17 }
 0x3a9   : > { %v712_v13 = vpop.permute.xlu0 %711 }
 0x3aa   : > { %714 = vst.msk [vmem:[#allocation3] sm:$0xff] %vm427_vm0, %v712_v13 }
 0x3ad   : > { %v717_v15 = vpop.permute.xlu0 %716 }
 0x3ae   : > { %719 = vst.msk [vmem:[#allocation4] sm:$0xff] %vm427_vm0, %v717_v15 }
 0x3b1   : > { %v728_v17 = vld [vmem:[#allocation3] sm:$0xff] }
 0x3b2   : > { %2281 = vmatmul.mubr.msk.f32.vlgmr.msra.gmra.mrb[2].mxu1 %vm427_vm0, %v728_v17 }
 0x3b3   : > { %2377 = vmatpush3.bf16.msra.mxu1 %v3179_v12  ;;  %2302 = vmatprep.mubr.msk.f32.mxu1 %vm2859_vm1, %v2860_v1 }
 0x3b4   : > { %2378 = vmatprep.subr.bf16.mxu1 %v2858_v0 }
 0x3b5   : > { %v729_v19 = vld [vmem:[#allocation4] sm:$0xff] }
 0x3b6   : > { %824 = vrot.lane.b32.xlu0 %v729_v19, %s2863_s30 }
 0x3b7   : > { %2380 = vmatpush3.bf16.msra.mxu1 %v3182_v14 }
 0x3b8   : > { %2387 = vmatprep.subr.bf16.mxu1 %v2858_v0 }
 0x3ba   : > { %853 = vperm.xlu0 %2504, %v850_v20  }
 0x428   : > { %v825_v32 = vpop.permute.xlu0 %824 }
 0x439   : > { %v854_v33 = vpop.permute.xlu0 %853 }
 0x43a   : > { %v856_v34 = vmul.f32 %v854_v33, %v728_v17  ;;  %v863_v35 = vmul.f32 %v854_v33, %v729_v19 }
 0x485   : > { %v811_v22 = vpop.f32.mrb[2].mxu1 }
 0x486   : > { %v815_v23 = vadd.f32 %v811_v22, %v737_v21  ;;  %v2282_v24 = vpop.f32.mrb[3].mxu1 }
 0x488   : > { %2513 = vtanh.f32 %v815_v23  ;;  %v2152_v26 = vmul.f32 -1.442695, %v815_v23 }
 0x48a   : > { %2515 = vpow2.f32 %v2152_v26 }
 0x492   : > { %v2514_v25 = vpop.eup %2513 }
 0x493   : > { %829 = vrot.lane.b32.xlu1 %v2514_v25, %s2862_s18 }
 0x494   : > { %v2516_v27 = vpop.eup %2515 }
 0x495   : > { %v819_v28 = vadd.f32 1.0, %v2516_v27 }
 0x497   : > { %2517 = vrcp.f32 %v819_v28 }
 0x4a1   : > { %v2518_v29 = vpop.eup %2517 }
 0x4a2   : > { %v827_v36 = vmul.f32 %v2518_v29, %v825_v32 }
 0x505   : > { %v830_v30 = vpop.permute.xlu1 %829 }
 0x506   : > { %v832_v31 = vmul.f32 %v2518_v29, %v830_v30 }
 0x508   : > { %834 = vrot.lane.b32.xlu1 %v832_v31, %s2863_s30 }
 0x50c   : > { %846 = vperm.xlu1 %2503, %v2149_v18  }
 0x510   : > { %858 = vrot.lane.b32.xlu1 %v856_v34, %s2864_s17  ;;  %v1055_v34 = vld [vmem:[%s1054_s22] sm:$0xff]  ;;  %s3411_s22 = scalar_select %p3723_p1, 6, 1 }
 0x514   : > { %865 = vrot.lane.b32.xlu1 %v863_v35, %s2863_s30 }
 0x57a   : > { %v835_v37 = vpop.permute.xlu1 %834 }
 0x57b   : > { %v837_v38 = vadd.f32 %v835_v37, %v827_v36 }
 0x57d   : > { %2519 = vtanh.f32 %v837_v38 }
 0x587   : > { %v2520_v39 = vpop.eup %2519 }
 0x588   : > { %840 = vrot.lane.b32.xlu0 %v2520_v39, %s2862_s18 }
 0x58b   : > { %v3265_v40 = vpop.permute.xlu1 %846 }
 0x58c   : > { %v862_v48 = vmul.f32 %v3265_v40, %v837_v38 }
 0x58f   : > { %v859_v41 = vpop.permute.xlu1 %858 }
 0x593   : > { %v866_v47 = vpop.permute.xlu1 %865 }
 0x594   : > { %v868_v49 = vadd.f32 %v866_v47, %v862_v48 }
 0x5fa   : > { %v841_v42 = vpop.permute.xlu0 %840 }
 0x5fb   : > { %v843_v43 = vmul.f32 %v2518_v29, %v841_v42  ;;  %v1049_v29 = vstv %s3311_s2 }
 0x5fc   : > { %vm1050_vm5 = vcmp.lt.s32.totalorder %v1049_v29, %v3219_v46 }
 0x5fd   : > { %v849_v44 = vmul.f32 %v3265_v40, %v843_v43  ;;  %v2157_v31 = vsel %vm1050_vm5, 1.0, %v2860_v1 }
 0x5fe   : > { %v1168_v33 = vsub.f32 1.0, %v2157_v31 }
 0x5ff   : > { %v3268_v45 = vadd.f32 %v859_v41, %v849_v44 }
 0x601   : > { %870 = vrot.lane.b32.xlu0 %v3268_v45, %s2863_s30 }
 0x605   : > { %875 = vrot.lane.b32.xlu0 %v868_v49, %s2864_s17 }
 0x673   : > { %v871_v50 = vpop.permute.xlu0 %870 }
 0x674   : > { %873 = vst.msk [vmem:[#allocation3] sm:$0xff] %vm427_vm0, %v871_v50 }
 0x677   : > { %v876_v51 = vpop.permute.xlu0 %875 }
 0x678   : > { %878 = vst.msk [vmem:[#allocation4] sm:$0xff] %vm427_vm0, %v876_v51 }
 0x67b   : > { %v887_v53 = vld [vmem:[#allocation3] sm:$0xff] }
 0x67c   : > { %2292 = vmatmul.mubr.msk.f32.vlgmr.msra.gmra.mrb[8].mxu0 %vm427_vm0, %v887_v53 }
 0x67d   : > { %2383 = vmatpush3.bf16.msra.mxu0 %v3179_v12  ;;  %2313 = vmatprep.mubr.msk.f32.mxu0 %vm2859_vm1, %v2860_v1 }
 0x67e   : > { %2384 = vmatprep.subr.bf16.mxu0 %v2858_v0 }
 0x67f   : > { %v888_v55 = vld [vmem:[#allocation4] sm:$0xff] }
 0x680   : > { %983 = vrot.lane.b32.xlu0 %v888_v55, %s2863_s30 }
 0x681   : > { %2386 = vmatpush3.bf16.msra.mxu0 %v3182_v14 }
 0x682   : > { %2393 = vmatprep.subr.bf16.mxu0 %v2858_v0 }
 0x684   : > { %1012 = vperm.xlu0 %2504, %v1009_v56  }
 0x6f2   : > { %v984_v7 = vpop.permute.xlu0 %983 }
 0x703   : > { %v1013_v9 = vpop.permute.xlu0 %1012 }
 0x704   : > { %v1015_v10 = vmul.f32 %v1013_v9, %v887_v53  ;;  %v1022_v11 = vmul.f32 %v1013_v9, %v888_v55 }
 0x74f   : > { %v970_v58 = vpop.f32.mrb[8].mxu0 }
 0x750   : > { %v974_v59 = vadd.f32 %v970_v58, %v896_v57  ;;  %v2293_v60 = vpop.f32.mrb[9].mxu0 }
 0x752   : > { %2521 = vtanh.f32 %v974_v59  ;;  %v2156_v62 = vmul.f32 -1.442695, %v974_v59 }
 0x754   : > { %2523 = vpow2.f32 %v2156_v62 }
 0x75c   : > { %v2522_v61 = vpop.eup %2521 }
 0x75d   : > { %988 = vrot.lane.b32.xlu1 %v2522_v61, %s2862_s18 }
 0x75e   : > { %v2524_v63 = vpop.eup %2523 }
 0x75f   : > { %v978_v2 = vadd.f32 1.0, %v2524_v63 }
 0x761   : > { %2525 = vrcp.f32 %v978_v2 }
 0x76b   : > { %v2526_v3 = vpop.eup %2525 }
 0x76c   : > { %v986_v13 = vmul.f32 %v2526_v3, %v984_v7 }
 0x7cf   : > { %v989_v4 = vpop.permute.xlu1 %988 }
 0x7d0   : > { %v991_v6 = vmul.f32 %v2526_v3, %v989_v4 }
 0x7d2   : > { %993 = vrot.lane.b32.xlu1 %v991_v6, %s2863_s30  ;;  %v1208_v6 = vstv %s3345_s3 }
 0x7d3   : > { %vm1209_vm6 = vcmp.lt.s32.totalorder %v1208_v6, %v3219_v46 }
 0x7d4   : > { %v2161_v9 = vsel %vm1209_vm6, 1.0, %v2860_v1 }
 0x7d6   : > { %1005 = vperm.xlu1 %2503, %v2153_v54  }
 0x7da   : > { %1017 = vrot.lane.b32.xlu1 %v1015_v10, %s2864_s17 }
 0x7de   : > { %1024 = vrot.lane.b32.xlu1 %v1022_v11, %s2863_s30  ;;  %v1327_v11 = vsub.f32 1.0, %v2161_v9 }
 0x844   : > { %v994_v15 = vpop.permute.xlu1 %993 }
 0x845   : > { %v996_v16 = vadd.f32 %v994_v15, %v986_v13  ;;  %v1214_v13 = vld [vmem:[%s1213_s0] sm:$0xff]  ;;  %s3678_s0 = sshll.u32 %s3411_s22, 3 }
 0x847   : > { %2527 = vtanh.f32 %v996_v16 }
 0x851   : > { %v2528_v17 = vpop.eup %2527 }
 0x852   : > { %999 = vrot.lane.b32.xlu0 %v2528_v17, %s2862_s18 }
 0x855   : > { %v3299_v18 = vpop.permute.xlu1 %1005 }
 0x856   : > { %v1021_v25 = vmul.f32 %v3299_v18, %v996_v16 }
 0x859   : > { %v1018_v19 = vpop.permute.xlu1 %1017 }
 0x85d   : > { %v1025_v24 = vpop.permute.xlu1 %1024 }
 0x85e   : > { %v1027_v26 = vadd.f32 %v1025_v24, %v1021_v25 }
 0x8c4   : > { %v1000_v20 = vpop.permute.xlu0 %999 }
 0x8c5   : > { %v1002_v21 = vmul.f32 %v2526_v3, %v1000_v20 }
 0x8c7   : > { %v1008_v22 = vmul.f32 %v3299_v18, %v1002_v21 }
 0x8c9   : > { %v3302_v23 = vadd.f32 %v1018_v19, %v1008_v22 }
 0x8cb   : > { %1029 = vrot.lane.b32.xlu0 %v3302_v23, %s2863_s30 }
 0x8cf   : > { %1034 = vrot.lane.b32.xlu0 %v1027_v26, %s2864_s17 }
 0x93d   : > { %v1030_v27 = vpop.permute.xlu0 %1029 }
 0x93e   : > { %1032 = vst.msk [vmem:[#allocation3] sm:$0xff] %vm427_vm0, %v1030_v27 }
 0x941   : > { %v1035_v28 = vpop.permute.xlu0 %1034 }
 0x942   : > { %1037 = vst.msk [vmem:[#allocation4] sm:$0xff] %vm427_vm0, %v1035_v28 }
 0x945   : > { %v1046_v30 = vld [vmem:[#allocation3] sm:$0xff] }
 0x946   : > { %2303 = vmatmul.mubr.msk.f32.vlgmr.msra.gmra.mrb[4].mxu1 %vm427_vm0, %v1046_v30 }
 0x947   : > { %2389 = vmatpush3.bf16.msra.mxu1 %v3179_v12  ;;  %2324 = vmatprep.mubr.msk.f32.mxu1 %vm2859_vm1, %v2860_v1 }
 0x948   : > { %2390 = vmatprep.subr.bf16.mxu1 %v2858_v0 }
 0x949   : > { %v1047_v32 = vld [vmem:[#allocation4] sm:$0xff] }
 0x94a   : > { %1142 = vrot.lane.b32.xlu0 %v1047_v32, %s2863_s30 }
 0x94b   : > { %2392 = vmatpush3.bf16.msra.mxu1 %v3182_v14 }
 0x94c   : > { %2399 = vmatprep.subr.bf16.mxu1 %v2858_v0 }
 0x94e   : > { %1171 = vperm.xlu0 %2504, %v1168_v33  }
 0x9bc   : > { %v1143_v48 = vpop.permute.xlu0 %1142 }
 0x9cd   : > { %v1172_v49 = vpop.permute.xlu0 %1171 }
 0x9ce   : > { %v1174_v50 = vmul.f32 %v1172_v49, %v1046_v30  ;;  %v1181_v51 = vmul.f32 %v1172_v49, %v1047_v32  ;;  %v1367_v49 = vstv %s3378_s9  ;;  %s407_s9 = scalar_lea.vmem [#allocation16], %s2134_s21 }
 0x9cf   : > { %vm1368_vm7 = vcmp.lt.s32.totalorder %v1367_v49, %v3219_v46  ;;  %s1897_s10 = sshll.u32 %s407_s9, 4  ;;  %s3528_s10 = int_to_ptr.vmem [resolvable:$true] %s1897_s10 }
 0xa19   : > { %v1129_v35 = vpop.f32.mrb[4].mxu1 }
 0xa1a   : > { %v1133_v36 = vadd.f32 %v1129_v35, %v1055_v34  ;;  %v2304_v37 = vpop.f32.mrb[5].mxu1 }
 0xa1c   : > { %2529 = vtanh.f32 %v1133_v36  ;;  %v2160_v39 = vmul.f32 -1.442695, %v1133_v36 }
 0xa1e   : > { %2531 = vpow2.f32 %v2160_v39 }
 0xa26   : > { %v2530_v38 = vpop.eup %2529 }
 0xa27   : > { %1147 = vrot.lane.b32.xlu1 %v2530_v38, %s2862_s18 }
 0xa28   : > { %v2532_v41 = vpop.eup %2531 }
 0xa29   : > { %v1137_v42 = vadd.f32 1.0, %v2532_v41 }
 0xa2b   : > { %2533 = vrcp.f32 %v1137_v42 }
 0xa35   : > { %v2534_v43 = vpop.eup %2533 }
 0xa36   : > { %v1145_v52 = vmul.f32 %v2534_v43, %v1143_v48 }
 0xa99   : > { %v1148_v44 = vpop.permute.xlu1 %1147 }
 0xa9a   : > { %v1150_v47 = vmul.f32 %v2534_v43, %v1148_v44 }
 0xa9c   : > { %1152 = vrot.lane.b32.xlu1 %v1150_v47, %s2863_s30 }
 0xaa0   : > { %1164 = vperm.xlu1 %2503, %v2157_v31  }
 0xaa4   : > { %1176 = vrot.lane.b32.xlu1 %v1174_v50, %s2864_s17 }
 0xaa8   : > { %1183 = vrot.lane.b32.xlu1 %v1181_v51, %s2863_s30  ;;  %v2165_v51 = vsel %vm1368_vm7, 1.0, %v2860_v1 }
 0xb0e   : > { %v1153_v53 = vpop.permute.xlu1 %1152 }
 0xb0f   : > { %v1155_v54 = vadd.f32 %v1153_v53, %v1145_v52  ;;  %v1486_v53 = vsub.f32 1.0, %v2165_v51 }
 0xb11   : > { %2535 = vtanh.f32 %v1155_v54 }
 0xb1b   : > { %v2536_v55 = vpop.eup %2535 }
 0xb1c   : > { %1158 = vrot.lane.b32.xlu0 %v2536_v55, %s2862_s18 }
 0xb1f   : > { %v3333_v56 = vpop.permute.xlu1 %1164 }
 0xb20   : > { %v1180_v63 = vmul.f32 %v3333_v56, %v1155_v54  ;;  %v1373_v54 = vld [vmem:[%s1372_s20] sm:$0xff]  ;;  %s1531_s20 = scalar_lea.vmem [#allocation2], %s3678_s0 }
 0xb23   : > { %v1177_v57 = vpop.permute.xlu1 %1176 }
 0xb27   : > { %v1184_v62 = vpop.permute.xlu1 %1183 }
 0xb28   : > { %v1186_v2 = vadd.f32 %v1184_v62, %v1180_v63 }
 0xb8e   : > { %v1159_v58 = vpop.permute.xlu0 %1158 }
 0xb8f   : > { %v1161_v59 = vmul.f32 %v2534_v43, %v1159_v58 }
 0xb91   : > { %v1167_v60 = vmul.f32 %v3333_v56, %v1161_v59 }
 0xb93   : > { %v3336_v61 = vadd.f32 %v1177_v57, %v1167_v60 }
 0xb95   : > { %1188 = vrot.lane.b32.xlu0 %v3336_v61, %s2863_s30 }
 0xb99   : > { %1193 = vrot.lane.b32.xlu0 %v1186_v2, %s2864_s17 }
 0xc07   : > { %v1189_v3 = vpop.permute.xlu0 %1188 }
 0xc08   : > { %1191 = vst.msk [vmem:[#allocation3] sm:$0xff] %vm427_vm0, %v1189_v3 }
 0xc0b   : > { %v1194_v4 = vpop.permute.xlu0 %1193 }
 0xc0c   : > { %1196 = vst.msk [vmem:[#allocation4] sm:$0xff] %vm427_vm0, %v1194_v4 }
 0xc0f   : > { %v1205_v7 = vld [vmem:[#allocation3] sm:$0xff] }
 0xc10   : > { %2314 = vmatmul.mubr.msk.f32.vlgmr.msra.gmra.mrb[10].mxu0 %vm427_vm0, %v1205_v7 }
 0xc11   : > { %2395 = vmatpush3.bf16.msra.mxu0 %v3179_v12  ;;  %2335 = vmatprep.mubr.msk.f32.mxu0 %vm2859_vm1, %v2860_v1 }
 0xc12   : > { %2396 = vmatprep.subr.bf16.mxu0 %v2858_v0 }
 0xc13   : > { %v1206_v10 = vld [vmem:[#allocation4] sm:$0xff] }
 0xc14   : > { %1301 = vrot.lane.b32.xlu0 %v1206_v10, %s2863_s30 }
 0xc15   : > { %2398 = vmatpush3.bf16.msra.mxu0 %v3182_v14 }
 0xc18   : > { %1330 = vperm.xlu0 %2504, %v1327_v11  }
 0xc86   : > { %v1302_v27 = vpop.permute.xlu0 %1301 }
 0xc97   : > { %v1331_v28 = vpop.permute.xlu0 %1330 }
 0xc98   : > { %v1333_v29 = vmul.f32 %v1331_v28, %v1205_v7  ;;  %v1340_v30 = vmul.f32 %v1331_v28, %v1206_v10 }
 0xce3   : > { %v1288_v15 = vpop.f32.mrb[10].mxu0 }
 0xce4   : > { %v1292_v16 = vadd.f32 %v1288_v15, %v1214_v13  ;;  %v2315_v17 = vpop.f32.mrb[11].mxu0 }
 0xce6   : > { %2537 = vtanh.f32 %v1292_v16  ;;  %v2164_v20 = vmul.f32 -1.442695, %v1292_v16 }
 0xce8   : > { %2539 = vpow2.f32 %v2164_v20 }
 0xcf0   : > { %v2538_v19 = vpop.eup %2537 }
 0xcf1   : > { %1306 = vrot.lane.b32.xlu1 %v2538_v19, %s2862_s18 }
 0xcf2   : > { %v2540_v21 = vpop.eup %2539 }
 0xcf3   : > { %v1296_v22 = vadd.f32 1.0, %v2540_v21 }
 0xcf5   : > { %2541 = vrcp.f32 %v1296_v22 }
 0xcff   : > { %v2542_v24 = vpop.eup %2541 }
 0xd00   : > { %v1304_v31 = vmul.f32 %v2542_v24, %v1302_v27  ;;  %v1526_v27 = vstv %s3411_s22 }
 0xd01   : > { %vm1527_vm8 = vcmp.lt.s32.totalorder %v1526_v27, %v3219_v46 }
 0xd63   : > { %v1307_v25 = vpop.permute.xlu1 %1306 }
 0xd64   : > { %v1309_v26 = vmul.f32 %v2542_v24, %v1307_v25 }
 0xd66   : > { %1311 = vrot.lane.b32.xlu1 %v1309_v26, %s2863_s30 }
 0xd6a   : > { %1323 = vperm.xlu1 %2503, %v2161_v9  }
 0xd6e   : > { %1335 = vrot.lane.b32.xlu1 %v1333_v29, %s2864_s17  ;;  %v2169_v29 = vsel %vm1527_vm8, 1.0, %v2860_v1 }
 0xd72   : > { %1342 = vrot.lane.b32.xlu1 %v1340_v30, %s2863_s30 }
 0xdd8   : > { %v1312_v32 = vpop.permute.xlu1 %1311 }
 0xdd9   : > { %v1314_v33 = vadd.f32 %v1312_v32, %v1304_v31  ;;  %v1645_v31 = vsub.f32 1.0, %v2169_v29  ;;  %v1532_v32 = vld [vmem:[%s1531_s20] sm:$0xff]  ;;  %s3439_s20 = scalar_select %p3724_p11, 7, 0 }
 0xddb   : > { %2543 = vtanh.f32 %v1314_v33  ;;  %s3677_s29 = sshll.u32 %s3439_s20, 3 }
 0xddc   : > { %s1690_s15 = scalar_lea.vmem [#allocation2], %s3677_s29 }
 0xde5   : > { %v2544_v34 = vpop.eup %2543 }
 0xde6   : > { %1317 = vrot.lane.b32.xlu0 %v2544_v34, %s2862_s18 }
 0xde9   : > { %v3366_v35 = vpop.permute.xlu1 %1323 }
 0xdea   : > { %v1339_v43 = vmul.f32 %v3366_v35, %v1314_v33 }
 0xded   : > { %v1336_v36 = vpop.permute.xlu1 %1335 }
 0xdf1   : > { %v1343_v42 = vpop.permute.xlu1 %1342 }
 0xdf2   : > { %v1345_v44 = vadd.f32 %v1343_v42, %v1339_v43 }
 0xe58   : > { %v1318_v37 = vpop.permute.xlu0 %1317 }
 0xe59   : > { %v1320_v38 = vmul.f32 %v2542_v24, %v1318_v37 }
 0xe5b   : > { %v1326_v39 = vmul.f32 %v3366_v35, %v1320_v38 }
 0xe5d   : > { %v3369_v41 = vadd.f32 %v1336_v36, %v1326_v39 }
 0xe5f   : > { %1347 = vrot.lane.b32.xlu0 %v3369_v41, %s2863_s30 }
 0xe63   : > { %1352 = vrot.lane.b32.xlu0 %v1345_v44, %s2864_s17 }
 0xed1   : > { %v1348_v47 = vpop.permute.xlu0 %1347 }
 0xed2   : > { %1350 = vst.msk [vmem:[#allocation3] sm:$0xff] %vm427_vm0, %v1348_v47 }
 0xed5   : > { %v1353_v48 = vpop.permute.xlu0 %1352 }
 0xed6   : > { %1355 = vst.msk [vmem:[#allocation4] sm:$0xff] %vm427_vm0, %v1353_v48 }
 0xed9   : > { %v1364_v50 = vld [vmem:[#allocation3] sm:$0xff] }
 0xeda   : > { %2325 = vmatmul.mubr.msk.f32.vlgmr.msra.gmra.mrb[6].mxu1 %vm427_vm0, %v1364_v50 }
 0xedb   : > { %2401 = vmatpush3.bf16.msra.mxu1 %v3179_v12  ;;  %2346 = vmatprep.mubr.msk.f32.mxu1 %vm2859_vm1, %v2860_v1 }
 0xedc   : > { %2402 = vmatprep.subr.bf16.mxu1 %v2858_v0 }
 0xedd   : > { %v1365_v52 = vld [vmem:[#allocation4] sm:$0xff] }
 0xede   : > { %1460 = vrot.lane.b32.xlu0 %v1365_v52, %s2863_s30 }
 0xedf   : > { %2404 = vmatpush3.bf16.msra.mxu1 %v3182_v14 }
 0xee2   : > { %1489 = vperm.xlu0 %2504, %v1486_v53  }
 0xf50   : > { %v1461_v2 = vpop.permute.xlu0 %1460 }
 0xf61   : > { %v1490_v3 = vpop.permute.xlu0 %1489 }
 0xf62   : > { %v1492_v4 = vmul.f32 %v1490_v3, %v1364_v50  ;;  %v1499_v6 = vmul.f32 %v1490_v3, %v1365_v52 }
 0xfad   : > { %v1447_v55 = vpop.f32.mrb[6].mxu1 }
 0xfae   : > { %v1451_v57 = vadd.f32 %v1447_v55, %v1373_v54  ;;  %v2326_v58 = vpop.f32.mrb[7].mxu1 }
 0xfb0   : > { %2545 = vtanh.f32 %v1451_v57  ;;  %v2168_v59 = vmul.f32 -1.442695, %v1451_v57 }
 0xfb2   : > { %2547 = vpow2.f32 %v2168_v59 }
 0xfba   : > { %v2546_v12 = vpop.eup %2545 }
 0xfbb   : > { %1465 = vrot.lane.b32.xlu1 %v2546_v12, %s2862_s18 }
 0xfbc   : > { %v2548_v0 = vpop.eup %2547 }
 0xfbd   : > { %v1455_v60 = vadd.f32 1.0, %v2548_v0 }
 0xfbf   : > { %2549 = vrcp.f32 %v1455_v60 }
 0xfc9   : > { %v2550_v62 = vpop.eup %2549 }
 0xfca   : > { %v1463_v7 = vmul.f32 %v2550_v62, %v1461_v2 }
0x102d   : > { %v1466_v63 = vpop.permute.xlu1 %1465 }
0x102e   : > { %v1468_v14 = vmul.f32 %v2550_v62, %v1466_v63 }
0x1030   : > { %1470 = vrot.lane.b32.xlu1 %v1468_v14, %s2863_s30 }
0x1034   : > { %1482 = vperm.xlu1 %2503, %v2165_v51  }
0x1038   : > { %1494 = vrot.lane.b32.xlu1 %v1492_v4, %s2864_s17  ;;  %v1685_v4 = vstv %s3439_s20 }
0x1039   : > { %vm1686_vm9 = vcmp.lt.s32.totalorder %v1685_v4, %v3219_v46 }
0x103c   : > { %1501 = vrot.lane.b32.xlu1 %v1499_v6, %s2863_s30 }
0x10a2   : > { %v1471_v9 = vpop.permute.xlu1 %1470 }
0x10a3   : > { %v1473_v10 = vadd.f32 %v1471_v9, %v1463_v7  ;;  %v2173_v7 = vsel %vm1686_vm9, 1.0, %v2860_v1 }
0x10a5   : > { %2551 = vtanh.f32 %v1473_v10 }
0x10af   : > { %v2552_v11 = vpop.eup %2551 }
0x10b0   : > { %1476 = vrot.lane.b32.xlu0 %v2552_v11, %s2862_s18  ;;  %v1691_v11 = vld [vmem:[%s1690_s15] sm:$0xff]  ;;  %s2133_s15 = sshll.u32 %s3162_s8, 6 }
0x10b1   : > { %s3459_s29 = scalar_lea.vmem [#allocation13], %s2133_s15  ;;  %s400_s15 = scalar_lea.vmem [#allocation14], %s2134_s21 }
0x10b2   : > { %s725_s0 = scalar_lea.vmem %s3459_s29, %s2146_s23 [#allocation13]  ;;  %s3490_s23 = scalar_lea.vmem %s3459_s29, %s2162_s12 [#allocation13] }
0x10b3   : > { %v3399_v13 = vpop.permute.xlu1 %1482  ;;  %s1884_s3 = sshll.u32 %s400_s15, 4  ;;  %s3725_s12 = sshll.u32 %s3411_s22, 3  ;;  %s3521_s3 = int_to_ptr.vmem [resolvable:$true] %s1884_s3 }
0x10b4   : > { %v1498_v22 = vmul.f32 %v3399_v13, %v1473_v10  ;;  %v1804_v10 = vsub.f32 1.0, %v2173_v7  ;;  %s3509_s1 = scalar_lea.vmem %s3459_s29, %s3725_s12 [#allocation13]  ;;  %s3727_s12 = sand.u32 1, %s2931_s28  }
0x10b7   : > { %v1495_v15 = vpop.permute.xlu1 %1494 }
0x10bb   : > { %v1502_v21 = vpop.permute.xlu1 %1501 }
0x10bc   : > { %v1504_v24 = vadd.f32 %v1502_v21, %v1498_v22 }
0x1122   : > { %v1477_v16 = vpop.permute.xlu0 %1476 }
0x1123   : > { %v1479_v17 = vmul.f32 %v2550_v62, %v1477_v16 }
0x1125   : > { %v1485_v19 = vmul.f32 %v3399_v13, %v1479_v17 }
0x1127   : > { %v3402_v20 = vadd.f32 %v1495_v15, %v1485_v19 }
0x1129   : > { %1506 = vrot.lane.b32.xlu0 %v3402_v20, %s2863_s30 }
0x112d   : > { %1511 = vrot.lane.b32.xlu0 %v1504_v24, %s2864_s17 }
0x119b   : > { %v1507_v25 = vpop.permute.xlu0 %1506 }
0x119c   : > { %1509 = vst.msk [vmem:[#allocation3] sm:$0xff] %vm427_vm0, %v1507_v25 }
0x119f   : > { %v1512_v26 = vpop.permute.xlu0 %1511 }
0x11a0   : > { %1514 = vst.msk [vmem:[#allocation4] sm:$0xff] %vm427_vm0, %v1512_v26 }
0x11a3   : > { %v1523_v28 = vld [vmem:[#allocation3] sm:$0xff] }
0x11a4   : > { %2336 = vmatmul.mubr.msk.f32.vlgmr.msra.gmra.mrb[12].mxu0 %vm427_vm0, %v1523_v28 }
0x11a7   : > { %v1524_v30 = vld [vmem:[#allocation4] sm:$0xff] }
0x11a8   : > { %1619 = vrot.lane.b32.xlu0 %v1524_v30, %s2863_s30 }
0x11ac   : > { %1648 = vperm.xlu0 %2504, %v1645_v31  }
0x121a   : > { %v1620_v48 = vpop.permute.xlu0 %1619 }
0x122b   : > { %v1649_v49 = vpop.permute.xlu0 %1648 }
0x122c   : > { %v1651_v50 = vmul.f32 %v1649_v49, %v1523_v28  ;;  %v1658_v51 = vmul.f32 %v1649_v49, %v1524_v30  ;;  %v1038_v49 = vmul.f32 %v3302_v23, %v3299_v18 }
0x1277   : > { %v1606_v33 = vpop.f32.mrb[12].mxu0 }
0x1278   : > { %v1610_v34 = vadd.f32 %v1606_v33, %v1532_v32  ;;  %v2337_v36 = vpop.f32.mrb[13].mxu0 }
0x127a   : > { %2553 = vtanh.f32 %v1610_v34  ;;  %v2172_v38 = vmul.f32 -1.442695, %v1610_v34 }
0x127c   : > { %2555 = vpow2.f32 %v2172_v38 }
0x1284   : > { %v2554_v37 = vpop.eup %2553 }
0x1285   : > { %1624 = vrot.lane.b32.xlu1 %v2554_v37, %s2862_s18 }
0x1286   : > { %v2556_v39 = vpop.eup %2555 }
0x1287   : > { %v1614_v42 = vadd.f32 1.0, %v2556_v39 }
0x1289   : > { %2557 = vrcp.f32 %v1614_v42 }
0x1293   : > { %v2558_v43 = vpop.eup %2557 }
0x1294   : > { %v1622_v52 = vmul.f32 %v2558_v43, %v1620_v48  ;;  %v879_v48 = vmul.f32 %v3268_v45, %v3265_v40  ;;  %v1515_v40 = vmul.f32 %v3402_v20, %v3399_v13 }
0x12f7   : > { %v1625_v44 = vpop.permute.xlu1 %1624 }
0x12f8   : > { %v1627_v47 = vmul.f32 %v2558_v43, %v1625_v44 }
0x12fa   : > { %1629 = vrot.lane.b32.xlu1 %v1627_v47, %s2863_s30 }
0x12fe   : > { %1641 = vperm.xlu1 %2503, %v2169_v29   ;;  %v720_v29 = vmul.f32 %v3234_v8, %v3231_v5 }
0x1302   : > { %1653 = vrot.lane.b32.xlu1 %v1651_v50, %s2864_s17  ;;  %v1197_v50 = vmul.f32 %v3336_v61, %v3333_v56 }
0x1306   : > { %1660 = vrot.lane.b32.xlu1 %v1658_v51, %s2863_s30  ;;  %v1356_v51 = vmul.f32 %v3369_v41, %v3366_v35 }
0x136c   : > { %v1630_v53 = vpop.permute.xlu1 %1629 }
0x136d   : > { %v1632_v54 = vadd.f32 %v1630_v53, %v1622_v52 }
0x136f   : > { %2559 = vtanh.f32 %v1632_v54 }
0x1379   : > { %v2560_v55 = vpop.eup %2559 }
0x137a   : > { %1635 = vrot.lane.b32.xlu0 %v2560_v55, %s2862_s18 }
0x137d   : > { %v3427_v57 = vpop.permute.xlu1 %1641 }
0x137e   : > { %v1657_v63 = vmul.f32 %v3427_v57, %v1632_v54 }
0x1381   : > { %v1654_v58 = vpop.permute.xlu1 %1653 }
0x1385   : > { %v1661_v62 = vpop.permute.xlu1 %1660 }
0x1386   : > { %v1663_v14 = vadd.f32 %v1661_v62, %v1657_v63 }
0x13ec   : > { %v1636_v12 = vpop.permute.xlu0 %1635 }
0x13ed   : > { %v1638_v59 = vmul.f32 %v2558_v43, %v1636_v12 }
0x13ef   : > { %v1644_v0 = vmul.f32 %v3427_v57, %v1638_v59 }
0x13f1   : > { %v3430_v60 = vadd.f32 %v1654_v58, %v1644_v0 }
0x13f3   : > { %1665 = vrot.lane.b32.xlu0 %v3430_v60, %s2863_s30  ;;  %v1674_v45 = vmul.f32 %v3430_v60, %v3427_v57 }
0x13f7   : > { %1670 = vrot.lane.b32.xlu0 %v1663_v14, %s2864_s17 }
0x1465   : > { %v1666_v2 = vpop.permute.xlu0 %1665 }
0x1466   : > { %1668 = vst.msk [vmem:[#allocation3] sm:$0xff] %vm427_vm0, %v1666_v2 }
0x1469   : > { %v1671_v3 = vpop.permute.xlu0 %1670 }
0x146a   : > { %1673 = vst.msk [vmem:[#allocation4] sm:$0xff] %vm427_vm0, %v1671_v3 }
0x146d   : > { %v1682_v6 = vld [vmem:[#allocation3] sm:$0xff] }
0x146e   : > { %2347 = vmatmul.mubr.msk.f32.vlgmr.msra.gmra.mrb[8].mxu1 %vm427_vm0, %v1682_v6 }
0x1471   : > { %v1683_v9 = vld [vmem:[#allocation4] sm:$0xff] }
0x1472   : > { %1778 = vrot.lane.b32.xlu0 %v1683_v9, %s2863_s30 }
0x1476   : > { %1807 = vperm.xlu0 %2504, %v1804_v10  }
0x14e4   : > { %v1779_v26 = vpop.permute.xlu0 %1778 }
0x14f5   : > { %v1808_v27 = vpop.permute.xlu0 %1807 }
0x14f6   : > { %v1810_v28 = vmul.f32 %v1808_v27, %v1682_v6  ;;  %v1817_v34 = vmul.f32 %v1808_v27, %v1683_v9 }
0x1541   : > { %v1765_v15 = vpop.f32.mrb[8].mxu1 }
0x1542   : > { %v1769_v16 = vadd.f32 %v1765_v15, %v1691_v11  ;;  %v2348_v17 = vpop.f32.mrb[9].mxu1 }
0x1544   : > { %2561 = vtanh.f32 %v1769_v16  ;;  %v2176_v46 = vmul.f32 -1.442695, %v1769_v16 }
0x1546   : > { %2563 = vpow2.f32 %v2176_v46 }
0x154e   : > { %v2562_v19 = vpop.eup %2561 }
0x154f   : > { %1783 = vrot.lane.b32.xlu1 %v2562_v19, %s2862_s18 }
0x1550   : > { %v2564_v21 = vpop.eup %2563 }
0x1551   : > { %v1773_v1 = vadd.f32 1.0, %v2564_v21 }
0x1553   : > { %2565 = vrcp.f32 %v1773_v1 }
0x155d   : > { %v2566_v22 = vpop.eup %2565 }
0x155e   : > { %v1781_v30 = vmul.f32 %v2566_v22, %v1779_v26 }
0x15c1   : > { %v1784_v24 = vpop.permute.xlu1 %1783 }
0x15c2   : > { %v1786_v25 = vmul.f32 %v2566_v22, %v1784_v24 }
0x15c4   : > { %1788 = vrot.lane.b32.xlu1 %v1786_v25, %s2863_s30 }
0x15c8   : > { %1800 = vperm.xlu1 %2503, %v2173_v7  }
0x15cc   : > { %1812 = vrot.lane.b32.xlu1 %v1810_v28, %s2864_s17 }
0x15d0   : > { %722 = vrot.lane.b32.xlu1 %v720_v29, %s2863_s30 }
0x1636   : > { %v1789_v31 = vpop.permute.xlu1 %1788 }
0x1637   : > { %v1791_v32 = vadd.f32 %v1789_v31, %v1781_v30 }
0x1639   : > { %2567 = vtanh.f32 %v1791_v32 }
0x1643   : > { %v2568_v33 = vpop.eup %2567 }
0x1644   : > { %1794 = vrot.lane.b32.xlu0 %v2568_v33, %s2862_s18  ;;  %s3495_s18 = scalar_lea.vmem %s3459_s29, %s2166_s11 [#allocation13] }
0x1647   : > { %v1801_v36 = vpop.permute.xlu1 %1800 }
0x1648   : > { %1819 = vrot.lane.b32.xlu0 %v1817_v34, %s2863_s30  ;;  %v1816_v42 = vmul.f32 %v1801_v36, %v1791_v32 }
0x164b   : > { %v1813_v37 = vpop.permute.xlu1 %1812 }
0x164f   : > { %v723_v5 = vpop.permute.xlu1 %722 }
0x1650   : > { %726 = vst.msk [vmem:[%s725_s0] sm:$0xff] %vm427_vm0, %v723_v5  ;;  %s1043_s0 = scalar_lea.vmem %s3459_s29, %s2154_s19 [#allocation13]  ;;  %s2715_s19 = scalar_lea.vmem %s3521_s3, 128 }
0x1651   : > { %p2716_p6 = scmp.ne.s32.totalorder %s3521_s3, %s2715_s19 }
0x1653   : > { %p2717_p13 = pnand %p2716_p6, %p3728_p12 }
0x1655   : > { %p2718_p3 = pneg %p2717_p13 }
0x16b6   : > { %v1795_v8 = vpop.permute.xlu0 %1794 }
0x16b7   : > { %v1797_v38 = vmul.f32 %v2566_v22, %v1795_v8 }
0x16b9   : > { %v1803_v39 = vmul.f32 %v1801_v36, %v1797_v38 }
0x16ba   : > { %v1820_v43 = vpop.permute.xlu0 %1819 }
0x16bb   : > { %v1822_v44 = vadd.f32 %v1820_v43, %v1816_v42  ;;  %v1815_v47 = vadd.f32 %v1813_v37, %v1803_v39 }
0x16bd   : > { %1829 = vrot.lane.b32.xlu0 %v1822_v44, %s2864_s17  ;;  %1824 = vrot.lane.b32.xlu1 %v1815_v47, %s2863_s30  ;;  %v1833_v18 = vmul.f32 %v1815_v47, %v1801_v36  ;;  %s884_s17 = scalar_lea.vmem %s3459_s29, %s2150_s14 [#allocation13]  ;;  %s3726_s14 = sshll.u32 %s3311_s2, 3 }
0x16be   : > { %s1202_s16 = scalar_lea.vmem %s3459_s29, %s3726_s14 [#allocation13]  ;;  %s2188_s2 = sshll.u32 %s2931_s28, 10 }
0x16bf   : > { %s3539_s14 = scalar_lea.sflag [#allocation15], %s3727_s12 }
0x16c1   : > { %881 = vrot.lane.b32.xlu0 %v879_v48, %s2863_s30  ;;  %1040 = vrot.lane.b32.xlu1 %v1038_v49, %s2863_s30 }
0x16c5   : > { %1199 = vrot.lane.b32.xlu0 %v1197_v50, %s2863_s30  ;;  %1358 = vrot.lane.b32.xlu1 %v1356_v51, %s2863_s30 }
0x16c9   : > { %1517 = vrot.lane.b32.xlu0 %v1515_v40, %s2863_s30  ;;  %1676 = vrot.lane.b32.xlu1 %v1674_v45, %s2863_s30 }
0x16cd   : > { %1835 = vrot.lane.b32.xlu0 %v1833_v18, %s2863_s30  ;;  %s2182_s30 = sshll.u32 %s2931_s28, 7 }
0x16ce   : > { %s3519_s4 = scalar_lea.hbm %s3654_s6, %s2182_s30 }
0x172f   : > { %v1830_v23 = vpop.permute.xlu0 %1829  ;;  %v1825_v56 = vpop.permute.xlu1 %1824 }
0x1730   : > { %1832 = vst.msk [vmem:[#allocation4] sm:$0xff] %vm427_vm0, %v1830_v23  ;;  %1827 = vst.msk [vmem:[#allocation3] sm:$0xff] %vm427_vm0, %v1825_v56 }
0x1733   : > { %v882_v61 = vpop.permute.xlu0 %881  ;;  %v1041_v35 = vpop.permute.xlu1 %1040 }
0x1734   : > { %885 = vst.msk [vmem:[%s884_s17] sm:$0xff] %vm427_vm0, %v882_v61  ;;  %s3526_s17 = scalar_lea.hbm %s3655_s7, %s2182_s30  ;;  %s2865_s30 = smov [#allocation14]  }
0x1735   : > { %1044 = vst.msk [vmem:[%s1043_s0] sm:$0xff] %vm427_vm0, %v1041_v35  ;;  %s1868_s0 = sshll.u32 %s3459_s29, 4  ;;  %s2719_s11 = sshll.u32 %s2865_s30, 4  ;;  %s2720_s11 = int_to_ptr.vmem [resolvable:$false] %s2719_s11  ;;  %s3601_s0 = int_to_ptr.vmem [resolvable:$true] %s1868_s0 }
0x1736   : > { %p2722_p7 = scmp.lt.s32.totalorder %s3521_s3, %s2720_s11 }
0x1737   : > { %v1200_v41 = vpop.permute.xlu0 %1199  ;;  %v1359_v13 = vpop.permute.xlu1 %1358  ;;  %v1840_v20 = vld [vmem:[#allocation3] sm:$0xff]  ;;  %v1842_v52 = vld [vmem:[#allocation4] sm:$0xff] }
0x1738   : > { %1203 = vst.msk [vmem:[%s1202_s16] sm:$0xff] %vm427_vm0, %v1200_v41  ;;  %1841 = vst.msk [vmem:[%s400_s15] sm:$0xff] %vm427_vm0, %v1840_v20  ;;  %s2721_s16 = scalar_lea.vmem %s2720_s11, 256 }
0x1739   : > { %1843 = vst.msk [vmem:[%s407_s9] sm:$0xff] %vm427_vm0, %v1842_v52  ;;  %1362 = vst.msk [vmem:[%s3490_s23] sm:$0xff] %vm427_vm0, %v1359_v13  ;;  %p2723_p2 = scmp.lt.s32.totalorder %s2721_s16, %s2715_s19 }
0x173b   : > { %p2724_p8 = por %p2723_p2, %p2722_p7 }
0x173d   : > { %p2725_p9 = pnand %p2724_p8, %p2718_p3 }
0x173f   : > { %2728 = shalt.err (!%p2725_p9)
}
0x1740   : > { %s2729_s23 = scalar_lea.hbm %s3519_s4, 128  ;;  %s2733_s22 = scalar_lea.hbm %s3654_s6, 256 }
0x1741   : > { %p2730_p10 = scmp.ne.s32.totalorder %s3519_s4, %s2729_s23  ;;  %p2734_p4 = scmp.lt.u32.totalorder %s3519_s4, %s3654_s6 }
0x1742   : > { %p2735_p1 = scmp.lt.u32.totalorder %s2733_s22, %s2729_s23  ;;  %p2737_p6 = scmp.lt.u32.totalorder %s2729_s23, %s3519_s4 }
0x1743   : > { %p2731_p0 = pnand %p2730_p10, %p3728_p12 }
0x1744   : > { %p2736_p11 = por %p2735_p1, %p2734_p4 }
0x1745   : > { %p2732_p5 = pneg %p2731_p0 }
0x1746   : > { %p2738_p13 = por %p2737_p6, %p2736_p11 }
0x1748   : > { %p2739_p3 = pnand %p2738_p13, %p2732_p5 }
0x174a   : > { %2742 = shalt.err (!%p2739_p3)
}
0x174b   : > { %2420 = dma.vmem_to_hbm [thread:$0]  (%p3728_p12), %s3521_s3, 128, %s3519_s4, %s3539_s14  }
0x174c   : > { %s2743_s19 = scalar_lea.vmem %s3528_s10, 128  ;;  %s2866_s30 = smov [#allocation16]  }
0x174d   : > { %p2744_p7 = scmp.ne.s32.totalorder %s3528_s10, %s2743_s19  ;;  %s2747_s11 = sshll.u32 %s2866_s30, 4  ;;  %s2748_s11 = int_to_ptr.vmem [resolvable:$false] %s2747_s11 }
0x174e   : > { %s2749_s16 = scalar_lea.vmem %s2748_s11, 256  ;;  %p2750_p9 = scmp.lt.s32.totalorder %s3528_s10, %s2748_s11 }
0x174f   : > { %p2745_p2 = pnand %p2744_p7, %p3728_p12  ;;  %p2751_p10 = scmp.lt.s32.totalorder %s2749_s16, %s2743_s19 }
0x1751   : > { %p2746_p8 = pneg %p2745_p2  ;;  %p2752_p0 = por %p2751_p10, %p2750_p9 }
0x1753   : > { %p2753_p5 = pnand %p2752_p0, %p2746_p8 }
0x1755   : > { %2756 = shalt.err (!%p2753_p5)
}
0x1756   : > { %s2757_s4 = scalar_lea.hbm %s3526_s17, 128  ;;  %s2761_s15 = scalar_lea.hbm %s3655_s7, 256 }
0x1757   : > { %p2758_p4 = scmp.ne.s32.totalorder %s3526_s17, %s2757_s4  ;;  %p2762_p6 = scmp.lt.u32.totalorder %s3526_s17, %s3655_s7 }
0x1758   : > { %p2763_p13 = scmp.lt.u32.totalorder %s2761_s15, %s2757_s4  ;;  %p2765_p7 = scmp.lt.u32.totalorder %s2757_s4, %s3526_s17 }
0x1759   : > { %p2759_p1 = pnand %p2758_p4, %p3728_p12 }
0x175a   : > { %p2764_p3 = por %p2763_p13, %p2762_p6 }
0x175b   : > { %p2760_p11 = pneg %p2759_p1 }
0x175c   : > { %p2766_p2 = por %p2765_p7, %p2764_p3 }
0x175e   : > { %p2767_p8 = pnand %p2766_p2, %p2760_p11 }
0x1760   : > { %2770 = shalt.err (!%p2767_p8)
}
0x1761   : > { %2421 = dma.vmem_to_hbm [thread:$0]  (%p3728_p12), %s3528_s10, 128, %s3526_s17, %s3539_s14   ;;  %v1518_v53 = vpop.permute.xlu0 %1517  ;;  %v1677_v54 = vpop.permute.xlu1 %1676 }
0x1762   : > { %s3729_s21 = sshll.u32 %s3439_s20, 3  ;;  %1521 = vst.msk [vmem:[%s3495_s18] sm:$0xff] %vm427_vm0, %v1518_v53  ;;  %s3597_s11 = scalar_lea.hbm %s3653_s5, %s2188_s2 }
0x1763   : > { %s1838_s12 = scalar_lea.vmem %s3459_s29, %s3729_s21 [#allocation13]  ;;  %1680 = vst.msk [vmem:[%s3509_s1] sm:$0xff] %vm427_vm0, %v1677_v54  ;;  %s1845_s20 = scalar_lea.sflag [#allocation7], %s3162_s8 }
0x1764   : > { %s2771_s10 = scalar_lea.vmem %s3601_s0, 1024  ;;  %s2867_s1 = smov [#allocation13]  }
0x1765   : > { %v1836_v55 = vpop.permute.xlu0 %1835  ;;  %p2772_p9 = scmp.ne.s32.totalorder %s3601_s0, %s2771_s10  ;;  %s2775_s28 = sshll.u32 %s2867_s1, 4  ;;  %s2776_s28 = int_to_ptr.vmem [resolvable:$false] %s2775_s28 }
0x1766   : > { %1839 = vst.msk [vmem:[%s1838_s12] sm:$0xff] %vm427_vm0, %v1836_v55  ;;  %s2777_s18 = scalar_lea.vmem %s2776_s28, 2048  ;;  %p2778_p5 = scmp.lt.s32.totalorder %s3601_s0, %s2776_s28 }
0x1767   : > { %p2773_p10 = pnand %p2772_p9, %p3728_p12  ;;  %p2779_p4 = scmp.lt.s32.totalorder %s2777_s18, %s2771_s10 }
0x1769   : > { %p2774_p0 = pneg %p2773_p10  ;;  %p2780_p1 = por %p2779_p4, %p2778_p5 }
0x176b   : > { %p2781_p11 = pnand %p2780_p1, %p2774_p0 }
0x176d   : > { %2784 = shalt.err (!%p2781_p11)
}
0x176e   : > { %s2785_s29 = scalar_lea.hbm %s3597_s11, 1024  ;;  %s2789_s14 = scalar_lea.hbm %s3653_s5, 2048 }
0x176f   : > { %p2786_p6 = scmp.ne.s32.totalorder %s3597_s11, %s2785_s29  ;;  %p2790_p7 = scmp.lt.u32.totalorder %s3597_s11, %s3653_s5 }
0x1770   : > { %p2791_p2 = scmp.lt.u32.totalorder %s2789_s14, %s2785_s29  ;;  %p2793_p9 = scmp.lt.u32.totalorder %s2785_s29, %s3597_s11 }
0x1771   : > { %p2787_p13 = pnand %p2786_p6, %p3728_p12 }
0x1772   : > { %p2792_p8 = por %p2791_p2, %p2790_p7 }
0x1773   : > { %p2788_p3 = pneg %p2787_p13 }
0x1774   : > { %p2794_p10 = por %p2793_p9, %p2792_p8 }
0x1776   : > { %p2795_p0 = pnand %p2794_p10, %p2788_p3 }
0x1778   : > { %2798 = shalt.err (!%p2795_p0)
}
0x1779   : > { %s2868_s3 = smov 128   ;;  %s2869_s23 = smov 8  }
0x177a   : > { %2419 = dma.vmem_to_hbm [thread:$0]  (%p3728_p12), %s3601_s0, 1024, %s3597_s11, %s1845_s20, %s2868_s3, %s2868_s3, %s2869_s23  }
0x177b PF: > { %s3730_s15 = sld [smem:[#allocation24_spill]]  ;;  %s1909_s9 = sand.u32 1, %s2837_s24  }
0x177c   : > { %p3732_p4 = scmp.ge.s32.totalorder %s2849_s27, 2  ;;  %s1910_s22 = scalar_lea.sflag [#allocation7], %s1909_s9 }
0x1781   : > { %p3731_p5 = scmp.ne.s32.totalorder %s3730_s15, 0 }
0x1783   : > { %p2443_p1 = pnand %p3732_p4, %p3731_p5 }
0x1785   : > { %2828 = dma.done.wait (!%p2443_p1), %s1910_s22, 1024  }
0x1786   : > { %2830 = vsyncadd (!%p2443_p1), %s1910_s22, 4294966272  ;;  %s3733_s21 = sadd.s32 4294967294, %s2849_s27  }
0x1787   : > { %s1918_s12 = sand.u32 1, %s3733_s21  }
0x1788   : > { %s1919_s19 = scalar_lea.sflag [#allocation15], %s1918_s12 }
0x1789   : > { %2832 = dma.done.wait (!%p2443_p1), %s1919_s19, 256  }
0x178a   : > { %2834 = vsyncadd (!%p2443_p1), %s1919_s19, 4294967040  ;;  %s3734_s27 = sld [smem:[#allocation22_spill]]  ;;  %s3735_s13 = sld [smem:[#allocation23_spill]] }
0x178b   : > { %s3736_s24 = smov %s2841_s25  ;;  %s3737_s25 = smov %s2845_s26 }
0x1790   : > { %p23_p12 = scmp.ge.s32.totalorder %s3734_s27, 4   ;;  %s3738_s26 = smov %s3735_s13 }
0x1792   :  { %25 = sbr.rel (!%p23_p12) target bundleno = 13 (0xd), region = 162 }
0x1799   :  { %1933 = vsyncpa [#allocation6], 1 }
0x179a   :  { %1935 = vsyncpa [#allocation6 + $0x1], 1 }
0x179b   :  { %1936 = vsyncpa [#allocation9], 1 }
0x179c   :  { %1937 = vsyncpa [#allocation7], 1 }
0x179d   :  { %1939 = vsyncpa [#allocation7 + $0x1], 1 }
0x179e   :  { %1940 = vsyncpa [#allocation15], 1 }
0x179f   :  { %1942 = vsyncpa [#allocation15 + $0x1], 1 }

</bundles_post_ra>
